<compile_context>
chip_gen: v6e
topology: v6e:2x2x1
jax: 0.10.0
libtpu: 0.0.40
codegen_flags: <defaults>
</compile_context>

<pallas_src>
import functools

import jax
import jax.numpy as jnp
from jax import lax
from jax.experimental import pallas as pl
from jax.experimental.pallas import tpu as pltpu


# ----------------------------- Pallas kernel ------------------------------- #

def _conv3_bn(h, w_ref, b_ref, at_start, at_end):
    """Conv1d(k=3, pad=1) with folded BN as a single im2col matmul.

    h:        (Cin, BL) activations; length (with packed batch) along lanes.
    w_ref:    (Cout, 3*Cin) folded weight; column index = tap*Cin + cin,
              tap 0 -> x[l-1], tap 1 -> x[l], tap 2 -> x[l+1].
    b_ref:    (Cout, 1) folded bias.
    at_start: (1, BL) bool, lanes where l == 0   within each packed element.
    at_end:   (1, BL) bool, lanes where l == L-1 within each packed element.
    """
    cin, bl = h.shape
    zero_col = jnp.zeros((cin, 1), h.dtype)
    # shifted tap views, built once and reused in the im2col
    prev = jnp.concatenate([zero_col, h[:, :bl - 1]], axis=1)   # h[:, j-1]
    prev = jnp.where(at_start, 0.0, prev)                       # no cross-batch halo
    nxt = jnp.concatenate([h[:, 1:], zero_col], axis=1)         # h[:, j+1]
    nxt = jnp.where(at_end, 0.0, nxt)
    im2col = jnp.concatenate([prev, h, nxt], axis=0)            # (3*Cin, BL)
    y = jnp.dot(w_ref[...], im2col, preferred_element_type=jnp.float32)
    return y + b_ref[...]                                       # (Cout, BL)


def stego_kernel(a_ref, m_ref,
                 w1_ref, b1_ref, w2_ref, b2_ref,
                 w3_ref, b3_ref, w4_ref, b4_ref,
                 o_ref, *, L):
    bl = a_ref.shape[-1]
    # lane position within each packed batch element (hoisted; reused by all layers)
    pos = lax.broadcasted_iota(jnp.int32, (1, bl), 1) % L
    at_start = pos == 0
    at_end = pos == (L - 1)

    x = jnp.concatenate([a_ref[...], m_ref[...]], axis=0)                    # (2,  BL)
    # encoder: Conv(2->64)+BN+ReLU, Conv(64->32)+BN+ReLU  (BN folded in wrapper)
    h = jnp.maximum(_conv3_bn(x, w1_ref, b1_ref, at_start, at_end), 0.0)     # (64, BL)
    h = jnp.maximum(_conv3_bn(h, w2_ref, b2_ref, at_start, at_end), 0.0)     # (32, BL)
    # decoder: Conv(32->64)+BN+ReLU, Conv(64->1)+Tanh
    h = jnp.maximum(_conv3_bn(h, w3_ref, b3_ref, at_start, at_end), 0.0)     # (64, BL)
    y = jnp.tanh(_conv3_bn(h, w4_ref, b4_ref, at_start, at_end))             # (1,  BL)
    o_ref[...] = y.astype(o_ref.dtype)


def stego_forward_pallas(audio, message, params, *, batch_block=8):
    """audio, message: (N, 1, L) float32.  Returns (N, 1, L) float32."""
    N, _, L = audio.shape
    B = min(batch_block, N)
    G = pl.cdiv(N, B)
    Np = G * B
    if Np != N:                       # pad batch to a multiple of the block
        pad = ((0, Np - N), (0, 0), (0, 0))
        audio = jnp.pad(audio, pad)
        message = jnp.pad(message, pad)
    BL = B * L

    # Row-major reshapes only (free): batch folded into the lane dimension.
    a3 = audio.reshape(G, 1, BL)
    m3 = message.reshape(G, 1, BL)

    (w1, b1), (w2, b2), (w3, b3), (w4, b4) = params

    def full_spec(arr):
        nd = arr.ndim
        return pl.BlockSpec(arr.shape, lambda n: (0,) * nd)

    io_spec = pl.BlockSpec((None, 1, BL), lambda n: (n, 0, 0))

    out = pl.pallas_call(
        functools.partial(stego_kernel, L=L),
        out_shape=jax.ShapeDtypeStruct((G, 1, BL), jnp.float32),
        grid_spec=pltpu.PrefetchScalarGridSpec(
            num_scalar_prefetch=0,
            grid=(G,),
            in_specs=[
                io_spec, io_spec,
                full_spec(w1), full_spec(b1),
                full_spec(w2), full_spec(b2),
                full_spec(w3), full_spec(b3),
                full_spec(w4), full_spec(b4),
            ],
            out_specs=io_spec,
        ),
        compiler_params=pltpu.CompilerParams(
            dimension_semantics=("parallel",)),
    )(a3, m3, w1, b1, w2, b2, w3, b3, w4, b4)

    # Free row-major reshape back to (N, 1, L); drop any batch padding.
    return out.reshape(Np, 1, L)[:N]


# ------------------------- parameter construction -------------------------- #

def _make_conv_bn_params(key, c_in, c_out, with_bn, eps=1e-5):
    """Deterministic Conv1d(+ eval-mode BatchNorm1d) params with BN folded in.

    Returns (w, b) with w: (Cout, 3*Cin) im2col layout, b: (Cout, 1), plus the
    raw torch-layout params for the pure-JAX reference.
    """
    ks = jax.random.split(key, 6)
    w_pt = 0.1 * jax.random.normal(ks[0], (c_out, c_in, 3), jnp.float32)   # torch layout
    b_pt = 0.1 * jax.random.normal(ks[1], (c_out,), jnp.float32)
    if with_bn:
        gamma = 1.0 + 0.1 * jax.random.normal(ks[2], (c_out,), jnp.float32)
        beta = 0.1 * jax.random.normal(ks[3], (c_out,), jnp.float32)
        r_mean = 0.1 * jax.random.normal(ks[4], (c_out,), jnp.float32)
        r_var = 0.5 + jnp.abs(jax.random.normal(ks[5], (c_out,), jnp.float32))
    else:
        gamma = jnp.ones((c_out,), jnp.float32)
        beta = jnp.zeros((c_out,), jnp.float32)
        r_mean = jnp.zeros((c_out,), jnp.float32)
        r_var = jnp.ones((c_out,), jnp.float32)

    scale = gamma / jnp.sqrt(r_var + eps)                         # per output channel
    # (Cout, Cin, 3) -> (Cout, 3, Cin) -> (Cout, 3*Cin): column = tap*Cin + cin
    w_im2col = jnp.transpose(w_pt, (0, 2, 1)).reshape(c_out, 3 * c_in)
    w_folded = w_im2col * scale[:, None]
    b_folded = ((b_pt - r_mean) * scale + beta)[:, None]          # (Cout, 1)
    raw = (w_pt, b_pt, gamma, beta, r_mean, r_var, eps)
    return (w_folded, b_folded), raw


# ---------------------------- pure-JAX reference ---------------------------- #

def _conv1d_ref(x, w_pt, b_pt):
    """x: (N, Cin, L), w_pt: (Cout, Cin, 3) -> (N, Cout, L) (pad=1, stride=1)."""
    N, Cin, L = x.shape
    xp = jnp.pad(x, ((0, 0), (0, 0), (1, 1)))
    xs = jnp.stack([xp[:, :, k:k + L] for k in range(3)], axis=-1)   # (N, Cin, L, 3)
    y = jnp.einsum('ncls,ocs->nol', xs, w_pt, preferred_element_type=jnp.float32)
    return y + b_pt[None, :, None]


def _bn_eval_ref(x, gamma, beta, mean, var, eps):
    inv = gamma / jnp.sqrt(var + eps)
    return (x - mean[None, :, None]) * inv[None, :, None] + beta[None, :, None]


def stego_forward_ref(audio, message, raw_params):
    x = jnp.concatenate([audio, message], axis=1)
    (w1, b1, g1, be1, m1, v1, e1), (w2, b2, g2, be2, m2, v2, e2), \
        (w3, b3, g3, be3, m3, v3, e3), (w4, b4, _, _, _, _, _) = raw_params
    h = jnp.maximum(_bn_eval_ref(_conv1d_ref(x, w1, b1), g1, be1, m1, v1, e1), 0.0)
    h = jnp.maximum(_bn_eval_ref(_conv1d_ref(h, w2, b2), g2, be2, m2, v2, e2), 0.0)
    h = jnp.maximum(_bn_eval_ref(_conv1d_ref(h, w3, b3), g3, be3, m3, v3, e3), 0.0)
    return jnp.tanh(_conv1d_ref(h, w4, b4))


# ----------------------------------- main ----------------------------------- #

if __name__ == "__main__":
    key = jax.random.PRNGKey(0)
    k_a, k_m, k1, k2, k3, k4 = jax.random.split(key, 6)

    N, L = 16, 128           # 2 batch-blocks of 8 -> 2 parallel grid steps
    audio = jax.random.normal(k_a, (N, 1, L), jnp.float32)
    message = jax.random.normal(k_m, (N, 1, L), jnp.float32)

    p1, r1 = _make_conv_bn_params(k1, 2, 64, with_bn=True)
    p2, r2 = _make_conv_bn_params(k2, 64, 32, with_bn=True)
    p3, r3 = _make_conv_bn_params(k3, 32, 64, with_bn=True)
    p4, r4 = _make_conv_bn_params(k4, 64, 1, with_bn=False)
    params = (p1, p2, p3, p4)

    out = jax.block_until_ready(stego_forward_pallas(audio, message, params))
    ref = jax.block_until_ready(stego_forward_ref(audio, message, (r1, r2, r3, r4)))

    assert out.shape == (N, 1, L), out.shape
    max_err = float(jnp.max(jnp.abs(out - ref)))
    assert jnp.allclose(out, ref, atol=2e-3, rtol=2e-3), max_err

    print("KERNEL_OK")
</pallas_src>

<mosaic_0001>
module attributes {stable_mosaic.version = 11 : i64} {
  func.func @stego_kernel(%arg0: i32, %arg1: memref<1x1x1024xf32, #tpu.memory_space<vmem>>, %arg2: memref<1x1x1024xf32, #tpu.memory_space<vmem>>, %arg3: memref<64x6xf32, #tpu.memory_space<vmem>>, %arg4: memref<64x1xf32, #tpu.memory_space<vmem>>, %arg5: memref<32x192xf32, #tpu.memory_space<vmem>>, %arg6: memref<32x1xf32, #tpu.memory_space<vmem>>, %arg7: memref<64x96xf32, #tpu.memory_space<vmem>>, %arg8: memref<64x1xf32, #tpu.memory_space<vmem>>, %arg9: memref<1x192xf32, #tpu.memory_space<vmem>>, %arg10: memref<1x1xf32, #tpu.memory_space<vmem>>, %arg11: memref<1x1x1024xf32, #tpu.memory_space<vmem>>) attributes {dimension_semantics = [#tpu.dimension_semantics<parallel>], iteration_bounds = array<i64: 2>, scalar_prefetch = 0 : i64, scratch_operands = 0 : i64, tpu.core_type = #tpu.core_type<tc>, window_params = [{transform_indices = @transform_0, window_bounds = array<i64: 1, 1, 1024>}, {transform_indices = @transform_1, window_bounds = array<i64: 1, 1, 1024>}, {pipeline_mode = #tpu.pipeline_mode<synchronous>, transform_indices = @transform_2, window_bounds = array<i64: 64, 6>}, {pipeline_mode = #tpu.pipeline_mode<synchronous>, transform_indices = @transform_3, window_bounds = array<i64: 64, 1>}, {pipeline_mode = #tpu.pipeline_mode<synchronous>, transform_indices = @transform_4, window_bounds = array<i64: 32, 192>}, {pipeline_mode = #tpu.pipeline_mode<synchronous>, transform_indices = @transform_5, window_bounds = array<i64: 32, 1>}, {pipeline_mode = #tpu.pipeline_mode<synchronous>, transform_indices = @transform_6, window_bounds = array<i64: 64, 96>}, {pipeline_mode = #tpu.pipeline_mode<synchronous>, transform_indices = @transform_7, window_bounds = array<i64: 64, 1>}, {pipeline_mode = #tpu.pipeline_mode<synchronous>, transform_indices = @transform_8, window_bounds = array<i64: 1, 192>}, {pipeline_mode = #tpu.pipeline_mode<synchronous>, transform_indices = @transform_9, window_bounds = array<i64: 1, 1>}, {transform_indices = @transform_10, window_bounds = array<i64: 1, 1, 1024>}]} {
    %0 = tpu.iota {dimensions = array<i32: 1>} : vector<1x1024xi32>
    %c128_i32 = arith.constant 128 : i32
    %c0_i32 = arith.constant 0 : i32
    %1 = arith.cmpi eq, %c128_i32, %c0_i32 : i32
    %c1_i32 = arith.constant 1 : i32
    %2 = arith.select %1, %c1_i32, %c128_i32 : i32
    %3 = vector.broadcast %2 : i32 to vector<1x1024xi32>
    %4 = arith.remsi %0, %3 : vector<1x1024xi32>
    %c0_i32_0 = arith.constant 0 : i32
    %5 = vector.broadcast %c0_i32_0 : i32 to vector<1x1024xi32>
    %6 = arith.cmpi ne, %4, %5 : vector<1x1024xi32>
    %c0_i32_1 = arith.constant 0 : i32
    %7 = vector.broadcast %c0_i32_1 : i32 to vector<1x1024xi32>
    %8 = arith.cmpi slt, %4, %7 : vector<1x1024xi32>
    %c0_i32_2 = arith.constant 0 : i32
    %9 = arith.cmpi slt, %2, %c0_i32_2 : i32
    %10 = vector.broadcast %9 : i1 to vector<1x1024xi1>
    %11 = vector.broadcast %10 : vector<1x1024xi1> to vector<1x1024xi1>
    %12 = arith.xori %8, %11 : vector<1x1024xi1>
    %13 = arith.andi %12, %6 : vector<1x1024xi1>
    %14 = vector.broadcast %2 : i32 to vector<1x1024xi32>
    %15 = arith.addi %4, %14 : vector<1x1024xi32>
    %16 = arith.select %13, %15, %4 : vector<1x1024xi1>, vector<1x1024xi32>
    %c0_i32_3 = arith.constant 0 : i32
    %17 = vector.broadcast %c0_i32_3 : i32 to vector<1x1024xi32>
    %18 = arith.cmpi eq, %16, %17 : vector<1x1024xi32>
    %c127_i32 = arith.constant 127 : i32
    %19 = vector.broadcast %c127_i32 : i32 to vector<1x1024xi32>
    %20 = arith.cmpi eq, %16, %19 : vector<1x1024xi32>
    %c0 = arith.constant 0 : index
    %c0_4 = arith.constant 0 : index
    %c0_5 = arith.constant 0 : index
    %21 = vector.load %arg1[%c0, %c0_4, %c0_5] : memref<1x1x1024xf32, #tpu.memory_space<vmem>>, vector<1x1x1024xf32>
    %22 = vector.shape_cast %21 : vector<1x1x1024xf32> to vector<1x1024xf32>
    %c0_6 = arith.constant 0 : index
    %c0_7 = arith.constant 0 : index
    %c0_8 = arith.constant 0 : index
    %23 = vector.load %arg2[%c0_6, %c0_7, %c0_8] : memref<1x1x1024xf32, #tpu.memory_space<vmem>>, vector<1x1x1024xf32>
    %24 = vector.shape_cast %23 : vector<1x1x1024xf32> to vector<1x1024xf32>
    %25 = tpu.concatenate %22, %24 in 0 : vector<1x1024xf32>, vector<1x1024xf32> -> vector<2x1024xf32>
    %cst = arith.constant 0.000000e+00 : f32
    %26 = vector.broadcast %cst : f32 to vector<2x1xf32>
    %27 = vector.extract_strided_slice %25 {offsets = [0, 0], sizes = [2, 1023], strides = [1, 1]} : vector<2x1024xf32> to vector<2x1023xf32>
    %28 = tpu.concatenate %26, %27 in 1 : vector<2x1xf32>, vector<2x1023xf32> -> vector<2x1024xf32>
    %cst_9 = arith.constant 0.000000e+00 : f32
    %29 = vector.shape_cast %18 : vector<1x1024xi1> to vector<1x1024xi1>
    %30 = vector.broadcast %29 : vector<1x1024xi1> to vector<2x1024xi1>
    %31 = vector.broadcast %cst_9 : f32 to vector<2x1024xf32>
    %32 = arith.select %30, %31, %28 : vector<2x1024xi1>, vector<2x1024xf32>
    %33 = vector.extract_strided_slice %25 {offsets = [0, 1], sizes = [2, 1023], strides = [1, 1]} : vector<2x1024xf32> to vector<2x1023xf32>
    %34 = tpu.concatenate %33, %26 in 1 : vector<2x1023xf32>, vector<2x1xf32> -> vector<2x1024xf32>
    %cst_10 = arith.constant 0.000000e+00 : f32
    %35 = vector.shape_cast %20 : vector<1x1024xi1> to vector<1x1024xi1>
    %36 = vector.broadcast %35 : vector<1x1024xi1> to vector<2x1024xi1>
    %37 = vector.broadcast %cst_10 : f32 to vector<2x1024xf32>
    %38 = arith.select %36, %37, %34 : vector<2x1024xi1>, vector<2x1024xf32>
    %39 = tpu.concatenate %32, %25, %38 in 0 : vector<2x1024xf32>, vector<2x1024xf32>, vector<2x1024xf32> -> vector<6x1024xf32>
    %c0_11 = arith.constant 0 : index
    %c0_12 = arith.constant 0 : index
    %40 = vector.load %arg3[%c0_11, %c0_12] : memref<64x6xf32, #tpu.memory_space<vmem>>, vector<64x6xf32>
    %cst_13 = arith.constant dense<0.000000e+00> : vector<64x1024xf32>
    %41 = tpu.matmul %40, %39, %cst_13 {dimension_numbers = #tpu.dot_dimension_numbers<[1], [0], [0], [1], [0, 0, 1, 1], [], []>} : vector<64x6xf32>, vector<6x1024xf32>, vector<64x1024xf32> -> vector<64x1024xf32>
    %c0_14 = arith.constant 0 : index
    %c0_15 = arith.constant 0 : index
    %42 = vector.load %arg4[%c0_14, %c0_15] : memref<64x1xf32, #tpu.memory_space<vmem>>, vector<64x1xf32>
    %43 = vector.broadcast %42 : vector<64x1xf32> to vector<64x1024xf32>
    %44 = arith.addf %41, %43 : vector<64x1024xf32>
    %cst_16 = arith.constant 0.000000e+00 : f32
    %45 = vector.broadcast %cst_16 : f32 to vector<64x1024xf32>
    %46 = arith.maximumf %44, %45 : vector<64x1024xf32>
    %cst_17 = arith.constant 0.000000e+00 : f32
    %47 = vector.broadcast %cst_17 : f32 to vector<64x1xf32>
    %48 = vector.extract_strided_slice %46 {offsets = [0, 0], sizes = [64, 1023], strides = [1, 1]} : vector<64x1024xf32> to vector<64x1023xf32>
    %49 = tpu.concatenate %47, %48 in 1 : vector<64x1xf32>, vector<64x1023xf32> -> vector<64x1024xf32>
    %cst_18 = arith.constant 0.000000e+00 : f32
    %50 = vector.shape_cast %18 : vector<1x1024xi1> to vector<1x1024xi1>
    %51 = vector.broadcast %50 : vector<1x1024xi1> to vector<64x1024xi1>
    %52 = vector.broadcast %cst_18 : f32 to vector<64x1024xf32>
    %53 = arith.select %51, %52, %49 : vector<64x1024xi1>, vector<64x1024xf32>
    %54 = vector.extract_strided_slice %46 {offsets = [0, 1], sizes = [64, 1023], strides = [1, 1]} : vector<64x1024xf32> to vector<64x1023xf32>
    %55 = tpu.concatenate %54, %47 in 1 : vector<64x1023xf32>, vector<64x1xf32> -> vector<64x1024xf32>
    %cst_19 = arith.constant 0.000000e+00 : f32
    %56 = vector.shape_cast %20 : vector<1x1024xi1> to vector<1x1024xi1>
    %57 = vector.broadcast %56 : vector<1x1024xi1> to vector<64x1024xi1>
    %58 = vector.broadcast %cst_19 : f32 to vector<64x1024xf32>
    %59 = arith.select %57, %58, %55 : vector<64x1024xi1>, vector<64x1024xf32>
    %60 = tpu.concatenate %53, %46, %59 in 0 : vector<64x1024xf32>, vector<64x1024xf32>, vector<64x1024xf32> -> vector<192x1024xf32>
    %c0_20 = arith.constant 0 : index
    %c0_21 = arith.constant 0 : index
    %61 = vector.load %arg5[%c0_20, %c0_21] : memref<32x192xf32, #tpu.memory_space<vmem>>, vector<32x192xf32>
    %cst_22 = arith.constant dense<0.000000e+00> : vector<32x1024xf32>
    %62 = tpu.matmul %61, %60, %cst_22 {dimension_numbers = #tpu.dot_dimension_numbers<[1], [0], [0], [1], [0, 0, 1, 1], [], []>} : vector<32x192xf32>, vector<192x1024xf32>, vector<32x1024xf32> -> vector<32x1024xf32>
    %c0_23 = arith.constant 0 : index
    %c0_24 = arith.constant 0 : index
    %63 = vector.load %arg6[%c0_23, %c0_24] : memref<32x1xf32, #tpu.memory_space<vmem>>, vector<32x1xf32>
    %64 = vector.broadcast %63 : vector<32x1xf32> to vector<32x1024xf32>
    %65 = arith.addf %62, %64 : vector<32x1024xf32>
    %cst_25 = arith.constant 0.000000e+00 : f32
    %66 = vector.broadcast %cst_25 : f32 to vector<32x1024xf32>
    %67 = arith.maximumf %65, %66 : vector<32x1024xf32>
    %cst_26 = arith.constant 0.000000e+00 : f32
    %68 = vector.broadcast %cst_26 : f32 to vector<32x1xf32>
    %69 = vector.extract_strided_slice %67 {offsets = [0, 0], sizes = [32, 1023], strides = [1, 1]} : vector<32x1024xf32> to vector<32x1023xf32>
    %70 = tpu.concatenate %68, %69 in 1 : vector<32x1xf32>, vector<32x1023xf32> -> vector<32x1024xf32>
    %cst_27 = arith.constant 0.000000e+00 : f32
    %71 = vector.shape_cast %18 : vector<1x1024xi1> to vector<1x1024xi1>
    %72 = vector.broadcast %71 : vector<1x1024xi1> to vector<32x1024xi1>
    %73 = vector.broadcast %cst_27 : f32 to vector<32x1024xf32>
    %74 = arith.select %72, %73, %70 : vector<32x1024xi1>, vector<32x1024xf32>
    %75 = vector.extract_strided_slice %67 {offsets = [0, 1], sizes = [32, 1023], strides = [1, 1]} : vector<32x1024xf32> to vector<32x1023xf32>
    %76 = tpu.concatenate %75, %68 in 1 : vector<32x1023xf32>, vector<32x1xf32> -> vector<32x1024xf32>
    %cst_28 = arith.constant 0.000000e+00 : f32
    %77 = vector.shape_cast %20 : vector<1x1024xi1> to vector<1x1024xi1>
    %78 = vector.broadcast %77 : vector<1x1024xi1> to vector<32x1024xi1>
    %79 = vector.broadcast %cst_28 : f32 to vector<32x1024xf32>
    %80 = arith.select %78, %79, %76 : vector<32x1024xi1>, vector<32x1024xf32>
    %81 = tpu.concatenate %74, %67, %80 in 0 : vector<32x1024xf32>, vector<32x1024xf32>, vector<32x1024xf32> -> vector<96x1024xf32>
    %c0_29 = arith.constant 0 : index
    %c0_30 = arith.constant 0 : index
    %82 = vector.load %arg7[%c0_29, %c0_30] : memref<64x96xf32, #tpu.memory_space<vmem>>, vector<64x96xf32>
    %cst_31 = arith.constant dense<0.000000e+00> : vector<64x1024xf32>
    %83 = tpu.matmul %82, %81, %cst_31 {dimension_numbers = #tpu.dot_dimension_numbers<[1], [0], [0], [1], [0, 0, 1, 1], [], []>} : vector<64x96xf32>, vector<96x1024xf32>, vector<64x1024xf32> -> vector<64x1024xf32>
    %c0_32 = arith.constant 0 : index
    %c0_33 = arith.constant 0 : index
    %84 = vector.load %arg8[%c0_32, %c0_33] : memref<64x1xf32, #tpu.memory_space<vmem>>, vector<64x1xf32>
    %85 = vector.broadcast %84 : vector<64x1xf32> to vector<64x1024xf32>
    %86 = arith.addf %83, %85 : vector<64x1024xf32>
    %cst_34 = arith.constant 0.000000e+00 : f32
    %87 = vector.broadcast %cst_34 : f32 to vector<64x1024xf32>
    %88 = arith.maximumf %86, %87 : vector<64x1024xf32>
    %cst_35 = arith.constant 0.000000e+00 : f32
    %89 = vector.broadcast %cst_35 : f32 to vector<64x1xf32>
    %90 = vector.extract_strided_slice %88 {offsets = [0, 0], sizes = [64, 1023], strides = [1, 1]} : vector<64x1024xf32> to vector<64x1023xf32>
    %91 = tpu.concatenate %89, %90 in 1 : vector<64x1xf32>, vector<64x1023xf32> -> vector<64x1024xf32>
    %cst_36 = arith.constant 0.000000e+00 : f32
    %92 = vector.shape_cast %18 : vector<1x1024xi1> to vector<1x1024xi1>
    %93 = vector.broadcast %92 : vector<1x1024xi1> to vector<64x1024xi1>
    %94 = vector.broadcast %cst_36 : f32 to vector<64x1024xf32>
    %95 = arith.select %93, %94, %91 : vector<64x1024xi1>, vector<64x1024xf32>
    %96 = vector.extract_strided_slice %88 {offsets = [0, 1], sizes = [64, 1023], strides = [1, 1]} : vector<64x1024xf32> to vector<64x1023xf32>
    %97 = tpu.concatenate %96, %89 in 1 : vector<64x1023xf32>, vector<64x1xf32> -> vector<64x1024xf32>
    %cst_37 = arith.constant 0.000000e+00 : f32
    %98 = vector.shape_cast %20 : vector<1x1024xi1> to vector<1x1024xi1>
    %99 = vector.broadcast %98 : vector<1x1024xi1> to vector<64x1024xi1>
    %100 = vector.broadcast %cst_37 : f32 to vector<64x1024xf32>
    %101 = arith.select %99, %100, %97 : vector<64x1024xi1>, vector<64x1024xf32>
    %102 = tpu.concatenate %95, %88, %101 in 0 : vector<64x1024xf32>, vector<64x1024xf32>, vector<64x1024xf32> -> vector<192x1024xf32>
    %c0_38 = arith.constant 0 : index
    %c0_39 = arith.constant 0 : index
    %103 = vector.load %arg9[%c0_38, %c0_39] : memref<1x192xf32, #tpu.memory_space<vmem>>, vector<1x192xf32>
    %cst_40 = arith.constant dense<0.000000e+00> : vector<1x1024xf32>
    %104 = tpu.matmul %103, %102, %cst_40 {dimension_numbers = #tpu.dot_dimension_numbers<[1], [0], [0], [1], [0, 0, 1, 1], [], []>} : vector<1x192xf32>, vector<192x1024xf32>, vector<1x1024xf32> -> vector<1x1024xf32>
    %c0_41 = arith.constant 0 : index
    %c0_42 = arith.constant 0 : index
    %105 = vector.load %arg10[%c0_41, %c0_42] : memref<1x1xf32, #tpu.memory_space<vmem>>, vector<1x1xf32>
    %106 = vector.broadcast %105 : vector<1x1xf32> to vector<1x1024xf32>
    %107 = arith.addf %104, %106 : vector<1x1024xf32>
    %108 = math.tanh %107 : vector<1x1024xf32>
    %c0_43 = arith.constant 0 : index
    %c0_44 = arith.constant 0 : index
    %c0_45 = arith.constant 0 : index
    %109 = vector.load %arg11[%c0_43, %c0_44, %c0_45] : memref<1x1x1024xf32, #tpu.memory_space<vmem>>, vector<1x1x1024xf32>
    %110 = vector.shape_cast %109 : vector<1x1x1024xf32> to vector<1x1024xf32>
    %111 = vector.shape_cast %108 : vector<1x1024xf32> to vector<1x1x1024xf32>
    tpu.vector_store %arg11[%c0_43, %c0_44, %c0_45], %111 {strides = array<i32>} : memref<1x1x1024xf32, #tpu.memory_space<vmem>>, vector<1x1x1024xf32>,
    return
  }
  func.func @transform_0(%arg0: i32) -> (i32, i32, i32) {
    %c0_i32 = arith.constant 0 : i32
    %c0_i32_0 = arith.constant 0 : i32
    %c0_i32_1 = arith.constant 0 : i32
    return %arg0, %c0_i32, %c0_i32_0 : i32, i32, i32
  }
  func.func @transform_1(%arg0: i32) -> (i32, i32, i32) {
    %c0_i32 = arith.constant 0 : i32
    %c0_i32_0 = arith.constant 0 : i32
    %c0_i32_1 = arith.constant 0 : i32
    return %arg0, %c0_i32, %c0_i32_0 : i32, i32, i32
  }
  func.func @transform_2(%arg0: i32) -> (i32, i32) {
    %c0_i32 = arith.constant 0 : i32
    %c0_i32_0 = arith.constant 0 : i32
    %c0_i32_1 = arith.constant 0 : i32
    return %c0_i32, %c0_i32_0 : i32, i32
  }
  func.func @transform_3(%arg0: i32) -> (i32, i32) {
    %c0_i32 = arith.constant 0 : i32
    %c0_i32_0 = arith.constant 0 : i32
    %c0_i32_1 = arith.constant 0 : i32
    return %c0_i32, %c0_i32_0 : i32, i32
  }
  func.func @transform_4(%arg0: i32) -> (i32, i32) {
    %c0_i32 = arith.constant 0 : i32
    %c0_i32_0 = arith.constant 0 : i32
    %c0_i32_1 = arith.constant 0 : i32
    return %c0_i32, %c0_i32_0 : i32, i32
  }
  func.func @transform_5(%arg0: i32) -> (i32, i32) {
    %c0_i32 = arith.constant 0 : i32
    %c0_i32_0 = arith.constant 0 : i32
    %c0_i32_1 = arith.constant 0 : i32
    return %c0_i32, %c0_i32_0 : i32, i32
  }
  func.func @transform_6(%arg0: i32) -> (i32, i32) {
    %c0_i32 = arith.constant 0 : i32
    %c0_i32_0 = arith.constant 0 : i32
    %c0_i32_1 = arith.constant 0 : i32
    return %c0_i32, %c0_i32_0 : i32, i32
  }
  func.func @transform_7(%arg0: i32) -> (i32, i32) {
    %c0_i32 = arith.constant 0 : i32
    %c0_i32_0 = arith.constant 0 : i32
    %c0_i32_1 = arith.constant 0 : i32
    return %c0_i32, %c0_i32_0 : i32, i32
  }
  func.func @transform_8(%arg0: i32) -> (i32, i32) {
    %c0_i32 = arith.constant 0 : i32
    %c0_i32_0 = arith.constant 0 : i32
    %c0_i32_1 = arith.constant 0 : i32
    return %c0_i32, %c0_i32_0 : i32, i32
  }
  func.func @transform_9(%arg0: i32) -> (i32, i32) {
    %c0_i32 = arith.constant 0 : i32
    %c0_i32_0 = arith.constant 0 : i32
    %c0_i32_1 = arith.constant 0 : i32
    return %c0_i32, %c0_i32_0 : i32, i32
  }
  func.func @transform_10(%arg0: i32) -> (i32, i32, i32) {
    %c0_i32 = arith.constant 0 : i32
    %c0_i32_0 = arith.constant 0 : i32
    %c0_i32_1 = arith.constant 0 : i32
    return %arg0, %c0_i32, %c0_i32_0 : i32, i32, i32
  }
}

</mosaic_0001>

<bundles_post_ra>
// kernel: tpu_custom_call.1
= control target key start
LH: loop header
LB: loop body
LE: loop exit
PB: predicated region body
PF: predicated region fallthrough
CT: control target
= control target key end

     0   :  { %s9535_s0 = inlined_call_operand.vmem [shape: f32[2,1,1024], index: 0, kind: input, shape index: {}]   ;;  %s9536_s1 = inlined_call_operand.vmem [shape: f32[2,1,1024], index: 1, kind: input, shape index: {}]   ;;  %s9537_s2 = inlined_call_operand.vmem [shape: f32[64,6], index: 2, kind: input, shape index: {}]   ;;  %s9538_s3 = inlined_call_operand.vmem [shape: f32[64,1], index: 3, kind: input, shape index: {}]   ;;  %s9539_s4 = inlined_call_operand.vmem [shape: f32[32,192], index: 4, kind: input, shape index: {}]   ;;  %s9540_s5 = inlined_call_operand.vmem [shape: f32[32,1], index: 5, kind: input, shape index: {}]   ;;  %s9541_s6 = inlined_call_operand.vmem [shape: f32[64,96], index: 6, kind: input, shape index: {}]   ;;  %s9542_s7 = inlined_call_operand.vmem [shape: f32[64,1], index: 7, kind: input, shape index: {}]   ;;  %s9543_s8 = inlined_call_operand.vmem [shape: f32[1,192], index: 8, kind: input, shape index: {}]   ;;  %s9544_s9 = inlined_call_operand.<no memory space> [shape: f32[1,1], index: 9, kind: input, shape index: {}]   ;;  %s9545_s10 = inlined_call_operand.hbm [shape: f32[2,1,1024], index: 10, kind: output, shape index: {}]  }
   0x1   :  { %v15_v0 = vstv %s9544_s9 }
   0x2   :  { %16 = vst [vmem:[#allocation2] sm:$0x1] %v15_v0 }
   0x3   :  { %17 = vsyncpa [#allocation4], 0 }
   0x4   :  { %19 = vsyncpa [#allocation4 + $0x1], 0  ;;  %s5573_s15 = smov 0   ;;  %s5575_s16 = smov 0  }
   0x5   :  { %s5577_s17 = smov 0   ;;  %s5579_s18 = smov 0  }
   0x6 LB: > { %s5594_s9 = sadd.s32 4294967295, %s5507_s18   ;;  %s4640_s19 = sadd.s32 4294967294, %s5507_s18   ;;  %s5507_s18 = sphi %s5579_s18, %s10425_s18   ;;  %s5503_s17 = sphi %s5577_s17, %s10424_s17   ;;  %s5499_s16 = sphi %s5575_s16, %s10423_s16   ;;  %s5495_s15 = sphi %s5573_s15, %s10422_s15  }
   0x7   : > { %s5598_s20 = sadd.s32 1, %s5507_s18   ;;  %s252_s21 = sadd.s32 1, %s5503_s17 }
   0x8   : > { %s249_s22 = ssub.s32 %s5507_s18, %s5598_s20  ;;  %p262_p0 = scmp.ne.s32.totalorder %s5503_s17, %s5499_s16 }
   0x9   : > { %p250_p1 = scmp.eq.s32.totalorder %s249_s22, 0  ;;  %p263_p2 = scmp.eq.s32.totalorder %s5594_s9, 1 }
   0xa   : > { %p268_p3 = scmp.ne.s32.totalorder %s5499_s16, %s5495_s15  ;;  %p269_p4 = scmp.eq.s32.totalorder %s4640_s19, 1 }
   0xb   : > { %s5609_s23 = scalar_select %p250_p1, %s5503_s17, %s252_s21  }
   0xc   : > { %p5611_p5 = por %p263_p2, %p262_p0  ;;  %p5615_p6 = por %p269_p4, %p268_p3 }
   0xd   : > { %p4643_p7 = scmp.ge.s32.totalorder %s5507_s18, 1  ;;  %p325_p8 = scmp.lt.s32.totalorder %s5507_s18, 3 }
   0xf   : > { %p326_p9 = pnand %p4643_p7, %p325_p8 }
  0x11   : > { %329 = sbr.rel (%p326_p9) target bundleno = 1837 (0x72d), region = 60 }
  0x16   : > { %p366_p10 = scmp.lt.s32.totalorder %s5594_s9, 1  ;;  %v374_v1 = vlaneseq  ;;  %vm579_vm0 = vcmask 1040384   ;;  %s5509_s14 = smov 127   ;;  %v9559_v29 = vmov 0.0   ;;  %v5512_v38 = vmov 0   ;;  %v783_v39 = vld [vmem:[%s9538_s3 + $0x38] sm:$0xff] }
  0x17   : > { %s5510_s19 = smov 1   ;;  %938 = vmatprep.mubr.f32.mxu0 %v9559_v29  ;;  %1051 = vmatprep.mubr.f32.mxu1 %v9559_v29  ;;  %v780_v40 = vld [vmem:[%s9538_s3 + $0x20] sm:$0xff]  ;;  %v778_v41 = vld [vmem:[%s9538_s3 + $0x10] sm:$0xff]  ;;  %v781_v44 = vld [vmem:[%s9538_s3 + $0x28] sm:$0xff]  ;;  %vm9551_vm1 = vcmask 7168   ;;  %vm9552_vm2 = vcmask 1039360  }
  0x18   : > { %s367_s26 = scalar_select %p366_p10, %s5594_s9, 1  ;;  %v5624_v2 = vshrl.u32 %v374_v1, 7  ;;  %5429 = vset.pattern.permute.xlu0 %v5512_v38  ;;  %5430 = vset.pattern.permute.xlu1 %v5512_v38  ;;  %v776_v42 = vld [vmem:[%s9538_s3] sm:$0xff]  ;;  %v782_v43 = vld [vmem:[%s9538_s3 + $0x30] sm:$0xff]  ;;  %v779_v45 = vld [vmem:[%s9538_s3 + $0x18] sm:$0xff]  ;;  %v5731_v47 = vand.u32 127, %v374_v1 }
  0x19   : > { %v777_v46 = vld [vmem:[%s9538_s3 + $0x8] sm:$0xff]  ;;  %vm9549_vm6 = vcmask 1041408   ;;  %vm9548_vm8 = vcmask 1043456   ;;  %vm9550_vm9 = vcmask 1045504   ;;  %vm9554_vm13 = vcmask 48128   ;;  %v2105_v54 = vld [vmem:[%s9540_s5 + $0x18] sm:$0xff] }
  0x1a   : > { %9729 = vst [vmem:[#allocation6_spill] sm:$0xff] %v5624_v2  ;;  %s4645_s27 = sshll.u32 %s367_s26, 3  ;;  %v5627_v3 = vsub.s32 1, %v5624_v2  ;;  %v5630_v4 = vsub.s32 0, %v5624_v2  ;;  %v508_v5 = vsub.s32 2, %v5624_v2  ;;  %v512_v8 = vsub.s32 3, %v5624_v2 }
  0x1b   : > { %s369_s30 = scalar_lea.vmem %s9535_s0, %s4645_s27  ;;  %s373_s13 = scalar_lea.vmem %s9536_s1, %s4645_s27  ;;  %v516_v20 = vsub.s32 4, %v5624_v2  ;;  %v520_v24 = vsub.s32 5, %v5624_v2  ;;  %v524_v28 = vsub.s32 6, %v5624_v2  ;;  %v528_v33 = vsub.s32 7, %v5624_v2 }
  0x1c   : > { %9730 = vst [vmem:[#allocation7_spill] sm:$0xff] %v5627_v3  ;;  %9731 = vst [vmem:[#allocation8_spill] sm:$0xff] %v5630_v4  ;;  %v495_v6 = vld [vmem:[%s369_s30] sm:$0xff]  ;;  %v376_v48 = vadd.s32 128, %v5731_v47  ;;  %v377_v52 = vadd.s32 256, %v5731_v47  ;;  %v378_v56 = vadd.s32 384, %v5731_v47 }
  0x1d   : > { %v496_v7 = vld [vmem:[%s373_s13] sm:$0xff]  ;;  %v505_v9 = vrot.slane %v495_v6, %v5627_v3  ;;  %v501_v11 = vrot.slane %v495_v6, %v5630_v4  ;;  %v509_v13 = vrot.slane %v495_v6, %v508_v5  ;;  %v513_v18 = vrot.slane %v495_v6, %v512_v8  ;;  %s5384_s21 = sshll.u32 %s5594_s9, 7  ;;  %s5514_s12 = smov [#allocation3]  }
  0x1e   : > { %v546_v10 = vrot.slane %v496_v7, %v5627_v3  ;;  %v542_v12 = vrot.slane %v496_v7, %v5630_v4  ;;  %v550_v14 = vrot.slane %v496_v7, %v508_v5  ;;  %v554_v19 = vrot.slane %v496_v7, %v512_v8  ;;  %s4567_s29 = scalar_lea.hbm %s9545_s10, %s5384_s21  ;;  %s5451_s13 = sshll.u32 %s5514_s12, 4  ;;  %s5452_s13 = int_to_ptr.vmem [resolvable:$false] %s5451_s13 }
  0x1f   : > { %v517_v22 = vrot.slane %v495_v6, %v516_v20  ;;  %v558_v23 = vrot.slane %v496_v7, %v516_v20  ;;  %v521_v26 = vrot.slane %v495_v6, %v520_v24  ;;  %v562_v27 = vrot.slane %v496_v7, %v520_v24  ;;  %v5780_v24 = vld [vmem:[%s9537_s2] sm:$0xff]  ;;  %s5453_s9 = scalar_lea.vmem %s5452_s13, 256 }
  0x20   : > { %v5645_v15 = vsel %vm579_vm0, %v505_v9, %v546_v10  ;;  %v5648_v16 = vsel %vm579_vm0, %v501_v11, %v542_v12  ;;  %v5655_v17 = vsel %vm579_vm0, %v509_v13, %v550_v14  ;;  %v5663_v21 = vsel %vm579_vm0, %v513_v18, %v554_v19 }
  0x21   : > { %655 = vrot.lane.b32.xlu0 %v5645_v15, %s5509_s14  ;;  %596 = vrot.lane.b32.xlu1 %v5648_v16, %s5510_s19  ;;  %v5671_v25 = vsel %vm579_vm0, %v517_v22, %v558_v23  ;;  %v5681_v30 = vsel %vm579_vm0, %v521_v26, %v562_v27  ;;  %v525_v31 = vrot.slane %v495_v6, %v524_v28  ;;  %v394_v49 = vand.u32 127, %v376_v48 }
  0x22   : > { %v566_v32 = vrot.slane %v496_v7, %v524_v28  ;;  %v529_v35 = vrot.slane %v495_v6, %v528_v33  ;;  %v570_v36 = vrot.slane %v496_v7, %v528_v33  ;;  %v711_v53 = vrot.slane %v5645_v15, 6 }
  0x23   : > { %vm5736_vm3 = vcmp.eq.s32.totalorder %v394_v49, 127  ;;  %vm5740_vm4 = vcmp.eq.s32.totalorder %v394_v49, 0  ;;  %vm9547_vm5 = vcmp.eq.s32.totalorder %v5731_v47, 0  ;;  %vm9546_vm7 = vcmp.eq.s32.totalorder %v5731_v47, 127 }
  0x24   : > { %v5689_v34 = vsel %vm579_vm0, %v525_v31, %v566_v32  ;;  %v5696_v37 = vsel %vm579_vm0, %v529_v35, %v570_v36  ;;  %v401_v61 = vand.u32 127, %v377_v52  ;;  %v408_v6 = vand.u32 127, %v378_v56 }
  0x25   : > { %657 = vrot.lane.b32.xlu0 %v5655_v17, %s5509_s14  ;;  %598 = vrot.lane.b32.xlu1 %v5645_v15, %s5510_s19  ;;  %v710_v7 = vrot.slane %v5648_v16, 6  ;;  %v380_v14 = vadd.s32 640, %v5731_v47  ;;  %v9736_v18 = vmov 0  ;;  %v379_v26 = vadd.s32 512, %v5731_v47 }
  0x26   : > { %vm5764_vm10 = vcmp.eq.s32.totalorder %v401_v61, 127  ;;  %vm5768_vm11 = vcmp.eq.s32.totalorder %v408_v6, 127  ;;  %vm5772_vm12 = vcmp.eq.s32.totalorder %v401_v61, 0  ;;  %v712_v33 = vrot.slane %v5655_v17, 6 }
  0x27   : > { %v9737_v18 = vsel %vm5764_vm10, 4294967295, %v9736_v18  ;;  %v713_v35 = vrot.slane %v5663_v21, 6  ;;  %v422_v38 = vand.u32 127, %v380_v14  ;;  %vm5796_vm14 = vcmp.eq.s32.totalorder %v408_v6, 0 }
  0x28   : > { %9738 = vst [vmem:[#allocation9_spill] sm:$0xff] %v9737_v18 }
  0x29   : > { %653 = vrot.lane.b32.xlu0 %v5648_v16, %s5509_s14  ;;  %659 = vrot.lane.b32.xlu1 %v5663_v21, %s5509_s14  ;;  %v9739_v16 = vmov 0  ;;  %vm5813_vm15 = vcmp.eq.s32.totalorder %v422_v38, 127 }
  0x2a   : > { %v9740_v16 = vsel %vm5768_vm11, 4294967295, %v9739_v16 }
  0x2b   : > { %9741 = vst [vmem:[#allocation10_spill] sm:$0xff] %v9740_v16 }
  0x2d   : > { %661 = vrot.lane.b32.xlu0 %v5671_v25, %s5509_s14  ;;  %600 = vrot.lane.b32.xlu1 %v5655_v17, %s5510_s19  ;;  %v381_v17 = vadd.s32 768, %v5731_v47 }
  0x2f   : > { %v429_v56 = vand.u32 127, %v381_v17  ;;  %v772_v17 = vld [vmem:[%s9537_s2 + $0x20] sm:$0xff] }
  0x31   : > { %602 = vrot.lane.b32.xlu0 %v5663_v21, %s5510_s19  ;;  %663 = vrot.lane.b32.xlu1 %v5681_v30, %s5509_s14  ;;  %v382_v21 = vadd.s32 896, %v5731_v47 }
  0x35   : > { %665 = vrot.lane.b32.xlu0 %v5689_v34, %s5509_s14  ;;  %604 = vrot.lane.b32.xlu1 %v5671_v25, %s5510_s19 }
  0x39   : > { %606 = vrot.lane.b32.xlu0 %v5681_v30, %s5510_s19  ;;  %667 = vrot.lane.b32.xlu1 %v5696_v37, %s5509_s14 }
  0x3d   : > { %608 = vrot.lane.b32.xlu0 %v5689_v34, %s5510_s19  ;;  %610 = vrot.lane.b32.xlu1 %v5696_v37, %s5510_s19 }
  0x41   : > { %821 = vperm.xlu0 %5429, %v783_v39   ;;  %816 = vperm.xlu1 %5430, %v782_v43  }
  0x45   : > { %806 = vperm.xlu0 %5429, %v780_v40   ;;  %811 = vperm.xlu1 %5430, %v781_v44   ;;  %v415_v44 = vand.u32 127, %v379_v26 }
  0x47   : > { %vm5821_vm0 = vcmp.eq.s32.totalorder %v415_v44, 127 }
  0x49   : > { %796 = vperm.xlu0 %5429, %v778_v41   ;;  %801 = vperm.xlu1 %5430, %v779_v45  }
  0x4d   : > { %786 = vperm.xlu0 %5429, %v776_v42   ;;  %791 = vperm.xlu1 %5430, %v777_v46   ;;  %v5808_v46 = vld [vmem:[%s9537_s2 + $0x8] sm:$0xff] }
  0x93   : > { %v656_v50 = vpop.permute.xlu0 %655  ;;  %v597_v51 = vpop.permute.xlu1 %596 }
  0x94   : > { %v628_v62 = vsel %vm9551_vm1, 0.0, %v597_v51 }
  0x95   : > { %v645_v10 = vsel %vm9547_vm5, 0.0, %v628_v62  ;;  %vm5852_vm5 = vcmp.eq.s32.totalorder %v422_v38, 0  ;;  %v9769_v38 = vmov 0 }
  0x96   : > { %v751_v23 = vsel %vm9549_vm6, %v645_v10, %v710_v7  ;;  %v714_v7 = vrot.slane %v5671_v25, 6  ;;  %v9758_v25 = vmov 0 }
  0x97   : > { %v658_v57 = vpop.permute.xlu0 %657  ;;  %v599_v58 = vpop.permute.xlu1 %598 }
  0x98   : > { %v671_v59 = vsel %vm9552_vm2, %v656_v50, %v658_v57  ;;  %v613_v60 = vsel %vm9551_vm1, %v597_v51, %v599_v58 }
  0x99   : > { %v703_v63 = vsel %vm5736_vm3, 0.0, %v671_v59  ;;  %v646_v0 = vsel %vm5740_vm4, 0.0, %v613_v60  ;;  %v9752_v60 = vmov 0 }
  0x9a   : > { %v735_v1 = vrot.slane %v703_v63, 4  ;;  %v752_v5 = vsel %vm9549_vm6, %v646_v0, %v711_v53  ;;  %v5834_v63 = vld [vmem:[%s9537_s2 + $0x10] sm:$0xff] }
  0x9b   : > { %v654_v8 = vpop.permute.xlu0 %653  ;;  %v660_v9 = vpop.permute.xlu1 %659 }
  0x9c   : > { %v670_v11 = vsel %vm9552_vm2, %v654_v8, %v656_v50  ;;  %v761_v12 = vsel %vm9548_vm8, %v752_v5, %v735_v1  ;;  %v672_v27 = vsel %vm9552_vm2, %v658_v57, %v660_v9  ;;  %v9746_v50 = vmov 0 }
  0x9d   : > { %v702_v13 = vsel %vm9546_vm7, 0.0, %v670_v11  ;;  %4647 = vmatprep.subr.msk.mxu0 %vm9550_vm9, %v761_v12  ;;  %v704_v41 = vsel %vm5764_vm10, 0.0, %v672_v27  ;;  %v9747_v50 = vsel %vm5813_vm15, 4294967295, %v9746_v50  ;;  %v436_v57 = vand.u32 127, %v382_v21 }
  0x9e   : > { %v734_v15 = vrot.slane %v702_v13, 4  ;;  %9748 = vst [vmem:[#allocation11_spill] sm:$0xff] %v9747_v50  ;;  %v736_v52 = vrot.slane %v704_v41, 4  ;;  %vm5825_vm7 = vcmp.eq.s32.totalorder %v415_v44, 0  ;;  %v715_v8 = vrot.slane %v5681_v30, 6 }
  0x9f   : > { %v662_v19 = vpop.permute.xlu0 %661  ;;  %v601_v22 = vpop.permute.xlu1 %600  ;;  %v9753_v60 = vsel %vm5825_vm7, 4294967295, %v9752_v60  ;;  %v9755_v11 = vmov 0  ;;  %v9761_v30 = vmov 0  ;;  %v716_v12 = vrot.slane %v5689_v34, 6 }
  0xa0   : > { %v673_v28 = vsel %vm9552_vm2, %v660_v9, %v662_v19  ;;  %v614_v31 = vsel %vm9551_vm1, %v599_v58, %v601_v22  ;;  %v760_v32 = vsel %vm9548_vm8, %v751_v23, %v734_v15  ;;  %v9749_v58 = vmov 0  ;;  %9754 = vst [vmem:[#allocation13_spill] sm:$0xff] %v9753_v60 }
  0xa1   : > { %v705_v36 = vsel %vm5768_vm11, 0.0, %v673_v28  ;;  %4648 = vmatpush1.msk.msra.mxu0 %vm9550_vm9, %v760_v32  ;;  %v647_v39 = vsel %vm5772_vm12, 0.0, %v614_v31  ;;  %v9750_v58 = vsel %vm5821_vm0, 4294967295, %v9749_v58  ;;  %v9756_v11 = vsel %vm5852_vm5, 4294967295, %v9755_v11 }
  0xa2   : > { %4649 = vmatmul.mubr.msk.f32.vlgmr.msra.gmra.mxu0 %vm9554_vm13, %v5780_v24  ;;  %v737_v42 = vrot.slane %v705_v36, 4  ;;  %v753_v51 = vsel %vm9549_vm6, %v647_v39, %v712_v33  ;;  %9751 = vst [vmem:[#allocation12_spill] sm:$0xff] %v9750_v58  ;;  %9757 = vst [vmem:[#allocation14_spill] sm:$0xff] %v9756_v11  ;;  %v717_v23 = vrot.slane %v5696_v37, 6  ;;  %v9766_v36 = vmov 0 }
  0xa3   : > { %v603_v43 = vpop.permute.xlu0 %602  ;;  %v664_v45 = vpop.permute.xlu1 %663  ;;  %944 = vmatprep.mubr.f32.mxu0 %v9559_v29  ;;  %v762_v6 = vsel %vm9548_vm8, %v753_v51, %v736_v52 }
  0xa4   : > { %v615_v48 = vsel %vm9551_vm1, %v601_v22, %v603_v43  ;;  %v674_v0 = vsel %vm9552_vm2, %v662_v19, %v664_v45  ;;  %v5872_v19 = vld [vmem:[%s9537_s2 + $0x18] sm:$0xff] }
  0xa5   : > { %v648_v49 = vsel %vm5796_vm14, 0.0, %v615_v48  ;;  %v706_v13 = vsel %vm5821_vm0, 0.0, %v674_v0 }
  0xa6   : > { %4650 = vmatmul.mubr.msk.f32.gmra.mxu0 %vm9554_vm13, %v5808_v46  ;;  %v754_v53 = vsel %vm9549_vm6, %v648_v49, %v713_v35  ;;  %vm5860_vm6 = vcmp.eq.s32.totalorder %v436_v57, 127  ;;  %v738_v35 = vrot.slane %v706_v13, 4 }
  0xa7   : > { %v666_v59 = vpop.permute.xlu0 %665  ;;  %v605_v61 = vpop.permute.xlu1 %604  ;;  %v763_v62 = vsel %vm9548_vm8, %v754_v53, %v737_v42  ;;  %950 = vmatprep.mubr.f32.mxu0 %v9559_v29  ;;  %vm5856_vm8 = vcmp.eq.s32.totalorder %v429_v56, 127  ;;  %v9762_v30 = vsel %vm5860_vm6, 4294967295, %v9761_v30 }
  0xa8   : > { %v675_v1 = vsel %vm9552_vm2, %v664_v45, %v666_v59  ;;  %v616_v5 = vsel %vm9551_vm1, %v603_v43, %v605_v61  ;;  %4657 = vmatprep.subr.msk.mxu1 %vm9550_vm9, %v763_v62  ;;  %v9759_v25 = vsel %vm5856_vm8, 4294967295, %v9758_v25  ;;  %9763 = vst [vmem:[#allocation16_spill] sm:$0xff] %v9762_v30  ;;  %v775_v62 = vld [vmem:[%s9537_s2 + $0x38] sm:$0xff] }
  0xa9   : > { %v707_v9 = vsel %vm5813_vm15, 0.0, %v675_v1  ;;  %4658 = vmatpush1.msk.msra.mxu1 %vm9550_vm9, %v762_v6  ;;  %v649_v10 = vsel %vm5825_vm7, 0.0, %v616_v5  ;;  %9760 = vst [vmem:[#allocation15_spill] sm:$0xff] %v9759_v25  ;;  %vm9764_vm9 = vcmask 1041408   ;;  %vm9778_vm15 = vcmask 48128  }
  0xaa   : > { %4651 = vmatmul.mubr.msk.f32.gmra.mxu0 %vm9554_vm13, %v5834_v63  ;;  %4659 = vmatmul.mubr.msk.f32.vlgmr.msra.gmra.mxu1 %vm9554_vm13, %v5780_v24  ;;  %v739_v14 = vrot.slane %v707_v9, 4  ;;  %v755_v28 = vsel %vm9764_vm9, %v649_v10, %v714_v7  ;;  %vm9779_vm7 = vmmov %vm9778_vm15 }
  0xab   : > { %v607_v15 = vpop.permute.xlu0 %606  ;;  %956 = vmatprep.mubr.f32.mxu0 %v9559_v29  ;;  %1057 = vmatprep.mubr.f32.mxu1 %v9559_v29  ;;  %v668_v22 = vpop.permute.xlu1 %667 }
  0xac   : > { %v617_v26 = vsel %vm9551_vm1, %v605_v61, %v607_v15  ;;  %v676_v34 = vsel %vm9552_vm2, %v666_v59, %v668_v22  ;;  %v685_v27 = vsel %vm9552_vm2, %v668_v22, 0.0  ;;  %vm9765_vm1 = vmmov %vm9764_vm9  ;;  %vm5890_vm2 = vcmp.eq.s32.totalorder %v429_v56, 0  ;;  %v773_v56 = vld [vmem:[%s9537_s2 + $0x28] sm:$0xff]  ;;  %v774_v61 = vld [vmem:[%s9537_s2 + $0x30] sm:$0xff] }
  0xad   : > { %v650_v31 = vsel %vm5852_vm5, 0.0, %v617_v26  ;;  %v708_v32 = vsel %vm5856_vm8, 0.0, %v676_v34  ;;  %v709_v33 = vsel %vm5860_vm6, 0.0, %v685_v27  ;;  %v9767_v36 = vsel %vm5890_vm2, 4294967295, %v9766_v36 }
  0xae   : > { %4652 = vmatmul.mubr.msk.f32.gmra.mxu0 %vm9554_vm13, %v5872_v19  ;;  %4660 = vmatmul.mubr.msk.f32.gmra.mxu1 %vm9554_vm13, %v5808_v46  ;;  %v756_v37 = vsel %vm9765_vm1, %v650_v31, %v715_v8  ;;  %9768 = vst [vmem:[#allocation17_spill] sm:$0xff] %v9767_v36  ;;  %vm5894_vm9 = vcmp.eq.s32.totalorder %v436_v57, 0  ;;  %vm9772_vm8 = vcmask 1043456   ;;  %v740_v21 = vrot.slane %v708_v32, 4 }
  0xaf   : > { %v9770_v38 = vsel %vm5894_vm9, 4294967295, %v9769_v38  ;;  %v765_v39 = vsel %vm9772_vm8, %v756_v37, %v739_v14  ;;  %962 = vmatprep.mubr.f32.mxu0 %v9559_v29  ;;  %1063 = vmatprep.mubr.f32.mxu1 %v9559_v29  ;;  %v741_v41 = vrot.slane %v709_v33, 4  ;;  %v609_v42 = vpop.permute.xlu0 %608  ;;  %v611_v43 = vpop.permute.xlu1 %610  ;;  %vm9773_vm1 = vcmask 1045504   ;;  %vm9774_vm13 = vmmov %vm9772_vm8 }
  0xb0   : > { %9771 = vst [vmem:[#allocation18_spill] sm:$0xff] %v9770_v38  ;;  %4667 = vmatprep.subr.msk.mxu0 %vm9773_vm1, %v765_v39  ;;  %v764_v44 = vsel %vm9774_vm13, %v755_v28, %v738_v35  ;;  %vm9775_vm6 = vcmask 7168   ;;  %vm9777_vm8 = vmmov %vm9773_vm1  ;;  %vm9780_vm1 = vcmask 1041408  }
  0xb1   : > { %v618_v45 = vsel %vm9775_vm6, %v607_v15, %v609_v42  ;;  %vm9776_vm0 = vmmov %vm9775_vm6  ;;  %4668 = vmatpush1.msk.msra.mxu0 %vm9777_vm8, %v764_v44  ;;  %vm9782_vm6 = vcmask 1043456  }
  0xb2   : > { %v619_v48 = vsel %vm9776_vm0, %v609_v42, %v611_v43  ;;  %v651_v49 = vsel %vm5890_vm2, 0.0, %v618_v45  ;;  %4653 = vmatmul.mubr.msk.f32.gmra.mxu0 %vm9778_vm15, %v772_v17  ;;  %4661 = vmatmul.mubr.msk.f32.gmra.mxu1 %vm9779_vm7, %v5834_v63  ;;  %vm9781_vm13 = vmmov %vm9780_vm1 }
  0xb3   : > { %v652_v51 = vsel %vm5894_vm9, 0.0, %v619_v48  ;;  %v757_v52 = vsel %vm9780_vm1, %v651_v49, %v716_v12  ;;  %968 = vmatprep.mubr.f32.mxu0 %v9559_v29  ;;  %1069 = vmatprep.mubr.f32.mxu1 %v9559_v29  ;;  %vm9783_vm0 = vmmov %vm9782_vm6 }
  0xb4   : > { %v758_v53 = vsel %vm9781_vm13, %v652_v51, %v717_v23  ;;  %v766_v59 = vsel %vm9783_vm0, %v757_v52, %v740_v21  ;;  %vm9784_vm15 = vmmov %vm9777_vm8 }
  0xb5   : > { %v767_v57 = vsel %vm9782_vm6, %v758_v53, %v741_v41  ;;  %vm9785_vm1 = vmmov %vm9779_vm7 }
  0xb6   : > { %4677 = vmatprep.subr.msk.mxu1 %vm9784_vm15, %v767_v57  ;;  %4654 = vmatmul.mubr.msk.f32.gmra.mxu0 %vm9779_vm7, %v773_v56  ;;  %vm9786_vm13 = vmmov %vm9785_vm1 }
  0xb7   : > { %4678 = vmatpush1.msk.msra.mxu1 %vm9777_vm8, %v766_v59  ;;  %974 = vmatprep.mubr.f32.mxu0 %v9559_v29  ;;  %vm9787_vm6 = vmmov %vm9785_vm1 }
  0xb8   : > { %4662 = vmatmul.mubr.msk.f32.gmra.mxu1 %vm9785_vm1, %v5872_v19  ;;  %vm9788_vm0 = vmmov %vm9785_vm1 }
  0xb9   : > { %1075 = vmatprep.mubr.f32.mxu1 %v9559_v29  ;;  %vm9789_vm15 = vmmov %vm9788_vm0 }
  0xba   : > { %4655 = vmatmul.mubr.msk.f32.gmra.mxu0 %vm9786_vm13, %v774_v61  ;;  %vm9790_vm8 = vmmov %vm9788_vm0 }
  0xbb   : > { %980 = vmatprep.mubr.f32.mxu0 %v9559_v29  ;;  %vm9791_vm7 = vmmov %vm9788_vm0 }
  0xbc   : > { %4663 = vmatmul.mubr.msk.f32.gmra.mxu1 %vm9787_vm6, %v772_v17  ;;  %vm9792_vm1 = vmmov %vm9788_vm0  ;;  %v5994_v0 = vpop.permute.xlu1 %816 }
  0xbd   : > { %1081 = vmatprep.mubr.f32.mxu1 %v9559_v29  ;;  %vm9793_vm13 = vmmov %vm9788_vm0 }
  0xbe   : > { %4656 = vmatmul.mubr.msk.f32.gmra.mxu0 %vm9788_vm0, %v775_v62  ;;  %vm9794_vm6 = vmmov %vm9788_vm0 }
  0xbf   : > { %1164 = vmatprep.mubr.f32.mxu0 %v9559_v29 }
  0xc0   : > { %4664 = vmatmul.mubr.msk.f32.gmra.mxu1 %vm9789_vm15, %v773_v56  ;;  %vm9795_vm15 = vmmov %vm9788_vm0  ;;  %v5998_v6 = vpop.permute.xlu1 %811 }
  0xc1   : > { %1087 = vmatprep.mubr.f32.mxu1 %v9559_v29 }
  0xc2   : > { %4669 = vmatmul.mubr.msk.f32.vlgmr.msra.gmra.mxu0 %vm9791_vm7, %v5780_v24  ;;  %vm9797_vm7 = vmmov %vm9788_vm0 }
  0xc3   : > { %1170 = vmatprep.mubr.f32.mxu0 %v9559_v29 }
  0xc4   : > { %4665 = vmatmul.mubr.msk.f32.gmra.mxu1 %vm9790_vm8, %v774_v61  ;;  %vm9796_vm8 = vmmov %vm9788_vm0  ;;  %v6008_v14 = vpop.permute.xlu1 %801 }
  0xc5   : > { %1093 = vmatprep.mubr.f32.mxu1 %v9559_v29 }
  0xc6   : > { %4670 = vmatmul.mubr.msk.f32.gmra.mxu0 %vm9793_vm13, %v5808_v46  ;;  %vm9799_vm13 = vmmov %vm9788_vm0 }
  0xc7   : > { %1176 = vmatprep.mubr.f32.mxu0 %v9559_v29 }
  0xc8   : > { %4666 = vmatmul.mubr.msk.f32.gmra.mxu1 %vm9792_vm1, %v775_v62  ;;  %vm9798_vm1 = vmmov %vm9788_vm0  ;;  %v6020_v33 = vpop.permute.xlu1 %791 }
  0xc9   : > { %1277 = vmatprep.mubr.f32.mxu1 %v9559_v29 }
  0xca   : > { %4671 = vmatmul.mubr.msk.f32.gmra.mxu0 %vm9794_vm6, %v5834_v63  ;;  %vm9800_vm6 = vmmov %vm9788_vm0 }
  0xcb   : > { %1182 = vmatprep.mubr.f32.mxu0 %v9559_v29 }
  0xcc   : > { %4679 = vmatmul.mubr.msk.f32.vlgmr.msra.gmra.mxu1 %vm9788_vm0, %v5780_v24  ;;  %v5988_v24 = vpop.permute.xlu0 %821 }
  0xcd   : > { %1283 = vmatprep.mubr.f32.mxu1 %v9559_v29 }
  0xce   : > { %4672 = vmatmul.mubr.msk.f32.gmra.mxu0 %vm9795_vm15, %v5872_v19  ;;  %vm9801_vm15 = vmmov %vm9788_vm0 }
  0xcf   : > { %1188 = vmatprep.mubr.f32.mxu0 %v9559_v29 }
  0xd0   : > { %4680 = vmatmul.mubr.msk.f32.gmra.mxu1 %vm9796_vm8, %v5808_v46  ;;  %vm9802_vm8 = vmmov %vm9788_vm0  ;;  %v5990_v46 = vpop.permute.xlu0 %806 }
  0xd1   : > { %1289 = vmatprep.mubr.f32.mxu1 %v9559_v29 }
  0xd2   : > { %4673 = vmatmul.mubr.msk.f32.gmra.mxu0 %vm9797_vm7, %v772_v17  ;;  %vm9803_vm7 = vmmov %vm9788_vm0 }
  0xd3   : > { %1194 = vmatprep.mubr.f32.mxu0 %v9559_v29 }
  0xd4   : > { %4681 = vmatmul.mubr.msk.f32.gmra.mxu1 %vm9798_vm1, %v5834_v63  ;;  %vm9804_vm1 = vmmov %vm9788_vm0  ;;  %v5992_v63 = vpop.permute.xlu0 %796 }
  0xd5   : > { %1295 = vmatprep.mubr.f32.mxu1 %v9559_v29 }
  0xd6   : > { %4674 = vmatmul.mubr.msk.f32.gmra.mxu0 %vm9799_vm13, %v773_v56  ;;  %vm9805_vm13 = vmmov %vm9788_vm0 }
  0xd7   : > { %1200 = vmatprep.mubr.f32.mxu0 %v9559_v29 }
  0xd8   : > { %4682 = vmatmul.mubr.msk.f32.gmra.mxu1 %vm9800_vm6, %v5872_v19  ;;  %v5996_v1 = vpop.permute.xlu0 %786  ;;  %vm9638_vm6 = vcmask 523264  }
  0xd9   : > { %1301 = vmatprep.mubr.f32.mxu1 %v9559_v29 }
  0xda   : > { %4675 = vmatmul.mubr.msk.f32.gmra.mxu0 %vm9788_vm0, %v774_v61  ;;  %vm6603_vm0 = vmneg %vm5740_vm4 }
  0xdb   : > { %1206 = vmatprep.mubr.f32.mxu0 %v9559_v29 }
  0xdc   : > { %4683 = vmatmul.mubr.msk.f32.gmra.mxu1 %vm9801_vm15, %v772_v17  ;;  %vm9856_vm15 = vcmp.eq.s32.totalorder %v5731_v47, 0 }
  0xdd   : > { %1307 = vmatprep.mubr.f32.mxu1 %v9559_v29 }
  0xde   : > { %4676 = vmatmul.mubr.msk.f32.gmra.mxu0 %vm9802_vm8, %v775_v62  ;;  %vm6611_vm8 = vmneg %vm9856_vm15 }
  0xe0   : > { %4684 = vmatmul.mubr.msk.f32.gmra.mxu1 %vm9803_vm7, %v773_v56  ;;  %vm9860_vm7 = vcmask 7168  }
  0xe1   : > { %1313 = vmatprep.mubr.f32.mxu1 %v9559_v29 }
  0xe4   : > { %4685 = vmatmul.mubr.msk.f32.gmra.mxu1 %vm9804_vm1, %v774_v61  ;;  %vm9861_vm1 = vmmov %vm9860_vm7 }
  0xe5   : > { %1319 = vmatprep.mubr.f32.mxu1 %v9559_v29  ;;  %vm9862_vm4 = vmmov %vm9861_vm1 }
  0xe6   : > { %vm9864_vm15 = vmmov %vm9861_vm1 }
  0xe8   : > { %4686 = vmatmul.mubr.msk.f32.gmra.mxu1 %vm9805_vm13, %v775_v62  ;;  %vm9863_vm13 = vmmov %vm9861_vm1 }
 0x162   : > { %v940_v5 = vpop.f32.mrf.mxu0 }
 0x163   : > { %v941_v7 = vadd.f32 %v940_v5, %v5996_v1 }
 0x164   : > { %v942_v8 = vpop.f32.mrf.mxu0 }
 0x165   : > { %v6001_v9 = vmax.f32 %v941_v7, 0.0  ;;  %v943_v10 = vadd.f32 %v942_v8, %v5996_v1 }
 0x166   : > { %v946_v12 = vpop.f32.mrf.mxu0 }
 0x167   : > { %1774 = vrot.lane.b32.xlu0 %v6001_v9, %s5509_s14  ;;  %1454 = vrot.lane.b32.xlu1 %v6001_v9, %s5510_s19  ;;  %v6010_v15 = vmax.f32 %v943_v10, 0.0  ;;  %v947_v44 = vadd.f32 %v946_v12, %v6020_v33 }
 0x168   : > { %v948_v13 = vpop.f32.mrf.mxu0 }
 0x169   : > { %v6048_v53 = vmax.f32 %v947_v44, 0.0  ;;  %v949_v56 = vadd.f32 %v948_v13, %v6020_v33 }
 0x16a   : > { %v952_v19 = vpop.f32.mrf.mxu0  ;;  %v1053_v22 = vpop.f32.mrf.mxu1 }
 0x16b   : > { %v1054_v23 = vadd.f32 %v1053_v22, %v5996_v1  ;;  %1456 = vrot.lane.b32.xlu0 %v6010_v15, %s5510_s19  ;;  %v6059_v5 = vmax.f32 %v949_v56, 0.0  ;;  %v953_v7 = vadd.f32 %v952_v19, %v5992_v63 }
 0x16c   : > { %v954_v26 = vpop.f32.mrf.mxu0  ;;  %v1055_v34 = vpop.f32.mrf.mxu1 }
 0x16d   : > { %v6015_v27 = vmax.f32 %v1054_v23, 0.0  ;;  %v1056_v28 = vadd.f32 %v1055_v34, %v5996_v1  ;;  %v6067_v23 = vmax.f32 %v953_v7, 0.0  ;;  %v955_v34 = vadd.f32 %v954_v26, %v5992_v63 }
 0x16e   : > { %v6018_v31 = vpop.f32.mrf.mxu0  ;;  %v1059_v32 = vpop.f32.mrf.mxu1 }
 0x16f   : > { %1776 = vrot.lane.b32.xlu0 %v6010_v15, %s5509_s14  ;;  %1778 = vrot.lane.b32.xlu1 %v6015_v27, %s5509_s14  ;;  %v6026_v39 = vmax.f32 %v1056_v28, 0.0  ;;  %v1060_v17 = vadd.f32 %v1059_v32, %v6020_v33 }
 0x170   : > { %v960_v35 = vpop.f32.mrf.mxu0  ;;  %v1061_v37 = vpop.f32.mrf.mxu1 }
 0x171   : > { %v6038_v45 = vmax.f32 %v1060_v17, 0.0  ;;  %v1062_v32 = vadd.f32 %v1061_v37, %v6020_v33 }
 0x172   : > { %v964_v21 = vpop.f32.mrf.mxu0  ;;  %v6029_v41 = vpop.f32.mrf.mxu1 }
 0x173   : > { %1460 = vrot.lane.b32.xlu0 %v6026_v39, %s5510_s19  ;;  %1458 = vrot.lane.b32.xlu1 %v6015_v27, %s5510_s19 }
 0x174   : > { %v966_v42 = vpop.f32.mrf.mxu0  ;;  %v6035_v43 = vpop.f32.mrf.mxu1 }
 0x175   : > { %v967_v37 = vadd.f32 %v966_v42, %v5990_v46  ;;  %v959_v42 = vadd.f32 %v6018_v31, %v6008_v14  ;;  %v1068_v31 = vadd.f32 %v6035_v43, %v5992_v63 }
 0x176   : > { %v970_v48 = vpop.f32.mrf.mxu0 }
 0x177   : > { %1794 = vrot.lane.b32.xlu0 %v6038_v45, %s5509_s14  ;;  %1780 = vrot.lane.b32.xlu1 %v6026_v39, %s5509_s14  ;;  %v971_v26 = vadd.f32 %v970_v48, %v5998_v6  ;;  %v961_v48 = vadd.f32 %v960_v35, %v6008_v14  ;;  %v6107_v35 = vmax.f32 %v967_v37, 0.0 }
 0x178   : > { %v6040_v49 = vpop.f32.mrf.mxu1  ;;  %v972_v51 = vpop.f32.mrf.mxu0 }
 0x179   : > { %v973_v56 = vadd.f32 %v972_v51, %v5998_v6  ;;  %v6088_v51 = vmax.f32 %v1062_v32, 0.0 }
 0x17a   : > { %v6046_v52 = vpop.f32.mrf.mxu1  ;;  %v976_v57 = vpop.f32.mrf.mxu0 }
 0x17b   : > { %1474 = vrot.lane.b32.xlu0 %v6038_v45, %s5510_s19  ;;  %1470 = vrot.lane.b32.xlu1 %v6048_v53, %s5510_s19  ;;  %v977_v17 = vadd.f32 %v976_v57, %v5994_v0 }
 0x17c   : > { %v6051_v59 = vpop.f32.mrf.mxu1  ;;  %v978_v61 = vpop.f32.mrf.mxu0 }
 0x17d   : > { %v979_v28 = vadd.f32 %v978_v61, %v5994_v0 }
 0x17e   : > { %v6057_v62 = vpop.f32.mrf.mxu1  ;;  %v982_v8 = vpop.f32.mrf.mxu0 }
 0x17f   : > { %1472 = vrot.lane.b32.xlu0 %v6059_v5, %s5510_s19  ;;  %1790 = vrot.lane.b32.xlu1 %v6048_v53, %s5509_s14  ;;  %v983_v12 = vadd.f32 %v982_v8, %v5988_v24  ;;  %v1343_v8 = vmax.f32 %v955_v34, 0.0  ;;  %v6085_v57 = vmax.f32 %v979_v28, 0.0  ;;  %v6101_v34 = vmax.f32 %v971_v26, 0.0 }
 0x180   : > { %v1083_v10 = vpop.f32.mrf.mxu1  ;;  %v984_v13 = vpop.f32.mrf.mxu0 }
 0x181   : > { %v985_v19 = vadd.f32 %v984_v13, %v5988_v24  ;;  %v6082_v61 = vmax.f32 %v983_v12, 0.0  ;;  %v965_v13 = vadd.f32 %v964_v21, %v5990_v46  ;;  %v6095_v12 = vmax.f32 %v973_v56, 0.0 }
 0x182   : > { %v1085_v22 = vpop.f32.mrf.mxu1  ;;  %v1084_v43 = vadd.f32 %v1083_v10, %v5998_v6  ;;  %v1078_v10 = vadd.f32 %v6051_v59, %v5990_v46 }
 0x183   : > { %v6075_v29 = vmax.f32 %v985_v19, 0.0  ;;  %1806 = vrot.lane.b32.xlu0 %v6067_v23, %s5509_s14  ;;  %1792 = vrot.lane.b32.xlu1 %v6059_v5, %s5509_s14  ;;  %v6091_v19 = vmax.f32 %v977_v17, 0.0  ;;  %v6112_v56 = vmax.f32 %v965_v13, 0.0  ;;  %v1086_v37 = vadd.f32 %v1085_v22, %v5998_v6 }
 0x184   : > { %v1089_v44 = vpop.f32.mrf.mxu1  ;;  %v1066_v22 = vadd.f32 %v6029_v41, %v5992_v63  ;;  %v1074_v41 = vadd.f32 %v6046_v52, %v6008_v14 }
 0x185   : > { %2139 = vmatprep.subr.mxu0 %v6075_v29  ;;  %v1090_v26 = vadd.f32 %v1089_v44, %v5994_v0  ;;  %v1345_v44 = vmax.f32 %v1068_v31, 0.0 }
 0x186   : > { %v1091_v7 = vpop.f32.mrf.mxu1  ;;  %2140 = vmatpush1.msra.mxu0 %v6082_v61  ;;  %v1344_v59 = vmax.f32 %v1066_v22, 0.0  ;;  %v1353_v52 = vmax.f32 %v1074_v41, 0.0 }
 0x187   : > { %2141 = vmatprep.subr.mxu0 %v6085_v57  ;;  %1488 = vrot.lane.b32.xlu0 %v1343_v8, %s5510_s19  ;;  %v1092_v32 = vadd.f32 %v1091_v7, %v5994_v0  ;;  %v1350_v7 = vmax.f32 %v959_v42, 0.0  ;;  %v1072_v42 = vadd.f32 %v6040_v49, %v6008_v14 }
 0x188   : > { %v1095_v2 = vpop.f32.mrf.mxu1  ;;  %1476 = vrot.lane.b32.xlu1 %v6088_v51, %s5510_s19  ;;  %2142 = vmatpush1.msra.mxu0 %v6091_v19 }
 0x189   : > { %v1096_v21 = vadd.f32 %v1095_v2, %v5988_v24  ;;  %2143 = vmatprep.subr.mxu0 %v6095_v12  ;;  %v1351_v2 = vmax.f32 %v961_v48, 0.0  ;;  %v6129_v13 = vmax.f32 %v1092_v32, 0.0  ;;  %v1080_v48 = vadd.f32 %v6057_v62, %v5990_v46 }
 0x18a   : > { %v1097_v28 = vpop.f32.mrf.mxu1  ;;  %2144 = vmatpush1.msra.mxu0 %v6101_v34  ;;  %v6144_v32 = vmax.f32 %v1086_v37, 0.0  ;;  %v1368_v62 = vmax.f32 %v1084_v43, 0.0 }
 0x18b   : > { %v1098_v17 = vadd.f32 %v1097_v28, %v5988_v24  ;;  %2145 = vmatprep.subr.mxu0 %v6107_v35  ;;  %1808 = vrot.lane.b32.xlu0 %v1343_v8, %s5509_s14  ;;  %v6123_v28 = vmax.f32 %v1096_v21, 0.0  ;;  %v6139_v21 = vmax.f32 %v1090_v26, 0.0  ;;  %v1361_v49 = vmax.f32 %v1080_v48, 0.0 }
 0x18c   : > { %1796 = vrot.lane.b32.xlu1 %v6088_v51, %s5509_s14  ;;  %2146 = vmatpush1.msra.mxu0 %v6112_v56 }
 0x18d   : > { %v6118_v4 = vmax.f32 %v1098_v17, 0.0  ;;  %2147 = vmatprep.subr.mxu0 %v1351_v2  ;;  %v1360_v17 = vmax.f32 %v1078_v10, 0.0 }
 0x18e   : > { %2148 = vmatpush1.msra.mxu0 %v1350_v7 }
 0x18f   : > { %2228 = vmatprep.subr.mxu1 %v6118_v4  ;;  %2149 = vmatprep.subr.mxu0 %v1343_v8  ;;  %v1352_v8 = vmax.f32 %v1072_v42, 0.0 }
 0x190   : > { %2229 = vmatpush1.msra.mxu1 %v6123_v28  ;;  %1492 = vrot.lane.b32.xlu0 %v1345_v44, %s5510_s19 }
 0x191   : > { %2230 = vmatprep.subr.mxu1 %v6129_v13  ;;  %1486 = vrot.lane.b32.xlu1 %v6067_v23, %s5510_s19 }
 0x192   : > { %2150 = vmatpush1.msra.mxu0 %v6067_v23  ;;  %2231 = vmatpush1.msra.mxu1 %v6139_v21 }
 0x193   : > { %2151 = vmatprep.subr.mxu0 %v6059_v5  ;;  %2232 = vmatprep.subr.mxu1 %v6144_v32 }
 0x194   : > { %2152 = vmatpush1.msra.mxu0 %v6048_v53  ;;  %2233 = vmatpush1.msra.mxu1 %v1368_v62 }
 0x195   : > { %2153 = vmatprep.subr.mxu0 %v6010_v15  ;;  %2234 = vmatprep.subr.mxu1 %v1361_v49 }
 0x196   : > { %1826 = vrot.lane.b32.xlu0 %v1352_v8, %s5509_s14  ;;  %1810 = vrot.lane.b32.xlu1 %v1344_v59, %s5509_s14 }
 0x197   : > { %2154 = vmatpush1.msra.mxu0 %v6001_v9  ;;  %2235 = vmatpush1.msra.mxu1 %v1360_v17  ;;  %v1166_v9 = vpop.f32.mrf.mxu0 }
 0x198   : > { %2236 = vmatprep.subr.mxu1 %v1353_v52  ;;  %v1167_v15 = vadd.f32 %v1166_v9, %v5996_v1 }
 0x199   : > { %2237 = vmatpush1.msra.mxu1 %v1352_v8 }
 0x19a   : > { %2238 = vmatprep.subr.mxu1 %v1345_v44  ;;  %1506 = vrot.lane.b32.xlu0 %v1352_v8, %s5510_s19 }
 0x19b   : > { %1490 = vrot.lane.b32.xlu1 %v1344_v59, %s5510_s19  ;;  %2239 = vmatpush1.msra.mxu1 %v1344_v59 }
 0x19c   : > { %2240 = vmatprep.subr.mxu1 %v6088_v51 }
 0x19d   : > { %2241 = vmatpush1.msra.mxu1 %v6038_v45  ;;  %v6216_v45 = vmax.f32 %v1167_v15, 0.0 }
 0x19e   : > { %2242 = vmatprep.subr.mxu1 %v6026_v39  ;;  %1504 = vrot.lane.b32.xlu0 %v1351_v2, %s5510_s19  ;;  %v6210_v39 = vpop.f32.mrf.mxu1 }
 0x19f   : > { %1812 = vrot.lane.b32.xlu1 %v1345_v44, %s5509_s14  ;;  %2243 = vmatpush1.msra.mxu1 %v6015_v27  ;;  %v1168_v27 = vpop.f32.mrf.mxu0  ;;  %9806 = vst [vmem:[#allocation19_spill] sm:$0xff] %v6216_v45 }
 0x1a0   : > { %v1169_v53 = vadd.f32 %v1168_v27, %v5996_v1  ;;  %v6219_v23 = vpop.f32.mrf.mxu1 }
 0x1a1   : > { %v1172_v5 = vpop.f32.mrf.mxu0 }
 0x1a2   : > { %1838 = vrot.lane.b32.xlu0 %v6112_v56, %s5509_s14  ;;  %v6227_v51 = vmax.f32 %v1169_v53, 0.0 }
 0x1a3   : > { %1502 = vrot.lane.b32.xlu1 %v1350_v7, %s5510_s19 }
 0x1a6   : > { %1520 = vrot.lane.b32.xlu0 %v6107_v35, %s5510_s19 }
 0x1a7   : > { %1822 = vrot.lane.b32.xlu1 %v1350_v7, %s5509_s14 }
 0x1aa   : > { %1840 = vrot.lane.b32.xlu0 %v6107_v35, %s5509_s14  ;;  %v6230_v35 = vpop.f32.mrf.mxu1 }
 0x1ab   : > { %1824 = vrot.lane.b32.xlu1 %v1351_v2, %s5509_s14 }
 0x1ac   : > { %v6243_v7 = vpop.f32.mrf.mxu1 }
 0x1ae   : > { %1524 = vrot.lane.b32.xlu0 %v1361_v49, %s5510_s19  ;;  %v6256_v22 = vpop.f32.mrf.mxu1 }
 0x1af   : > { %1508 = vrot.lane.b32.xlu1 %v1353_v52, %s5510_s19 }
 0x1b2   : > { %1858 = vrot.lane.b32.xlu0 %v1368_v62, %s5509_s14 }
 0x1b3   : > { %1828 = vrot.lane.b32.xlu1 %v1353_v52, %s5509_s14 }
 0x1b6   : > { %1538 = vrot.lane.b32.xlu0 %v1368_v62, %s5510_s19  ;;  %v6269_v62 = vpop.f32.mrf.mxu1 }
 0x1b7   : > { %1518 = vrot.lane.b32.xlu1 %v6112_v56, %s5510_s19 }
 0x1b8   : > { %v6282_v52 = vpop.f32.mrf.mxu1 }
 0x1ba   : > { %1536 = vrot.lane.b32.xlu0 %v6095_v12, %s5510_s19 }
 0x1bb   : > { %1842 = vrot.lane.b32.xlu1 %v1360_v17, %s5509_s14 }
 0x1be   : > { %1870 = vrot.lane.b32.xlu0 %v6091_v19, %s5509_s14 }
 0x1bf   : > { %1522 = vrot.lane.b32.xlu1 %v1360_v17, %s5510_s19 }
 0x1c2   : > { %1552 = vrot.lane.b32.xlu0 %v6085_v57, %s5510_s19 }
 0x1c3   : > { %1844 = vrot.lane.b32.xlu1 %v1361_v49, %s5509_s14 }
 0x1c6   : > { %1872 = vrot.lane.b32.xlu0 %v6085_v57, %s5509_s14 }
 0x1c7   : > { %1534 = vrot.lane.b32.xlu1 %v6101_v34, %s5510_s19 }
 0x1ca   : > { %1556 = vrot.lane.b32.xlu0 %v6129_v13, %s5510_s19 }
 0x1cb   : > { %1854 = vrot.lane.b32.xlu1 %v6101_v34, %s5509_s14  ;;  %v1174_v34 = vpop.f32.mrf.mxu0 }
 0x1cd   : > { %v1178_v26 = vpop.f32.mrf.mxu0 }
 0x1ce   : > { %1890 = vrot.lane.b32.xlu0 %v6123_v28, %s5509_s14  ;;  %v1179_v44 = vadd.f32 %v1178_v26, %v5992_v63 }
 0x1cf   : > { %1856 = vrot.lane.b32.xlu1 %v6095_v12, %s5509_s14  ;;  %v1173_v12 = vadd.f32 %v1172_v5, %v6020_v33  ;;  %v1180_v48 = vpop.f32.mrf.mxu0 }
 0x1d1   : > { %v6240_v2 = vmax.f32 %v1173_v12, 0.0  ;;  %v1184_v41 = vpop.f32.mrf.mxu0  ;;  %v6295_v12 = vpop.f32.mrf.mxu1 }
 0x1d2   : > { %1570 = vrot.lane.b32.xlu0 %v6123_v28, %s5510_s19 }
 0x1d3   : > { %1540 = vrot.lane.b32.xlu1 %v6144_v32, %s5510_s19  ;;  %9808 = vst [vmem:[#allocation21_spill] sm:$0xff] %v6240_v2  ;;  %v1186_v17 = vpop.f32.mrf.mxu0 }
 0x1d4   : > { %v1187_v53 = vadd.f32 %v1186_v17, %v6008_v14 }
 0x1d5   : > { %v1190_v5 = vpop.f32.mrf.mxu0 }
 0x1d6   : > { %1568 = vrot.lane.b32.xlu0 %v6075_v29, %s5510_s19  ;;  %v6305_v26 = vmax.f32 %v1187_v53, 0.0 }
 0x1d7   : > { %1860 = vrot.lane.b32.xlu1 %v6144_v32, %s5509_s14  ;;  %v6266_v32 = vmax.f32 %v1179_v44, 0.0  ;;  %v1303_v44 = vpop.f32.mrf.mxu1 }
 0x1d8   : > { %9819 = vst [vmem:[#allocation32_spill] sm:$0xff] %v6305_v26 }
 0x1d9   : > { %v6223_v57 = vpop.permute.xlu0 %1774  ;;  %v6232_v56 = vpop.permute.xlu1 %1454  ;;  %9813 = vst [vmem:[#allocation26_spill] sm:$0xff] %v6266_v32 }
 0x1da   : > { %1782 = vrot.lane.b32.xlu0 %v6216_v45, %s5509_s14  ;;  %9807 = vst [vmem:[#allocation20_spill] sm:$0xff] %v6223_v57 }
 0x1db   : > { %1550 = vrot.lane.b32.xlu1 %v6091_v19, %s5510_s19  ;;  %v1175_v19 = vadd.f32 %v1174_v34, %v6020_v33 }
 0x1dd   : > { %v6236_v31 = vpop.permute.xlu0 %1456  ;;  %v6253_v43 = vmax.f32 %v1175_v19, 0.0 }
 0x1de   : > { %1464 = vrot.lane.b32.xlu0 %v6227_v51, %s5510_s19 }
 0x1df   : > { %1874 = vrot.lane.b32.xlu1 %v6139_v21, %s5509_s14 }
 0x1e1   : > { %v6247_v37 = vpop.permute.xlu0 %1776  ;;  %v6249_v28 = vpop.permute.xlu1 %1778 }
 0x1e2   : > { %1798 = vrot.lane.b32.xlu0 %v6240_v2, %s5509_s14  ;;  %9809 = vst [vmem:[#allocation22_spill] sm:$0xff] %v6247_v37  ;;  %9810 = vst [vmem:[#allocation23_spill] sm:$0xff] %v6249_v28 }
 0x1e3   : > { %1554 = vrot.lane.b32.xlu1 %v6139_v21, %s5510_s19  ;;  %v1181_v21 = vadd.f32 %v1180_v48, %v5992_v63 }
 0x1e5   : > { %v6260_v42 = vpop.permute.xlu0 %1460  ;;  %v6262_v10 = vpop.permute.xlu1 %1458  ;;  %v6279_v8 = vmax.f32 %v1181_v21, 0.0 }
 0x1e6   : > { %1480 = vrot.lane.b32.xlu0 %v6253_v43, %s5510_s19  ;;  %9811 = vst [vmem:[#allocation24_spill] sm:$0xff] %v6260_v42  ;;  %9812 = vst [vmem:[#allocation25_spill] sm:$0xff] %v6262_v10 }
 0x1e7   : > { %1876 = vrot.lane.b32.xlu1 %v6129_v13, %s5509_s14  ;;  %9816 = vst [vmem:[#allocation29_spill] sm:$0xff] %v6279_v8  ;;  %v1185_v13 = vadd.f32 %v1184_v41, %v6008_v14 }
 0x1e9   : > { %v6273_v49 = vpop.permute.xlu0 %1794  ;;  %v6275_v59 = vpop.permute.xlu1 %1780  ;;  %v6292_v27 = vmax.f32 %v1185_v13, 0.0  ;;  %v1304_v13 = vadd.f32 %v1303_v44, %v5990_v46 }
 0x1ea   : > { %1814 = vrot.lane.b32.xlu0 %v6266_v32, %s5509_s14  ;;  %9814 = vst [vmem:[#allocation27_spill] sm:$0xff] %v6273_v49  ;;  %9815 = vst [vmem:[#allocation28_spill] sm:$0xff] %v6275_v59 }
 0x1eb   : > { %1566 = vrot.lane.b32.xlu1 %v6082_v61, %s5510_s19  ;;  %9817 = vst [vmem:[#allocation30_spill] sm:$0xff] %v6292_v27  ;;  %v6328_v3 = vmax.f32 %v1304_v13, 0.0 }
 0x1ed   : > { %v6286_v9 = vpop.permute.xlu0 %1474  ;;  %v6288_v15 = vpop.permute.xlu1 %1470  ;;  %9823 = vst [vmem:[#allocation36_spill] sm:$0xff] %v6328_v3 }
 0x1ee   : > { %1496 = vrot.lane.b32.xlu0 %v6279_v8, %s5510_s19 }
 0x1ef   : > { %1886 = vrot.lane.b32.xlu1 %v6082_v61, %s5509_s14  ;;  %v1191_v61 = vadd.f32 %v1190_v5, %v5990_v46 }
 0x1f1   : > { %v6299_v34 = vpop.permute.xlu0 %1472  ;;  %v6301_v19 = vpop.permute.xlu1 %1790  ;;  %v6316_v41 = vmax.f32 %v1191_v61, 0.0 }
 0x1f2   : > { %1830 = vrot.lane.b32.xlu0 %v6292_v27, %s5509_s14  ;;  %9818 = vst [vmem:[#allocation31_spill] sm:$0xff] %v6301_v19  ;;  %v6330_v61 = vpop.f32.mrf.mxu1 }
 0x1f3   : > { %1888 = vrot.lane.b32.xlu1 %v6075_v29, %s5509_s14  ;;  %9822 = vst [vmem:[#allocation35_spill] sm:$0xff] %v6316_v41  ;;  %v1192_v29 = vpop.f32.mrf.mxu0 }
 0x1f4   : > { %v1193_v5 = vadd.f32 %v1192_v29, %v5990_v46  ;;  %v1309_v58 = vpop.f32.mrf.mxu1 }
 0x1f5   : > { %v6310_v48 = vpop.permute.xlu0 %1806  ;;  %v6312_v21 = vpop.permute.xlu1 %1792 }
 0x1f6   : > { %1512 = vrot.lane.b32.xlu0 %v6305_v26, %s5510_s19  ;;  %9820 = vst [vmem:[#allocation33_spill] sm:$0xff] %v6310_v48  ;;  %9821 = vst [vmem:[#allocation34_spill] sm:$0xff] %v6312_v21  ;;  %v1196_v25 = vpop.f32.mrf.mxu0  ;;  %v6345_v13 = vmax.f32 %v1193_v5, 0.0  ;;  %v1311_v18 = vpop.f32.mrf.mxu1 }
 0x1f7   : > { %1572 = vrot.lane.b32.xlu1 %v6118_v4, %s5510_s19  ;;  %v1197_v29 = vadd.f32 %v1196_v25, %v5998_v6  ;;  %v1310_v25 = vadd.f32 %v1309_v58, %v5998_v6 }
 0x1f8   : > { %9827 = vst [vmem:[#allocation40_spill] sm:$0xff] %v6345_v13  ;;  %v1198_v38 = vpop.f32.mrf.mxu0 }
 0x1f9   : > { %v6321_v17 = vpop.permute.xlu0 %1488  ;;  %v6360_v5 = vmax.f32 %v1197_v29, 0.0  ;;  %v1199_v60 = vadd.f32 %v1198_v38, %v5998_v6  ;;  %v6368_v11 = vmax.f32 %v1310_v25, 0.0  ;;  %v1312_v29 = vadd.f32 %v1311_v18, %v5998_v6 }
 0x1fa   : > { %1846 = vrot.lane.b32.xlu0 %v6316_v41, %s5509_s14  ;;  %v6325_v53 = vpop.permute.xlu1 %1476  ;;  %v1202_v38 = vpop.f32.mrf.mxu0 }
 0x1fb   : > { %1892 = vrot.lane.b32.xlu1 %v6118_v4, %s5509_s14  ;;  %v6343_v4 = vld [vmem:[%s9539_s4 + $0x8] sm:$0xff]  ;;  %9828 = vst [vmem:[#allocation41_spill] sm:$0xff] %v6360_v5  ;;  %9829 = vst [vmem:[#allocation42_spill] sm:$0xff] %v6368_v11  ;;  %v6378_v58 = vmax.f32 %v1199_v60, 0.0  ;;  %v1315_v60 = vpop.f32.mrf.mxu1 }
 0x1fc   : > { %9826 = vst [vmem:[#allocation39_spill] sm:$0xff] %v6343_v4  ;;  %4751 = vmatprep.mubr.msk.f32.mxu0 %vm9638_vm6, %v6343_v4  ;;  %4819 = vmatprep.mubr.msk.f32.mxu1 %vm9638_vm6, %v6343_v4  ;;  %v6390_v4 = vmax.f32 %v1312_v29, 0.0  ;;  %v1316_v6 = vadd.f32 %v1315_v60, %v5994_v0 }
 0x1fd   : > { %v6334_v44 = vpop.permute.xlu0 %1808  ;;  %9831 = vst [vmem:[#allocation44_spill] sm:$0xff] %v6378_v58 }
 0x1fe   : > { %1850 = vrot.lane.b32.xlu0 %v6328_v3, %s5509_s14  ;;  %9824 = vst [vmem:[#allocation37_spill] sm:$0xff] %v6334_v44  ;;  %v6338_v30 = vpop.permute.xlu1 %1796 }
 0x1ff   : > { %1462 = vrot.lane.b32.xlu1 %v6216_v45, %s5510_s19  ;;  %9825 = vst [vmem:[#allocation38_spill] sm:$0xff] %v6338_v30  ;;  %v1203_v45 = vadd.f32 %v1202_v38, %v5994_v0  ;;  %v1204_v38 = vpop.f32.mrf.mxu0 }
 0x201   : > { %v6400_v18 = vmax.f32 %v1203_v45, 0.0  ;;  %v1317_v45 = vpop.f32.mrf.mxu1 }
 0x202   : > { %1528 = vrot.lane.b32.xlu0 %v6345_v13, %s5510_s19  ;;  %v6356_v50 = vpop.permute.xlu0 %1492  ;;  %v1318_v37 = vadd.f32 %v1317_v45, %v5994_v0 }
 0x203   : > { %1478 = vrot.lane.b32.xlu1 %v6240_v2, %s5510_s19  ;;  %v6358_v36 = vpop.permute.xlu1 %1486  ;;  %9833 = vst [vmem:[#allocation46_spill] sm:$0xff] %v6400_v18 }
 0x204   : > { %v6434_v19 = vmax.f32 %v1318_v37, 0.0  ;;  %v1298_v37 = vadd.f32 %v6282_v52, %v6008_v14 }
 0x206   : > { %1862 = vrot.lane.b32.xlu0 %v6360_v5, %s5509_s14  ;;  %9836 = vst [vmem:[#allocation49_spill] sm:$0xff] %v6434_v19 }
 0x207   : > { %1494 = vrot.lane.b32.xlu1 %v6266_v32, %s5510_s19 }
 0x208   : > { %v6370_v59 = vpop.permute.xlu0 %1826  ;;  %v6372_v30 = vpop.permute.xlu1 %1810 }
 0x209   : > { %9830 = vst [vmem:[#allocation43_spill] sm:$0xff] %v6372_v30 }
 0x20a   : > { %1866 = vrot.lane.b32.xlu0 %v6368_v11, %s5509_s14 }
 0x20b   : > { %1510 = vrot.lane.b32.xlu1 %v6292_v27, %s5510_s19 }
 0x20c   : > { %v6381_v16 = vpop.permute.xlu0 %1506 }
 0x20d   : > { %v6383_v25 = vpop.permute.xlu1 %1490 }
 0x20e   : > { %1544 = vrot.lane.b32.xlu0 %v6378_v58, %s5510_s19 }
 0x20f   : > { %1526 = vrot.lane.b32.xlu1 %v6316_v41, %s5510_s19  ;;  %v6412_v41 = vmax.f32 %v1316_v6, 0.0 }
 0x210   : > { %v6392_v2 = vpop.permute.xlu0 %1504 }
 0x211   : > { %v6394_v32 = vpop.permute.xlu1 %1812  ;;  %9834 = vst [vmem:[#allocation47_spill] sm:$0xff] %v6412_v41 }
 0x212   : > { %9832 = vst [vmem:[#allocation45_spill] sm:$0xff] %v6394_v32  ;;  %1548 = vrot.lane.b32.xlu0 %v6390_v4, %s5510_s19  ;;  %v1205_v32 = vadd.f32 %v1204_v38, %v5994_v0  ;;  %v1208_v38 = vpop.f32.mrf.mxu0  ;;  %v1306_v0 = vadd.f32 %v6330_v61, %v5990_v46  ;;  %v1321_v46 = vpop.f32.mrf.mxu1  ;;  %v6468_v61 = vmax.f32 %v1298_v37, 0.0 }
 0x213   : > { %1530 = vrot.lane.b32.xlu1 %v6328_v3, %s5510_s19  ;;  %v1209_v28 = vadd.f32 %v1208_v38, %v5988_v24 }
 0x214   : > { %v6403_v27 = vpop.permute.xlu0 %1838  ;;  %v6422_v60 = vmax.f32 %v1205_v32, 0.0  ;;  %v6458_v21 = vmax.f32 %v1306_v0, 0.0  ;;  %9840 = vst [vmem:[#allocation53_spill] sm:$0xff] %v6468_v61  ;;  %v1210_v52 = vpop.f32.mrf.mxu0 }
 0x215   : > { %v6405_v29 = vpop.permute.xlu1 %1502  ;;  %v6446_v45 = vmax.f32 %v1209_v28, 0.0  ;;  %v1211_v49 = vadd.f32 %v1210_v52, %v5988_v24 }
 0x216   : > { %1878 = vrot.lane.b32.xlu0 %v6400_v18, %s5509_s14  ;;  %9835 = vst [vmem:[#allocation48_spill] sm:$0xff] %v6422_v60  ;;  %9839 = vst [vmem:[#allocation52_spill] sm:$0xff] %v6458_v21 }
 0x217   : > { %1848 = vrot.lane.b32.xlu1 %v6345_v13, %s5509_s14  ;;  %9837 = vst [vmem:[#allocation50_spill] sm:$0xff] %v6446_v45  ;;  %v6492_v44 = vmax.f32 %v1211_v49, 0.0 }
 0x218   : > { %v6414_v3 = vpop.permute.xlu0 %1520 }
 0x219   : > { %v6416_v57 = vpop.permute.xlu1 %1822  ;;  %9842 = vst [vmem:[#allocation55_spill] sm:$0xff] %v6492_v44 }
 0x21a   : > { %1882 = vrot.lane.b32.xlu0 %v6412_v41, %s5509_s14 }
 0x21b   : > { %1542 = vrot.lane.b32.xlu1 %v6360_v5, %s5510_s19 }
 0x21c   : > { %v6425_v13 = vpop.permute.xlu0 %1840 }
 0x21d   : > { %v6427_v6 = vpop.permute.xlu1 %1824 }
 0x21e   : > { %1560 = vrot.lane.b32.xlu0 %v6422_v60, %s5510_s19 }
 0x21f   : > { %1546 = vrot.lane.b32.xlu1 %v6368_v11, %s5510_s19 }
 0x220   : > { %v6436_v5 = vpop.permute.xlu0 %1524 }
 0x221   : > { %v6438_v32 = vpop.permute.xlu1 %1508 }
 0x222   : > { %1564 = vrot.lane.b32.xlu0 %v6434_v19, %s5510_s19 }
 0x223   : > { %1864 = vrot.lane.b32.xlu1 %v6378_v58, %s5509_s14 }
 0x224   : > { %v6448_v11 = vpop.permute.xlu0 %1858 }
 0x225   : > { %v6450_v38 = vpop.permute.xlu1 %1828 }
 0x226   : > { %9838 = vst [vmem:[#allocation51_spill] sm:$0xff] %v6450_v38  ;;  %1894 = vrot.lane.b32.xlu0 %v6446_v45, %s5509_s14  ;;  %v1322_v38 = vadd.f32 %v1321_v46, %v5988_v24  ;;  %v1300_v46 = vadd.f32 %v6295_v12, %v6008_v14  ;;  %v1294_v12 = vadd.f32 %v6269_v62, %v5992_v63 }
 0x227   : > { %1558 = vrot.lane.b32.xlu1 %v6400_v18, %s5510_s19 }
 0x228   : > { %v6460_v58 = vpop.permute.xlu0 %1538  ;;  %v6480_v48 = vmax.f32 %v1322_v38, 0.0  ;;  %v1292_v38 = vadd.f32 %v6256_v22, %v5992_v63  ;;  %v6504_v30 = vmax.f32 %v1300_v46, 0.0  ;;  %v1323_v22 = vpop.f32.mrf.mxu1  ;;  %v1286_v63 = vadd.f32 %v6230_v35, %v6020_v33 }
 0x229   : > { %v6462_v28 = vpop.permute.xlu1 %1518 }
 0x22a   : > { %1532 = vrot.lane.b32.xlu0 %v6458_v21, %s5510_s19  ;;  %9841 = vst [vmem:[#allocation54_spill] sm:$0xff] %v6480_v48  ;;  %v6514_v49 = vmax.f32 %v1292_v38, 0.0 }
 0x22b   : > { %1562 = vrot.lane.b32.xlu1 %v6412_v41, %s5510_s19 }
 0x22c   : > { %v6471_v18 = vpop.permute.xlu0 %1536  ;;  %9844 = vst [vmem:[#allocation57_spill] sm:$0xff] %v6514_v49 }
 0x22d   : > { %v6473_v0 = vpop.permute.xlu1 %1842 }
 0x22e   : > { %1834 = vrot.lane.b32.xlu0 %v6468_v61, %s5509_s14 }
 0x22f   : > { %1880 = vrot.lane.b32.xlu1 %v6422_v60, %s5509_s14 }
 0x230   : > { %v6482_v41 = vpop.permute.xlu0 %1870 }
 0x231   : > { %v6484_v37 = vpop.permute.xlu1 %1522 }
 0x232   : > { %1898 = vrot.lane.b32.xlu0 %v6480_v48, %s5509_s14 }
 0x233   : > { %1832 = vrot.lane.b32.xlu1 %v6305_v26, %s5509_s14 }
 0x234   : > { %v6494_v60 = vpop.permute.xlu0 %1552 }
 0x235   : > { %v6496_v52 = vpop.permute.xlu1 %1844 }
 0x236   : > { %9843 = vst [vmem:[#allocation56_spill] sm:$0xff] %v6496_v52  ;;  %1576 = vrot.lane.b32.xlu0 %v6492_v44, %s5510_s19  ;;  %v6526_v52 = vmax.f32 %v1294_v12, 0.0 }
 0x237   : > { %1514 = vrot.lane.b32.xlu1 %v6468_v61, %s5510_s19 }
 0x238   : > { %v6506_v26 = vpop.permute.xlu0 %1872 }
 0x239   : > { %v6508_v14 = vpop.permute.xlu1 %1534 }
 0x23a   : > { %1516 = vrot.lane.b32.xlu0 %v6504_v30, %s5510_s19 }
 0x23b   : > { %1574 = vrot.lane.b32.xlu1 %v6446_v45, %s5510_s19  ;;  %v1324_v45 = vadd.f32 %v1323_v22, %v5988_v24  ;;  %v6549_v24 = vmax.f32 %v1286_v63, 0.0  ;;  %v1288_v22 = vadd.f32 %v6243_v7, %v6020_v33  ;;  %v1282_v7 = vadd.f32 %v6219_v23, %v5996_v1 }
 0x23c   : > { %v6518_v61 = vpop.permute.xlu0 %1556 }
 0x23d   : > { %v6520_v46 = vpop.permute.xlu1 %1854  ;;  %v6539_v62 = vmax.f32 %v1324_v45, 0.0  ;;  %9845 = vst [vmem:[#allocation58_spill] sm:$0xff] %v6549_v24  ;;  %v1280_v45 = vadd.f32 %v6210_v39, %v5996_v1  ;;  %v6563_v42 = vmax.f32 %v1288_v22, 0.0  ;;  %v6583_v39 = vmax.f32 %v1282_v7, 0.0 }
 0x23e   : > { %1818 = vrot.lane.b32.xlu0 %v6514_v49, %s5509_s14 }
 0x23f   : > { %1578 = vrot.lane.b32.xlu1 %v6480_v48, %s5510_s19  ;;  %v6571_v33 = vmax.f32 %v1280_v45, 0.0  ;;  %v9852_v45 = vmov 0 }
 0x240   : > { %v6529_v38 = vpop.permute.xlu0 %1890  ;;  %v9853_v45 = vsel %vm6603_vm0, 4294967295, %v9852_v45 }
 0x241   : > { %v6531_v10 = vpop.permute.xlu1 %1856  ;;  %9848 = vst [vmem:[#allocation61_spill] sm:$0xff] %v6571_v33  ;;  %9854 = vst [vmem:[#allocation65_spill] sm:$0xff] %v9853_v45  ;;  %v9937_v45 = vmov 0 }
 0x242   : > { %1500 = vrot.lane.b32.xlu0 %v6526_v52, %s5510_s19 }
 0x243   : > { %1816 = vrot.lane.b32.xlu1 %v6279_v8, %s5509_s14 }
 0x244   : > { %v6541_v48 = vpop.permute.xlu0 %1570 }
 0x245   : > { %v6543_v12 = vpop.permute.xlu1 %1540 }
 0x246   : > { %1580 = vrot.lane.b32.xlu0 %v6539_v62, %s5510_s19 }
 0x247   : > { %1498 = vrot.lane.b32.xlu1 %v6514_v49, %s5510_s19 }
 0x248   : > { %v6553_v8 = vpop.permute.xlu0 %1568 }
 0x249   : > { %v6555_v35 = vpop.permute.xlu1 %1860 }
 0x24a   : > { %9846 = vst [vmem:[#allocation59_spill] sm:$0xff] %v6555_v35  ;;  %1802 = vrot.lane.b32.xlu0 %v6549_v24, %s5509_s14 }
 0x24b   : > { %1896 = vrot.lane.b32.xlu1 %v6492_v44, %s5509_s14 }
 0x24c   : > { %v6565_v63 = vpop.permute.xlu0 %1782 }
 0x24d   : > { %9847 = vst [vmem:[#allocation60_spill] sm:$0xff] %v6565_v63  ;;  %v1551_v49 = vpop.permute.xlu1 %1550 }
 0x24e   : > { %1484 = vrot.lane.b32.xlu0 %v6563_v42, %s5510_s19 }
 0x24f   : > { %1800 = vrot.lane.b32.xlu1 %v6253_v43, %s5509_s14 }
 0x250   : > { %v6575_v35 = vpop.permute.xlu0 %1464 }
 0x251   : > { %9849 = vst [vmem:[#allocation62_spill] sm:$0xff] %v6575_v35  ;;  %v6577_v44 = vpop.permute.xlu1 %1874  ;;  %v9857_v35 = vmov 0 }
 0x252   : > { %1786 = vrot.lane.b32.xlu0 %v6571_v33, %s5509_s14  ;;  %v9858_v35 = vsel %vm6611_vm8, 4294967295, %v9857_v35 }
 0x253   : > { %1482 = vrot.lane.b32.xlu1 %v6549_v24, %s5510_s19  ;;  %9859 = vst [vmem:[#allocation67_spill] sm:$0xff] %v9858_v35 }
 0x254   : > { %v6585_v22 = vpop.permute.xlu0 %1798 }
 0x255   : > { %9850 = vst [vmem:[#allocation63_spill] sm:$0xff] %v6585_v22  ;;  %v6587_v63 = vpop.permute.xlu1 %1554  ;;  %v1708_v22 = vsel %vm9863_vm13, 0.0, %v1551_v49  ;;  %vm9868_vm13 = vmmov %vm9861_vm1 }
 0x256   : > { %1468 = vrot.lane.b32.xlu0 %v6583_v39, %s5510_s19 }
 0x257   : > { %1784 = vrot.lane.b32.xlu1 %v6227_v51, %s5509_s14 }
 0x258   : > { %v6593_v1 = vpop.permute.xlu0 %1480 }
 0x259   : > { %9851 = vst [vmem:[#allocation64_spill] sm:$0xff] %v6593_v1  ;;  %v6595_v23 = vpop.permute.xlu1 %1876 }
 0x25a   : > { %1884 = vrot.lane.b32.xlu0 %v6434_v19, %s5509_s14  ;;  %v1624_v19 = vsel %vm9862_vm4, %v1551_v49, %v6494_v60  ;;  %v1610_v49 = vsel %vm9861_vm1, %v6462_v28, %v6414_v3  ;;  %vm9867_vm4 = vmmov %vm9861_vm1 }
 0x25b   : > { %1466 = vrot.lane.b32.xlu1 %v6571_v33, %s5510_s19 }
 0x25c   : > { %v6607_v7 = vpop.permute.xlu0 %1814 }
 0x25d   : > { %9855 = vst [vmem:[#allocation66_spill] sm:$0xff] %v6607_v7  ;;  %v1567_v1 = vpop.permute.xlu1 %1566 }
 0x25e   : > { %v1709_v24 = vsel %vm9860_vm7, 0.0, %v1567_v1  ;;  %1852 = vrot.lane.b32.xlu0 %v6458_v21, %s5509_s14  ;;  %v1631_v55 = vsel %vm9861_vm1, %v1567_v1, %v6553_v8  ;;  %vm9865_vm7 = vmmov %vm9861_vm1 }
 0x25f   : > { %1900 = vrot.lane.b32.xlu1 %v6539_v62, %s5509_s14  ;;  %4688 = vmatprep.subr.msk.mxu0 %vm6603_vm0, %v1631_v55  ;;  %v1707_v1 = vsel %vm9865_vm7, 0.0, %v6508_v14  ;;  %vm9870_vm7 = vmmov %vm9861_vm1 }
 0x260   : > { %4690 = vmatpush1.msk.msra.mxu0 %vm6611_vm8, %v1709_v24  ;;  %v6626_v33 = vpop.permute.xlu0 %1496  ;;  %v1617_v24 = vsel %vm9864_vm15, %v6508_v14, %v6471_v18  ;;  %v1603_v14 = vsel %vm9868_vm13, %v6405_v29, %v6392_v2  ;;  %vm9869_vm15 = vmmov %vm9861_vm1 }
 0x261   : > { %v1887_v21 = vpop.permute.xlu1 %1886  ;;  %4692 = vmatprep.subr.msk.mxu0 %vm6603_vm0, %v1624_v19  ;;  %vm6682_vm1 = vmneg %vm5796_vm14 }
 0x262   : > { %4694 = vmatpush1.msk.msra.mxu0 %vm6611_vm8, %v1708_v22  ;;  %1820 = vrot.lane.b32.xlu0 %v6526_v52, %s5509_s14  ;;  %v1706_v22 = vsel %vm9867_vm4, 0.0, %v6462_v28  ;;  %v2104_v28 = vld [vmem:[%s9540_s5 + $0x10] sm:$0xff]  ;;  %vm6694_vm13 = vmneg %vm5772_vm12 }
 0x263   : > { %1868 = vrot.lane.b32.xlu1 %v6390_v4, %s5509_s14  ;;  %4696 = vmatprep.subr.msk.mxu0 %vm6603_vm0, %v1617_v24  ;;  %v1705_v24 = vsel %vm9869_vm15, 0.0, %v6405_v29  ;;  %v9871_v29 = vmov 0  ;;  %vm9877_vm14 = vmmov %vm9867_vm4 }
 0x264   : > { %4698 = vmatpush1.msk.msra.mxu0 %vm6611_vm8, %v1707_v1  ;;  %v6648_v19 = vpop.permute.xlu0 %1830  ;;  %v9872_v29 = vsel %vm6682_vm1, 4294967295, %v9871_v29  ;;  %v1589_v40 = vsel %vm9877_vm14, %v6288_v15, %v6299_v34  ;;  %vm9878_vm15 = vmmov %vm9867_vm4 }
 0x265   : > { %9866 = vst [vmem:[#allocation68_spill] sm:$0xff] %v6648_v19  ;;  %v1889_v55 = vpop.permute.xlu1 %1888  ;;  %4700 = vmatprep.subr.msk.mxu0 %vm6603_vm0, %v1610_v49  ;;  %v1596_v49 = vsel %vm9870_vm7, %v6358_v36, %v6321_v17  ;;  %9873 = vst [vmem:[#allocation69_spill] sm:$0xff] %v9872_v29 }
 0x266   : > { %4702 = vmatpush1.msk.msra.mxu0 %vm6611_vm8, %v1706_v22  ;;  %1788 = vrot.lane.b32.xlu0 %v6583_v39, %s5509_s14  ;;  %v1704_v22 = vsel %vm9867_vm4, 0.0, %v6358_v36  ;;  %vm9879_vm7 = vmmov %vm9867_vm4 }
 0x267   : > { %1836 = vrot.lane.b32.xlu1 %v6504_v30, %s5509_s14  ;;  %4704 = vmatprep.subr.msk.mxu0 %vm6603_vm0, %v1603_v14  ;;  %vm9880_vm12 = vmmov %vm9867_vm4 }
 0x268   : > { %4706 = vmatpush1.msk.msra.mxu0 %vm6611_vm8, %v1705_v24  ;;  %v6675_v1 = vpop.permute.xlu0 %1512  ;;  %v9874_v24 = vmov 0  ;;  %v1632_v20 = vsel %vm9880_vm12, %v6553_v8, %v6541_v48  ;;  %vm6729_vm14 = vmneg %vm5736_vm3  ;;  %v9881_v8 = vmov 0  ;;  %vm9886_vm3 = vcmp.eq.s32.totalorder %v5731_v47, 127 }
 0x269   : > { %v6688_v14 = vpop.permute.xlu1 %1572  ;;  %4708 = vmatprep.subr.msk.mxu0 %vm6603_vm0, %v1596_v49  ;;  %v9875_v24 = vsel %vm6694_vm13, 4294967295, %v9874_v24  ;;  %v1703_v49 = vsel %vm9879_vm7, 0.0, %v6288_v15  ;;  %v1582_v15 = vsel %vm9867_vm4, %v6232_v56, %v6236_v31  ;;  %v9882_v8 = vsel %vm6729_vm14, 4294967295, %v9881_v8  ;;  %vm9885_vm7 = vmmov %vm9867_vm4 }
 0x26a   : > { %9876 = vst [vmem:[#allocation70_spill] sm:$0xff] %v9875_v24  ;;  %4710 = vmatpush1.msk.msra.mxu0 %vm6611_vm8, %v1704_v22  ;;  %2118 = vperm.xlu0 %5429, %v2104_v28   ;;  %v1633_v36 = vsel %vm9878_vm15, %v6541_v48, %v6688_v14  ;;  %v2102_v22 = vld [vmem:[%s9540_s5] sm:$0xff]  ;;  %9883 = vst [vmem:[#allocation71_spill] sm:$0xff] %v9882_v8 }
 0x26b   : > { %1804 = vrot.lane.b32.xlu1 %v6563_v42, %s5509_s14  ;;  %4712 = vmatprep.subr.msk.mxu0 %vm6603_vm0, %v1589_v40  ;;  %vm9884_vm15 = vmmov %vm9867_vm4  ;;  %v1626_v40 = vsel %vm9885_vm7, %v6587_v63, %v6518_v61  ;;  %v9935_v24 = vld [vmem:[#allocation19_spill] sm:$0xff] }
 0x26c   : > { %4756 = vmatprep.subr.msk.mxu1 %vm6682_vm1, %v1633_v36  ;;  %4714 = vmatpush1.msk.msra.mxu0 %vm6611_vm8, %v1703_v49  ;;  %v6719_v28 = vpop.permute.xlu0 %1846  ;;  %v1702_v48 = vsel %vm9884_vm15, 0.0, %v6232_v56  ;;  %vm6749_vm12 = vmneg %vm9886_vm3  ;;  %v9887_v56 = vmov 0  ;;  %v1625_v49 = vsel %vm9867_vm4, %v6494_v60, %v6587_v63  ;;  %vm9890_vm15 = vcmask 1039360  }
 0x26d   : > { %4758 = vmatpush1.msk.msra.mxu1 %vm6694_vm13, %v1632_v20  ;;  %v6740_v36 = vpop.permute.xlu1 %1892  ;;  %4716 = vmatprep.subr.msk.mxu0 %vm6603_vm0, %v1582_v15  ;;  %v9888_v56 = vsel %vm6749_vm12, 4294967295, %v9887_v56  ;;  %v1952_v47 = vsel %vm9890_vm15, %v1889_v55, %v6529_v38  ;;  %vm9891_vm7 = vmmov %vm9890_vm15 }
 0x26e   : > { %9889 = vst [vmem:[#allocation72_spill] sm:$0xff] %v9888_v56  ;;  %4760 = vmatprep.subr.msk.mxu1 %vm6682_vm1, %v1626_v40  ;;  %4718 = vmatpush1.msk.msra.mxu0 %vm6611_vm8, %v1702_v48  ;;  %v1951_v20 = vsel %vm9891_vm7, %v1887_v21, %v1889_v55  ;;  %vm9892_vm3 = vmmov %vm9867_vm4 }
 0x26f   : > { %4762 = vmatpush1.msk.msra.mxu1 %vm6694_vm13, %v1625_v49  ;;  %2108 = vperm.xlu0 %5429, %v2102_v22   ;;  %v1619_v60 = vsel %vm9892_vm3, %v6460_v58, %v6543_v12  ;;  %vm9893_vm4 = vmmov %vm9892_vm3  ;;  %v2103_v22 = vld [vmem:[%s9540_s5 + $0x8] sm:$0xff] }
 0x270   : > { %2123 = vperm.xlu1 %5430, %v2105_v54   ;;  %4720 = vmatprep.subr.msk.mxu0 %vm6729_vm14, %v1952_v47  ;;  %v6770_v63 = vpop.permute.xlu0 %1850  ;;  %v1618_v15 = vsel %vm9893_vm4, %v6471_v18, %v6460_v58  ;;  %vm9894_vm15 = vmmov %vm9891_vm7  ;;  %v1944_v58 = vsel %vm9891_vm7, %v6482_v41, %v6506_v26  ;;  %v1612_v18 = vsel %vm9892_vm3, %v6484_v37, %v6436_v5 }
 0x271   : > { %4764 = vmatprep.subr.msk.mxu1 %vm6682_vm1, %v1619_v60  ;;  %4722 = vmatpush2.msk.msra.mxu0 %vm6749_vm12, %v1951_v20  ;;  %v6779_v21 = vpop.permute.xlu1 %1462  ;;  %v1945_v55 = vsel %vm9894_vm15, %v6506_v26, %v6577_v44  ;;  %vm9895_vm4 = vmmov %vm9892_vm3  ;;  %v9903_v20 = vld [vmem:[#allocation24_spill] sm:$0xff]  ;;  %v9906_v60 = vld [vmem:[#allocation43_spill] sm:$0xff] }
 0x272   : > { %4766 = vmatpush1.msk.msra.mxu1 %vm6694_vm13, %v1618_v15  ;;  %4724 = vmatprep.subr.msk.mxu0 %vm6729_vm14, %v1945_v55  ;;  %v1611_v48 = vsel %vm9895_vm4, %v6414_v3, %v6484_v37  ;;  %vm9896_vm15 = vmmov %vm9891_vm7  ;;  %v1604_v3 = vsel %vm9892_vm3, %v6392_v2, %v6381_v16  ;;  %v9909_v55 = vld [vmem:[#allocation33_spill] sm:$0xff] }
 0x273   : > { %4768 = vmatprep.subr.msk.mxu1 %vm6682_vm1, %v1612_v18  ;;  %4726 = vmatpush2.msk.msra.mxu0 %vm6749_vm12, %v1944_v58  ;;  %v1938_v26 = vsel %vm9896_vm15, %v6531_v10, %v6448_v11  ;;  %vm9897_vm7 = vmmov %vm9892_vm3  ;;  %v9910_v58 = vld [vmem:[#allocation27_spill] sm:$0xff]  ;;  %v9911_v18 = vld [vmem:[#allocation34_spill] sm:$0xff] }
 0x274   : > { %4770 = vmatpush1.msk.msra.mxu1 %vm6694_vm13, %v1611_v48  ;;  %2113 = vperm.xlu1 %5430, %v2103_v22   ;;  %v1605_v41 = vsel %vm9897_vm7, %v6381_v16, %v6438_v32  ;;  %v6812_v40 = vpop.permute.xlu0 %1528  ;;  %vm9898_vm4 = vmmov %vm9896_vm15 }
 0x275   : > { %v1937_v37 = vsel %vm9898_vm4, %v6520_v46, %v6531_v10  ;;  %4728 = vmatprep.subr.msk.mxu0 %vm6729_vm14, %v1938_v26  ;;  %4772 = vmatprep.subr.msk.mxu1 %vm6682_vm1, %v1605_v41  ;;  %v6824_v54 = vpop.permute.xlu1 %1478  ;;  %vm9899_vm15 = vmmov %vm9892_vm3  ;;  %v1597_v10 = vsel %vm9892_vm3, %v6321_v17, %v6383_v25  ;;  %v1930_v46 = vsel %vm9898_vm4, %v6403_v27, %v6425_v13  ;;  %v9913_v26 = vld [vmem:[#allocation31_spill] sm:$0xff] }
 0x276   : > { %4730 = vmatpush2.msk.msra.mxu0 %vm6749_vm12, %v1937_v37  ;;  %4774 = vmatpush1.msk.msra.mxu1 %vm6694_vm13, %v1604_v3  ;;  %v1598_v16 = vsel %vm9899_vm15, %v6383_v25, %v6356_v50  ;;  %vm9900_vm7 = vmmov %vm9898_vm4  ;;  %v1590_v25 = vsel %vm9892_vm3, %v6299_v34, %v6286_v9  ;;  %v1923_v49 = vsel %vm9898_vm4, %v6416_v57, %v6427_v6  ;;  %v9907_v57 = vld [vmem:[#allocation37_spill] sm:$0xff]  ;;  %v9915_v37 = vld [vmem:[#allocation23_spill] sm:$0xff] }
 0x277   : > { %v1931_v2 = vsel %vm9900_vm7, %v6425_v13, %v6473_v0  ;;  %4776 = vmatprep.subr.msk.mxu1 %vm6682_vm1, %v1598_v16  ;;  %vm9901_vm15 = vmmov %vm9898_vm4  ;;  %v1916_v22 = vsel %vm9898_vm4, %v9909_v55, %v9907_v57  ;;  %v9916_v16 = vld [vmem:[#allocation22_spill] sm:$0xff] }
 0x278   : > { %4732 = vmatprep.subr.msk.mxu0 %vm6729_vm14, %v1931_v2  ;;  %4778 = vmatpush1.msk.msra.mxu1 %vm6694_vm13, %v1597_v10  ;;  %v1924_v17 = vsel %vm9901_vm15, %v6427_v6, %v6370_v59  ;;  %vm9902_vm7 = vmmov %vm9892_vm3  ;;  %v6856_v13 = vpop.permute.xlu0 %1862  ;;  %v6914_v10 = vld [vmem:[%s9539_s4] sm:$0xff]  ;;  %v9923_v55 = vld [vmem:[#allocation46_spill] sm:$0xff] }
 0x279   : > { %4734 = vmatpush2.msk.msra.mxu0 %vm6749_vm12, %v1930_v46  ;;  %v1591_v27 = vsel %vm9902_vm7, %v6286_v9, %v6325_v53  ;;  %v6868_v47 = vpop.permute.xlu1 %1494  ;;  %v9904_v9 = vld [vmem:[#allocation25_spill] sm:$0xff]  ;;  %vm9905_vm15 = vmmov %vm9892_vm3  ;;  %v9918_v46 = vld [vmem:[#allocation20_spill] sm:$0xff] }
 0x27a   : > { %4736 = vmatprep.subr.msk.mxu0 %vm6729_vm14, %v1924_v17  ;;  %4780 = vmatprep.subr.msk.mxu1 %vm6682_vm1, %v1591_v27  ;;  %v1584_v34 = vsel %vm9905_vm15, %v9904_v9, %v9903_v20  ;;  %vm9908_vm7 = vmmov %vm9898_vm4  ;;  %v1583_v15 = vsel %vm9892_vm3, %v6236_v31, %v9904_v9  ;;  %v6924_v27 = vld [vmem:[%s9539_s4 + $0x18] sm:$0xff] }
 0x27b   : > { %4738 = vmatpush2.msk.msra.mxu0 %vm6749_vm12, %v1923_v49  ;;  %4782 = vmatpush1.msk.msra.mxu1 %vm6694_vm13, %v1590_v25  ;;  %v1917_v6 = vsel %vm9908_vm7, %v9907_v57, %v9906_v60  ;;  %vm9912_vm15 = vmmov %vm9898_vm4  ;;  %v9920_v49 = vld [vmem:[#allocation55_spill] sm:$0xff]  ;;  %v6940_v57 = vld [vmem:[%s9539_s4 + $0x10] sm:$0xff] }
 0x27c   : > { %4784 = vmatprep.subr.msk.mxu1 %vm6682_vm1, %v1584_v34  ;;  %4740 = vmatprep.subr.msk.mxu0 %vm6729_vm14, %v1917_v6  ;;  %v1910_v31 = vsel %vm9912_vm15, %v9911_v18, %v9910_v58  ;;  %v6897_v48 = vpop.permute.xlu0 %1866  ;;  %vm9914_vm7 = vmmov %vm9898_vm4  ;;  %v9921_v34 = vld [vmem:[#allocation50_spill] sm:$0xff]  ;;  %v9922_v6 = vld [vmem:[#allocation48_spill] sm:$0xff] }
 0x27d   : > { %4742 = vmatpush2.msk.msra.mxu0 %vm6749_vm12, %v1916_v22  ;;  %4786 = vmatpush1.msk.msra.mxu1 %vm6694_vm13, %v1583_v15  ;;  %v1909_v41 = vsel %vm9914_vm7, %v9913_v26, %v9911_v18  ;;  %v6904_v3 = vpop.permute.xlu1 %1510  ;;  %vm9917_vm3 = vmmov %vm9898_vm4  ;;  %v6946_v15 = vld [vmem:[%s9539_s4 + $0x28] sm:$0xff] }
 0x27e   : > { %4744 = vmatprep.subr.msk.mxu0 %vm6729_vm14, %v1910_v31  ;;  %v1903_v2 = vsel %vm9917_vm3, %v9916_v16, %v9915_v37  ;;  %vm9919_vm4 = vmmov %vm9917_vm3  ;;  %v9924_v18 = vld [vmem:[#allocation44_spill] sm:$0xff]  ;;  %v9925_v26 = vld [vmem:[#allocation41_spill] sm:$0xff] }
 0x27f   : > { %4746 = vmatpush2.msk.msra.mxu0 %vm6749_vm12, %v1909_v41  ;;  %v1902_v17 = vsel %vm9919_vm4, %v9918_v46, %v9916_v16  ;;  %v6961_v41 = vld [vmem:[%s9539_s4 + $0x20] sm:$0xff]  ;;  %vm7007_vm15 = vmneg %vm5768_vm11 }
 0x280   : > { %4748 = vmatprep.subr.msk.mxu0 %vm6729_vm14, %v1903_v2  ;;  %v6928_v25 = vpop.permute.xlu0 %1544  ;;  %v9926_v16 = vld [vmem:[#allocation40_spill] sm:$0xff]  ;;  %v6967_v2 = vld [vmem:[%s9539_s4 + $0x38] sm:$0xff]  ;;  %v9938_v45 = vsel %vm7007_vm15, 4294967295, %v9937_v45  ;;  %vm7013_vm7 = vmneg %vm5764_vm10 }
 0x281   : > { %4750 = vmatpush2.msk.msra.mxu0 %vm6749_vm12, %v1902_v17  ;;  %v6932_v9 = vpop.permute.xlu1 %1526  ;;  %v9927_v46 = vld [vmem:[#allocation35_spill] sm:$0xff]  ;;  %9939 = vst [vmem:[#allocation25_spill] sm:$0xff] %v9938_v45  ;;  %vm9944_vm4 = vmmov %vm9917_vm3 }
 0x282   : > { %2204 = vmatmul.mubr.f32.vlgmr.msra.gmra.mxu0 %v6914_v10  ;;  %2317 = vmatprep.subr.mxu0 %v9920_v49  ;;  %v9928_v49 = vld [vmem:[#allocation32_spill] sm:$0xff]  ;;  %vm9945_vm10 = vmmov %vm9917_vm3 }
 0x283   : > { %2318 = vmatpush1.msra.mxu0 %v9921_v34  ;;  %4752 = vmatprep.mubr.msk.f32.mxu0 %vm9638_vm6, %v6924_v27  ;;  %vm9946_vm11 = vmmov %vm9917_vm3 }
 0x284   : > { %2319 = vmatprep.subr.mxu0 %v9922_v6  ;;  %v6949_v22 = vpop.permute.xlu0 %1548  ;;  %v9930_v6 = vld [vmem:[#allocation30_spill] sm:$0xff] }
 0x285   : > { %2320 = vmatpush1.msra.mxu0 %v9923_v55  ;;  %v6953_v31 = vpop.permute.xlu1 %1530  ;;  %v6982_v55 = vld [vmem:[%s9539_s4 + $0x30] sm:$0xff] }
 0x286   : > { %2210 = vmatmul.mubr.f32.gmra.mxu0 %v6940_v57  ;;  %2321 = vmatprep.subr.mxu0 %v9924_v18  ;;  %v9931_v18 = vld [vmem:[#allocation29_spill] sm:$0xff] }
 0x287   : > { %2322 = vmatpush1.msra.mxu0 %v9925_v26  ;;  %4753 = vmatprep.mubr.msk.f32.mxu0 %vm9638_vm6, %v6946_v15  ;;  %v9932_v26 = vld [vmem:[#allocation26_spill] sm:$0xff] }
 0x288   : > { %2323 = vmatprep.subr.mxu0 %v9926_v16  ;;  %v6970_v17 = vpop.permute.xlu0 %1878 }
 0x289   : > { %2324 = vmatpush1.msra.mxu0 %v9927_v46  ;;  %v6974_v34 = vpop.permute.xlu1 %1848 }
 0x28a   : > { %2216 = vmatmul.mubr.f32.gmra.mxu0 %v6961_v41  ;;  %2325 = vmatprep.subr.mxu0 %v9928_v49  ;;  %9929 = vst [vmem:[#allocation24_spill] sm:$0xff] %v6974_v34  ;;  %v9933_v49 = vld [vmem:[#allocation21_spill] sm:$0xff] }
 0x28b   : > { %2326 = vmatpush1.msra.mxu0 %v9930_v6  ;;  %4754 = vmatprep.mubr.msk.f32.mxu0 %vm9638_vm6, %v6967_v2  ;;  %v9934_v6 = vld [vmem:[#allocation39_spill] sm:$0xff] }
 0x28c   : > { %2327 = vmatprep.subr.mxu0 %v9931_v18  ;;  %v6986_v16 = vpop.permute.xlu0 %1882 }
 0x28d   : > { %2328 = vmatpush1.msra.mxu0 %v9932_v26  ;;  %v6990_v46 = vpop.permute.xlu1 %1542 }
 0x28e   : > { %2222 = vmatmul.mubr.f32.gmra.mxu0 %v6982_v55  ;;  %2329 = vmatprep.subr.mxu0 %v6253_v43  ;;  %v1953_v43 = vsel %vm9944_vm4, %v6529_v38, %v6740_v36  ;;  %vm9948_vm4 = vmmov %vm9917_vm3 }
 0x28f   : > { %2330 = vmatpush1.msra.mxu0 %v9933_v49  ;;  %4887 = vmatprep.mubr.msk.f32.mxu0 %vm9638_vm6, %v9934_v6  ;;  %v1947_v49 = vsel %vm9945_vm10, %v6595_v23, %v6970_v17  ;;  %v1946_v6 = vsel %vm9946_vm11, %v6577_v44, %v6595_v23  ;;  %v9949_v44 = vld [vmem:[#allocation56_spill] sm:$0xff]  ;;  %vm9950_vm10 = vmmov %vm9917_vm3 }
 0x290   : > { %2331 = vmatprep.subr.mxu0 %v6227_v51  ;;  %v6997_v18 = vpop.permute.xlu0 %1560  ;;  %v9941_v51 = vmov 0  ;;  %v1933_v23 = vsel %vm9950_vm10, %v9949_v44, %v6719_v28  ;;  %vm9951_vm11 = vmmov %vm9917_vm3 }
 0x291   : > { %2332 = vmatpush1.msra.mxu0 %v9935_v24  ;;  %v6999_v26 = vpop.permute.xlu1 %1546  ;;  %v9942_v51 = vsel %vm7013_vm7, 4294967295, %v9941_v51  ;;  %vm9955_vm10 = vmmov %vm9917_vm3 }
 0x292   : > { %9943 = vst [vmem:[#allocation43_spill] sm:$0xff] %v9942_v51 }
 0x294   : > { %v7001_v29 = vpop.permute.xlu0 %1564 }
 0x295   : > { %v7003_v35 = vpop.permute.xlu1 %1864 }
 0x298   : > { %v7017_v24 = vpop.permute.xlu0 %1894 }
 0x299   : > { %v1559_v56 = vpop.permute.xlu1 %1558  ;;  %v1954_v8 = vsel %vm9917_vm3, %v6740_v36, %v7017_v24 }
 0x29a   : > { %4788 = vmatprep.subr.msk.mxu1 %vm7007_vm15, %v1954_v8  ;;  %v9947_v8 = vld [vmem:[#allocation59_spill] sm:$0xff] }
 0x29b   : > { %4790 = vmatpush2.msk.msra.mxu1 %vm7013_vm7, %v1953_v43  ;;  %v1940_v36 = vsel %vm9917_vm3, %v9947_v8, %v6856_v13  ;;  %v1939_v43 = vsel %vm9948_vm4, %v6448_v11, %v9947_v8  ;;  %v9952_v8 = vld [vmem:[#allocation51_spill] sm:$0xff]  ;;  %vm9953_vm4 = vmmov %vm9917_vm3 }
 0x29c   : > { %v7035_v34 = vpop.permute.xlu0 %1532  ;;  %4792 = vmatprep.subr.msk.mxu1 %vm7007_vm15, %v1947_v49 }
 0x29d   : > { %v7039_v38 = vpop.permute.xlu1 %1562  ;;  %4794 = vmatpush2.msk.msra.mxu1 %vm7013_vm7, %v1946_v6  ;;  %v1932_v6 = vsel %vm9951_vm11, %v6473_v0, %v9949_v44  ;;  %v9954_v0 = vld [vmem:[#allocation45_spill] sm:$0xff]  ;;  %vm9956_vm11 = vmmov %vm9917_vm3 }
 0x29e   : > { %4796 = vmatprep.subr.msk.mxu1 %vm7007_vm15, %v1940_v36  ;;  %v1926_v36 = vsel %vm9917_vm3, %v9952_v8, %v6648_v19  ;;  %v1919_v44 = vsel %vm9955_vm10, %v9954_v0, %v6607_v7  ;;  %vm9962_vm10 = vmmov %vm9917_vm3 }
 0x29f   : > { %4798 = vmatpush2.msk.msra.mxu1 %vm7013_vm7, %v1939_v43  ;;  %v1925_v43 = vsel %vm9953_vm4, %v6370_v59, %v9952_v8  ;;  %v9957_v8 = vld [vmem:[#allocation63_spill] sm:$0xff]  ;;  %vm9959_vm4 = vmmov %vm9917_vm3 }
 0x2a0   : > { %v7059_v49 = vpop.permute.xlu0 %1834  ;;  %4800 = vmatprep.subr.msk.mxu1 %vm7007_vm15, %v1933_v23  ;;  %v1918_v23 = vsel %vm9956_vm11, %v9906_v60, %v9954_v0  ;;  %v9960_v60 = vld [vmem:[#allocation60_spill] sm:$0xff]  ;;  %vm9963_vm11 = vmmov %vm9917_vm3 }
 0x2a1   : > { %v7063_v11 = vpop.permute.xlu1 %1880  ;;  %4802 = vmatpush2.msk.msra.mxu1 %vm7013_vm7, %v1932_v6  ;;  %v9961_v0 = vld [vmem:[#allocation28_spill] sm:$0xff] }
 0x2a2   : > { %4804 = vmatprep.subr.msk.mxu1 %vm7007_vm15, %v1926_v36  ;;  %v9958_v36 = vld [vmem:[#allocation38_spill] sm:$0xff] }
 0x2a3   : > { %4806 = vmatpush2.msk.msra.mxu1 %vm7013_vm7, %v1925_v43  ;;  %v1912_v43 = vsel %vm9917_vm3, %v9958_v36, %v9957_v8  ;;  %v1911_v7 = vsel %vm9959_vm4, %v9910_v58, %v9958_v36  ;;  %vm7122_vm3 = vmneg %vm5852_vm5  ;;  %v9966_v36 = vmov 0 }
 0x2a4   : > { %v7083_v6 = vpop.permute.xlu0 %1898  ;;  %4808 = vmatprep.subr.msk.mxu1 %vm7007_vm15, %v1919_v44  ;;  %v1905_v44 = vsel %vm9962_vm10, %v9961_v0, %v9960_v60  ;;  %v9967_v36 = vsel %vm7122_vm3, 4294967295, %v9966_v36 }
 0x2a5   : > { %v7087_v59 = vpop.permute.xlu1 %1832  ;;  %4810 = vmatpush2.msk.msra.mxu1 %vm7013_vm7, %v1918_v23  ;;  %v1904_v23 = vsel %vm9963_vm11, %v9915_v37, %v9961_v0  ;;  %9968 = vst [vmem:[#allocation37_spill] sm:$0xff] %v9967_v36  ;;  %v9969_v0 = vld [vmem:[#allocation49_spill] sm:$0xff]  ;;  %vm9976_vm11 = vcmask 7168  }
 0x2a6   : > { %4812 = vmatprep.subr.msk.mxu1 %vm7007_vm15, %v1912_v43  ;;  %vm9977_vm5 = vmmov %vm9976_vm11 }
 0x2a7   : > { %4814 = vmatpush2.msk.msra.mxu1 %vm7013_vm7, %v1911_v7  ;;  %v9964_v7 = vld [vmem:[#allocation54_spill] sm:$0xff] }
 0x2a8   : > { %v7107_v19 = vpop.permute.xlu0 %1576  ;;  %4816 = vmatprep.subr.msk.mxu1 %vm7007_vm15, %v1905_v44  ;;  %v9970_v44 = vld [vmem:[#allocation13_spill] sm:$0xff] }
 0x2a9   : > { %v7111_v58 = vpop.permute.xlu1 %1514  ;;  %4818 = vmatpush2.msk.msra.mxu1 %vm7013_vm7, %v1904_v23  ;;  %vm9971_vm4 = vnez %v9970_v44  ;;  %v9972_v23 = vmov 0 }
 0x2aa   : > { %2293 = vmatmul.mubr.f32.vlgmr.msra.gmra.mxu1 %v6914_v10  ;;  %2406 = vmatprep.subr.mxu1 %v6539_v62  ;;  %vm7131_vm10 = vmneg %vm9971_vm4 }
 0x2ab   : > { %2407 = vmatpush1.msra.mxu1 %v9964_v7  ;;  %4820 = vmatprep.mubr.msk.f32.mxu1 %vm9638_vm6, %v6924_v27  ;;  %v9973_v23 = vsel %vm7131_vm10, 4294967295, %v9972_v23  ;;  %v9975_v7 = vld [vmem:[#allocation47_spill] sm:$0xff]  ;;  %vm9980_vm4 = vmmov %vm9977_vm5 }
 0x2ac   : > { %v7126_v43 = vpop.permute.xlu0 %1516  ;;  %2408 = vmatprep.subr.mxu1 %v9969_v0  ;;  %9974 = vst [vmem:[#allocation33_spill] sm:$0xff] %v9973_v23  ;;  %v9978_v0 = vld [vmem:[#allocation42_spill] sm:$0xff] }
 0x2ad   : > { %v1575_v62 = vpop.permute.xlu1 %1574  ;;  %2409 = vmatpush1.msra.mxu1 %v9975_v7  ;;  %v9979_v7 = vld [vmem:[#allocation52_spill] sm:$0xff] }
 0x2ae   : > { %v1634_v37 = vsel %vm9976_vm11, %v6688_v14, %v1575_v62  ;;  %2299 = vmatmul.mubr.f32.gmra.mxu1 %v6940_v57  ;;  %v1635_v51 = vsel %vm9977_vm5, %v1575_v62, %v7107_v19  ;;  %2410 = vmatprep.subr.mxu1 %v6390_v4  ;;  %v1628_v14 = vsel %vm9980_vm4, %v1559_v56, %v6997_v18  ;;  %vm9981_vm11 = vmmov %vm9980_vm4  ;;  %v9982_v4 = vld [vmem:[#allocation36_spill] sm:$0xff] }
 0x2af   : > { %4824 = vmatprep.subr.msk.mxu0 %vm7122_vm3, %v1635_v51  ;;  %2411 = vmatpush1.msra.mxu1 %v9978_v0  ;;  %v1627_v62 = vsel %vm9981_vm11, %v6518_v61, %v1559_v56  ;;  %vm9983_vm5 = vmmov %vm9980_vm4  ;;  %v1620_v61 = vsel %vm9980_vm4, %v6543_v12, %v6990_v46  ;;  %v9985_v0 = vld [vmem:[#allocation53_spill] sm:$0xff] }
 0x2b0   : > { %4826 = vmatpush1.msk.msra.mxu0 %vm7131_vm10, %v1634_v37  ;;  %v7147_v44 = vpop.permute.xlu0 %1818  ;;  %2412 = vmatprep.subr.mxu1 %v9979_v7  ;;  %v1621_v51 = vsel %vm9983_vm5, %v6990_v46, %v6928_v25  ;;  %vm9984_vm11 = vmmov %vm9980_vm4  ;;  %v9987_v12 = vld [vmem:[#allocation57_spill] sm:$0xff]  ;;  %v1607_v46 = vsel %vm9980_vm4, %v6904_v3, %v6675_v1 }
 0x2b1   : > { %v1579_v45 = vpop.permute.xlu1 %1578  ;;  %4828 = vmatprep.subr.msk.mxu0 %vm7122_vm3, %v1628_v14  ;;  %4821 = vmatprep.mubr.msk.f32.mxu1 %vm9638_vm6, %v6946_v15  ;;  %v1614_v37 = vsel %vm9984_vm11, %v6932_v9, %v6812_v40  ;;  %vm9986_vm5 = vmmov %vm9980_vm4 }
 0x2b2   : > { %4830 = vmatpush1.msk.msra.mxu0 %vm7131_vm10, %v1627_v62  ;;  %2413 = vmatpush1.msra.mxu1 %v9982_v4  ;;  %vm9988_vm11 = vmmov %vm9980_vm4  ;;  %v10014_v62 = vmov 0 }
 0x2b3   : > { %2305 = vmatmul.mubr.f32.gmra.mxu1 %v6961_v41  ;;  %4832 = vmatprep.subr.msk.mxu0 %vm7122_vm3, %v1621_v51  ;;  %v1606_v14 = vsel %vm9988_vm11, %v6438_v32, %v6904_v3  ;;  %v9991_v32 = vmov 0  ;;  %v10032_v51 = vld [vmem:[#allocation68_spill] sm:$0xff] }
 0x2b4   : > { %2414 = vmatprep.subr.mxu1 %v6504_v30  ;;  %4834 = vmatpush1.msk.msra.mxu0 %vm7131_vm10, %v1620_v61  ;;  %v7173_v56 = vpop.permute.xlu0 %1500  ;;  %v1613_v30 = vsel %vm9986_vm5, %v6436_v5, %v6932_v9  ;;  %vm9989_vm5 = vmmov %vm9980_vm4  ;;  %v9998_v61 = vmov 0 }
 0x2b5   : > { %2415 = vmatpush1.msra.mxu1 %v9985_v0  ;;  %v7179_v7 = vpop.permute.xlu1 %1816  ;;  %4836 = vmatprep.subr.msk.mxu0 %vm7122_vm3, %v1614_v37  ;;  %v1600_v9 = vsel %vm9989_vm5, %v6868_v47, %v6626_v33  ;;  %vm7211_vm4 = vmneg %vm5894_vm9  ;;  %v10001_v37 = vld [vmem:[#allocation64_spill] sm:$0xff]  ;;  %v10003_v0 = vld [vmem:[#allocation61_spill] sm:$0xff] }
 0x2b6   : > { %2416 = vmatprep.subr.mxu1 %v6526_v52  ;;  %4822 = vmatprep.mubr.msk.f32.mxu1 %vm9638_vm6, %v6967_v2  ;;  %v9992_v32 = vsel %vm7211_vm4, 4294967295, %v9991_v32  ;;  %vm9994_vm11 = vmmov %vm9989_vm5 }
 0x2b7   : > { %4838 = vmatpush1.msk.msra.mxu0 %vm7131_vm10, %v1613_v30  ;;  %2417 = vmatpush1.msra.mxu1 %v9987_v12  ;;  %9993 = vst [vmem:[#allocation27_spill] sm:$0xff] %v9992_v32  ;;  %v1599_v3 = vsel %vm9994_vm11, %v6356_v50, %v6868_v47  ;;  %vm9996_vm6 = vmmov %vm9989_vm5  ;;  %v10004_v12 = vld [vmem:[#allocation11_spill] sm:$0xff]  ;;  %v2889_v32 = vld [vmem:[%s9542_s7 + $0x10] sm:$0xff] }
 0x2b8   : > { %2311 = vmatmul.mubr.f32.gmra.mxu1 %v6982_v55  ;;  %4840 = vmatprep.subr.msk.mxu0 %vm7122_vm3, %v1607_v46  ;;  %v1581_v5 = vpop.permute.xlu0 %1580  ;;  %vm7224_vm5 = vmneg %vm5890_vm2  ;;  %v1592_v47 = vsel %vm9996_vm6, %v6325_v53, %v6824_v54  ;;  %vm10005_vm2 = vnez %v10004_v12  ;;  %v10038_v12 = vld [vmem:[#allocation39_spill] sm:$0xff] }
 0x2b9   : > { %2418 = vmatprep.subr.mxu1 %v6563_v42  ;;  %4842 = vmatpush1.msk.msra.mxu0 %vm7131_vm10, %v1606_v14  ;;  %v7204_v52 = vpop.permute.xlu1 %1498  ;;  %v9995_v42 = vld [vmem:[#allocation58_spill] sm:$0xff]  ;;  %v1637_v4 = vsel %vm9996_vm6, %v1579_v45, %v1581_v5  ;;  %v9999_v61 = vsel %vm7224_vm5, 4294967295, %v9998_v61  ;;  %vm10002_vm9 = vmmov %vm9996_vm6 }
 0x2ba   : > { %2419 = vmatpush1.msra.mxu1 %v9995_v42  ;;  %4844 = vmatprep.subr.msk.mxu0 %vm7122_vm3, %v1600_v9  ;;  %10000 = vst [vmem:[#allocation34_spill] sm:$0xff] %v9999_v61  ;;  %v1593_v50 = vsel %vm10002_vm9, %v6824_v54, %v10001_v37  ;;  %vm7244_vm11 = vmneg %vm10005_vm2  ;;  %v10011_v14 = vld [vmem:[#allocation62_spill] sm:$0xff]  ;;  %v10012_v9 = vld [vmem:[#allocation12_spill] sm:$0xff] }
 0x2bb   : > { %2420 = vmatprep.subr.mxu1 %v6583_v39  ;;  %4846 = vmatpush1.msk.msra.mxu0 %vm7131_vm10, %v1599_v3  ;;  %v10006_v39 = vmov 0  ;;  %vm10009_vm9 = vmmov %vm9996_vm6  ;;  %v1586_v5 = vsel %vm9996_vm6, %v6779_v21, %v10011_v14  ;;  %vm10013_vm2 = vnez %v10012_v9 }
 0x2bc   : > { %2421 = vmatpush1.msra.mxu1 %v10003_v0  ;;  %4848 = vmatprep.subr.msk.mxu0 %vm7122_vm3, %v1593_v50  ;;  %v7240_v30 = vpop.permute.xlu0 %1802  ;;  %v10007_v39 = vsel %vm7244_vm11, 4294967295, %v10006_v39  ;;  %v1585_v46 = vsel %vm10009_vm9, %v9903_v20, %v6779_v21  ;;  %vm10010_vm13 = vmmov %vm9996_vm6  ;;  %vm10018_vm9 = vcmask 1039360  }
 0x2bd   : > { %10008 = vst [vmem:[#allocation31_spill] sm:$0xff] %v10007_v39  ;;  %v1636_v53 = vsel %vm10010_vm13, %v7107_v19, %v1579_v45  ;;  %4892 = vmatprep.subr.msk.mxu1 %vm7211_vm4, %v1637_v4  ;;  %4850 = vmatpush1.msk.msra.mxu0 %vm7131_vm10, %v1592_v47  ;;  %v1897_v54 = vpop.permute.xlu1 %1896  ;;  %vm7262_vm1 = vmneg %vm10013_vm2 }
 0x2be   : > { %v10015_v62 = vsel %vm7262_vm1, 4294967295, %v10014_v62  ;;  %4894 = vmatpush1.msk.msra.mxu1 %vm7224_vm5, %v1636_v53  ;;  %vm10017_vm13 = vmmov %vm9996_vm6  ;;  %v1955_v19 = vsel %vm10018_vm9, %v7017_v24, %v1897_v54  ;;  %4852 = vmatprep.subr.msk.mxu0 %vm7122_vm3, %v1586_v5 }
 0x2bf   : > { %10016 = vst [vmem:[#allocation23_spill] sm:$0xff] %v10015_v62  ;;  %v1630_v45 = vsel %vm10017_vm13, %v7039_v38, %v7001_v29  ;;  %vm10019_vm6 = vmmov %vm10018_vm9  ;;  %4854 = vmatpush1.msk.msra.mxu0 %vm7131_vm10, %v1585_v46 }
 0x2c0   : > { %v1956_v21 = vsel %vm10019_vm6, %v1897_v54, %v7083_v6  ;;  %vm10020_vm2 = vmmov %vm10017_vm13  ;;  %4896 = vmatprep.subr.msk.mxu1 %vm7211_vm4, %v1630_v45  ;;  %v1485_v24 = vpop.permute.xlu0 %1484  ;;  %v1949_v3 = vsel %vm10019_vm6, %v7063_v11, %v6986_v16  ;;  %v10045_v45 = vld [vmem:[#allocation16_spill] sm:$0xff] }
 0x2c1   : > { %v1629_v20 = vsel %vm10020_vm2, %v6997_v18, %v7039_v38  ;;  %4856 = vmatprep.subr.msk.mxu0 %vm7244_vm11, %v1956_v21  ;;  %vm10021_vm13 = vmmov %vm10020_vm2  ;;  %v1801_v38 = vpop.permute.xlu1 %1800 }
 0x2c2   : > { %4898 = vmatpush1.msk.msra.mxu1 %vm7224_vm5, %v1629_v20  ;;  %v1623_v29 = vsel %vm10021_vm13, %v6999_v26, %v6949_v22  ;;  %vm10022_vm9 = vmmov %vm10020_vm2  ;;  %4858 = vmatpush2.msk.msra.mxu0 %vm7262_vm1, %v1955_v19  ;;  %v1616_v22 = vsel %vm10020_vm2, %v6953_v31, %v7035_v34  ;;  %v10047_v19 = vmov 0 }
 0x2c3   : > { %v1622_v18 = vsel %vm10022_vm9, %v6928_v25, %v6999_v26  ;;  %4900 = vmatprep.subr.msk.mxu1 %vm7211_vm4, %v1623_v29  ;;  %vm10023_vm13 = vmmov %vm10019_vm6  ;;  %4860 = vmatprep.subr.msk.mxu0 %vm7244_vm11, %v1949_v3 }
 0x2c4   : > { %v1948_v42 = vsel %vm10023_vm13, %v6970_v17, %v7063_v11  ;;  %4902 = vmatpush1.msk.msra.mxu1 %vm7224_vm5, %v1622_v18  ;;  %vm10024_vm9 = vmmov %vm10020_vm2  ;;  %v1942_v17 = vsel %vm10019_vm6, %v7003_v35, %v6897_v48 }
 0x2c5   : > { %v1615_v25 = vsel %vm10024_vm9, %v6812_v40, %v6953_v31  ;;  %4904 = vmatprep.subr.msk.mxu1 %vm7211_vm4, %v1616_v22  ;;  %4862 = vmatpush2.msk.msra.mxu0 %vm7262_vm1, %v1948_v42  ;;  %vm10025_vm2 = vmmov %vm10019_vm6  ;;  %v7331_v40 = vpop.permute.xlu0 %1786  ;;  %v1608_v31 = vsel %vm10024_vm9, %v6675_v1, %v7111_v58 }
 0x2c6   : > { %v1941_v34 = vsel %vm10025_vm2, %v6856_v13, %v7003_v35  ;;  %vm10026_vm13 = vmmov %vm10024_vm9  ;;  %4906 = vmatpush1.msk.msra.mxu1 %vm7224_vm5, %v1615_v25  ;;  %4864 = vmatprep.subr.msk.mxu0 %vm7244_vm11, %v1942_v17  ;;  %v1483_v35 = vpop.permute.xlu1 %1482  ;;  %v10027_v13 = vld [vmem:[#allocation24_spill] sm:$0xff] }
 0x2c7   : > { %v1609_v26 = vsel %vm10026_vm13, %v7111_v58, %v7126_v43  ;;  %4866 = vmatpush2.msk.msra.mxu0 %vm7262_vm1, %v1941_v34  ;;  %vm10028_vm6 = vmmov %vm10025_vm2  ;;  %v1934_v43 = vsel %vm10025_vm2, %v6719_v28, %v10027_v13  ;;  %v1595_v58 = vsel %vm10024_vm9, %v1483_v35, %v1485_v24 }
 0x2c8   : > { %4908 = vmatprep.subr.msk.mxu1 %vm7211_vm4, %v1609_v26  ;;  %v1935_v11 = vsel %vm10028_vm6, %v10027_v13, %v6770_v63  ;;  %vm10029_vm13 = vmmov %vm10024_vm9 }
 0x2c9   : > { %4910 = vmatpush1.msk.msra.mxu1 %vm7224_vm5, %v1608_v31  ;;  %v1602_v1 = vsel %vm10029_vm13, %v7204_v52, %v7173_v56  ;;  %4868 = vmatprep.subr.msk.mxu0 %vm7244_vm11, %v1935_v11  ;;  %vm10030_vm10 = vmmov %vm10024_vm9  ;;  %v1928_v56 = vsel %vm10025_vm2, %v7087_v59, %v7059_v49 }
 0x2ca   : > { %v1601_v4 = vsel %vm10030_vm10, %v6626_v33, %v7204_v52  ;;  %4912 = vmatprep.subr.msk.mxu1 %vm7211_vm4, %v1602_v1  ;;  %vm10031_vm6 = vmmov %vm10024_vm9  ;;  %4870 = vmatpush2.msk.msra.mxu0 %vm7262_vm1, %v1934_v43  ;;  %v1469_v33 = vpop.permute.xlu0 %1468  ;;  %v1785_v52 = vpop.permute.xlu1 %1784 }
 0x2cb   : > { %v1594_v28 = vsel %vm10031_vm6, %v10001_v37, %v1483_v35  ;;  %vm10033_vm13 = vmmov %vm10025_vm2  ;;  %4914 = vmatpush1.msk.msra.mxu1 %vm7224_vm5, %v1601_v4  ;;  %4872 = vmatprep.subr.msk.mxu0 %vm7244_vm11, %v1928_v56  ;;  %v10066_v35 = vmov 0.0  }
 0x2cc   : > { %v1927_v50 = vsel %vm10033_vm13, %v10032_v51, %v7087_v59  ;;  %4916 = vmatprep.subr.msk.mxu1 %vm7211_vm4, %v1595_v58  ;;  %vm10034_vm10 = vmmov %vm10025_vm2  ;;  %v10035_v59 = vld [vmem:[#allocation66_spill] sm:$0xff] }
 0x2cd   : > { %4874 = vmatpush2.msk.msra.mxu0 %vm7262_vm1, %v1927_v50  ;;  %v1921_v37 = vsel %vm10034_vm10, %v7179_v7, %v7147_v44  ;;  %vm10036_vm9 = vmmov %vm10025_vm2  ;;  %4918 = vmatpush1.msk.msra.mxu1 %vm7224_vm5, %v1594_v28 }
 0x2ce   : > { %v1920_v47 = vsel %vm10036_vm9, %v10035_v59, %v7179_v7  ;;  %4876 = vmatprep.subr.msk.mxu0 %vm7244_vm11, %v1921_v37  ;;  %vm10037_vm6 = vmmov %vm10025_vm2  ;;  %vm10039_vm2 = vcmask 523264   ;;  %v1885_v7 = vpop.permute.xlu0 %1884  ;;  %v1467_v53 = vpop.permute.xlu1 %1466 }
 0x2cf   : > { %4878 = vmatpush2.msk.msra.mxu0 %vm7262_vm1, %v1920_v47  ;;  %v1914_v0 = vsel %vm10037_vm6, %v1801_v38, %v7240_v30  ;;  %4955 = vmatprep.mubr.msk.f32.mxu1 %vm10039_vm2, %v10038_v12  ;;  %vm10040_vm13 = vmmov %vm10037_vm6 }
 0x2d0   : > { %v1913_v46 = vsel %vm10040_vm13, %v9957_v8, %v1801_v38  ;;  %4880 = vmatprep.subr.msk.mxu0 %vm7244_vm11, %v1914_v0  ;;  %vm10041_vm10 = vmmov %vm10037_vm6  ;;  %vm10046_vm13 = vnez %v10045_v45 }
 0x2d1   : > { %4882 = vmatpush2.msk.msra.mxu0 %vm7262_vm1, %v1913_v46  ;;  %v1907_v54 = vsel %vm10041_vm10, %v1785_v52, %v7331_v40  ;;  %vm10042_vm9 = vmmov %vm10037_vm6  ;;  %vm10043_vm6 = vcmask 7168  }
 0x2d2   : > { %v1906_v5 = vsel %vm10042_vm9, %v9960_v60, %v1785_v52  ;;  %v1587_v9 = vsel %vm10043_vm6, %v10011_v14, %v1467_v53  ;;  %4884 = vmatprep.subr.msk.mxu0 %vm7244_vm11, %v1907_v54  ;;  %vm10044_vm2 = vmmov %vm10043_vm6  ;;  %v10050_v60 = vld [vmem:[#allocation15_spill] sm:$0xff]  ;;  %v10052_v14 = vmov 0  ;;  %v1853_v21 = vpop.permute.xlu0 %1852  ;;  %v1901_v20 = vpop.permute.xlu1 %1900 }
 0x2d3   : > { %v1588_v8 = vsel %vm10044_vm2, %v1467_v53, %v1469_v33  ;;  %4886 = vmatpush2.msk.msra.mxu0 %vm7262_vm1, %v1906_v5  ;;  %vm7414_vm10 = vmneg %vm10046_vm13  ;;  %vm10051_vm9 = vnez %v10050_v60  ;;  %vm10055_vm2 = vcmask 523264   ;;  %vm10056_vm13 = vcmask 1039360  }
 0x2d4   : > { %4920 = vmatprep.subr.msk.mxu1 %vm7211_vm4, %v1588_v8  ;;  %v10048_v19 = vsel %vm7414_vm10, 4294967295, %v10047_v19  ;;  %2382 = vmatmul.mubr.f32.vlgmr.msra.gmra.mxu0 %v6914_v10  ;;  %vm7423_vm6 = vmneg %vm10051_vm9  ;;  %v1957_v29 = vsel %vm10056_vm13, %v7083_v6, %v1901_v20 }
 0x2d5   : > { %10049 = vst [vmem:[#allocation22_spill] sm:$0xff] %v10048_v19  ;;  %4922 = vmatpush1.msk.msra.mxu1 %vm7224_vm5, %v1587_v9  ;;  %v10053_v14 = vsel %vm7423_vm6, 4294967295, %v10052_v14  ;;  %4888 = vmatprep.mubr.msk.f32.mxu0 %vm10055_vm2, %v6924_v27  ;;  %vm10057_vm4 = vmmov %vm10056_vm13 }
 0x2d6   : > { %10054 = vst [vmem:[#allocation20_spill] sm:$0xff] %v10053_v14  ;;  %v2029_v24 = vsel %vm10057_vm4, %v1901_v20, 0.0  ;;  %vm10058_vm9 = vmmov %vm10057_vm4  ;;  %v1869_v3 = vpop.permute.xlu1 %1868  ;;  %v1821_v42 = vpop.permute.xlu0 %1820 }
 0x2d7   : > { %4924 = vmatprep.subr.msk.mxu1 %vm7414_vm10, %v2029_v24  ;;  %v2028_v18 = vsel %vm10058_vm9, %v1885_v7, 0.0  ;;  %vm10059_vm5 = vmmov %vm10057_vm4  ;;  %v1943_v6 = vsel %vm10057_vm4, %v6897_v48, %v1869_v3 }
 0x2d8   : > { %2388 = vmatmul.mubr.f32.gmra.mxu0 %v6940_v57  ;;  %4926 = vmatpush2.msk.msra.mxu1 %vm7423_vm6, %v1957_v29  ;;  %v1950_v38 = vsel %vm10059_vm5, %v6986_v16, %v1885_v7  ;;  %vm10060_vm13 = vmmov %vm10057_vm4 }
 0x2d9   : > { %4928 = vmatprep.subr.msk.mxu1 %vm7414_vm10, %v2028_v18  ;;  %4889 = vmatprep.mubr.msk.f32.mxu0 %vm10055_vm2, %v6946_v15  ;;  %v2027_v22 = vsel %vm10060_vm13, %v1869_v3, 0.0  ;;  %vm10061_vm5 = vmmov %vm10057_vm4 }
 0x2da   : > { %4930 = vmatpush2.msk.msra.mxu1 %vm7423_vm6, %v1950_v38  ;;  %v2026_v16 = vsel %vm10061_vm5, %v1853_v21, 0.0  ;;  %vm10062_vm9 = vmmov %vm10057_vm4  ;;  %v1837_v48 = vpop.permute.xlu1 %1836  ;;  %v1789_v31 = vpop.permute.xlu0 %1788 }
 0x2db   : > { %4932 = vmatprep.subr.msk.mxu1 %vm7414_vm10, %v2027_v22  ;;  %v1936_v25 = vsel %vm10062_vm9, %v6770_v63, %v1853_v21  ;;  %v1929_v17 = vsel %vm10057_vm4, %v7059_v49, %v1837_v48  ;;  %vm10063_vm13 = vmmov %vm10057_vm4 }
 0x2dc   : > { %2394 = vmatmul.mubr.f32.gmra.mxu0 %v6961_v41  ;;  %4934 = vmatpush2.msk.msra.mxu1 %vm7423_vm6, %v1943_v6  ;;  %v2025_v34 = vsel %vm10063_vm13, %v1837_v48, 0.0  ;;  %vm10064_vm5 = vmmov %vm10057_vm4 }
 0x2dd   : > { %4936 = vmatprep.subr.msk.mxu1 %vm7414_vm10, %v2026_v16  ;;  %4890 = vmatprep.mubr.msk.f32.mxu0 %vm10055_vm2, %v6967_v2  ;;  %v2024_v63 = vsel %vm10064_vm5, %v1821_v42, 0.0  ;;  %vm10065_vm9 = vmmov %vm10057_vm4 }
 0x2de   : > { %4938 = vmatpush2.msk.msra.mxu1 %vm7423_vm6, %v1936_v25  ;;  %v1922_v26 = vsel %vm10065_vm9, %v7147_v44, %v1821_v42  ;;  %v1805_v49 = vpop.permute.xlu1 %1804  ;;  %vm10067_vm2 = vmmov %vm10057_vm4  ;;  %vm10071_vm9 = vcmask 523264  }
 0x2df   : > { %4940 = vmatprep.subr.msk.mxu1 %vm7414_vm10, %v2025_v34  ;;  %v1915_v13 = vsel %vm10067_vm2, %v7240_v30, %v1805_v49  ;;  %vm10068_vm4 = vmmov %vm10067_vm2 }
 0x2e0   : > { %2400 = vmatmul.mubr.f32.gmra.mxu0 %v6982_v55  ;;  %4942 = vmatpush2.msk.msra.mxu1 %vm7423_vm6, %v1929_v17  ;;  %v2023_v11 = vsel %vm10068_vm4, %v1805_v49, 0.0  ;;  %vm10069_vm13 = vmmov %vm10067_vm2 }
 0x2e1   : > { %4944 = vmatprep.subr.msk.mxu1 %vm7414_vm10, %v2024_v63  ;;  %3024 = vmatprep.mubr.f32.mxu0 %v10066_v35  ;;  %v2022_v44 = vsel %vm10069_vm13, %v1789_v31, 0.0  ;;  %vm10070_vm5 = vmmov %vm10067_vm2 }
 0x2e2   : > { %4946 = vmatpush2.msk.msra.mxu1 %vm7423_vm6, %v1922_v26  ;;  %v1908_v43 = vsel %vm10070_vm5, %v7331_v40, %v1789_v31  ;;  %vm10072_vm2 = vmmov %vm10071_vm9 }
 0x2e3   : > { %4948 = vmatprep.subr.msk.mxu1 %vm7414_vm10, %v2023_v11  ;;  %vm10073_vm4 = vmmov %vm10072_vm2 }
 0x2e4   : > { %4950 = vmatpush2.msk.msra.mxu1 %vm7423_vm6, %v1915_v13  ;;  %vm10080_vm13 = vmmov %vm10070_vm5 }
 0x2e5   : > { %4952 = vmatprep.subr.msk.mxu1 %vm7414_vm10, %v2022_v44  ;;  %v7504_v30 = vpop.permute.xlu0 %2118 }
 0x2e6   : > { %4954 = vmatpush2.msk.msra.mxu1 %vm7423_vm6, %v1908_v43 }
 0x2e7   : > { %2471 = vmatmul.mubr.f32.vlgmr.msra.gmra.mxu1 %v6914_v10 }
 0x2e8   : > { %4956 = vmatprep.mubr.msk.f32.mxu1 %vm10071_vm9, %v6924_v27  ;;  %vm10083_vm9 = vmmov %vm10070_vm5 }
 0x2ea   : > { %v7508_v40 = vpop.permute.xlu0 %2108 }
 0x2eb   : > { %2477 = vmatmul.mubr.f32.gmra.mxu1 %v6940_v57  ;;  %v7506_v10 = vpop.permute.xlu1 %2123 }
 0x2ec   : > { %4957 = vmatprep.mubr.msk.f32.mxu1 %vm10072_vm2, %v6946_v15  ;;  %vm10084_vm2 = vmmov %vm10070_vm5 }
 0x2ef   : > { %2483 = vmatmul.mubr.f32.gmra.mxu1 %v6961_v41  ;;  %v7514_v58 = vpop.permute.xlu1 %2113 }
 0x2f0   : > { %4958 = vmatprep.mubr.msk.f32.mxu1 %vm10073_vm4, %v6967_v2  ;;  %vm10085_vm4 = vmmov %vm10084_vm2 }
 0x2f3   : > { %2489 = vmatmul.mubr.f32.gmra.mxu1 %v6982_v55 }
 0x2f4   : > { %3137 = vmatprep.mubr.f32.mxu1 %v10066_v35 }
 0x342   : > { %v2205_v27 = vpop.f32.mrf.mxu0 }
 0x343   : > { %v2206_v57 = vadd.f32 %v2205_v27, %v7508_v40 }
 0x344   : > { %v2207_v1 = vpop.f32.mrf.mxu0 }
 0x345   : > { %v7511_v15 = vmax.f32 %v2206_v57, 0.0  ;;  %v2208_v41 = vadd.f32 %v2207_v1, %v7508_v40 }
 0x346   : > { %v2211_v2 = vpop.f32.mrf.mxu0 }
 0x347   : > { %v2212_v55 = vadd.f32 %v2211_v2, %v7514_v58  ;;  %2559 = vrot.lane.b32.xlu1 %v7511_v15, %s5510_s19  ;;  %2719 = vrot.lane.b32.xlu0 %v7511_v15, %s5509_s14  ;;  %v7521_v28 = vmax.f32 %v2208_v41, 0.0 }
 0x348   : > { %v2213_v4 = vpop.f32.mrf.mxu0 }
 0x349   : > { %v7523_v56 = vmax.f32 %v2212_v55, 0.0  ;;  %v2214_v50 = vadd.f32 %v2213_v4, %v7514_v58 }
 0x34a   : > { %v2217_v51 = vpop.f32.mrf.mxu0 }
 0x34b   : > { %2735 = vrot.lane.b32.xlu1 %v7523_v56, %s5509_s14  ;;  %2721 = vrot.lane.b32.xlu0 %v7521_v28, %s5509_s14  ;;  %v7534_v52 = vmax.f32 %v2214_v50, 0.0  ;;  %v2218_v37 = vadd.f32 %v2217_v51, %v7504_v30 }
 0x34c   : > { %v2219_v33 = vpop.f32.mrf.mxu0 }
 0x34d   : > { %v7541_v47 = vmax.f32 %v2218_v37, 0.0  ;;  %v2220_v0 = vadd.f32 %v2219_v33, %v7504_v30 }
 0x34e   : > { %v2223_v59 = vpop.f32.mrf.mxu0 }
 0x34f   : > { %2575 = vrot.lane.b32.xlu1 %v7523_v56, %s5510_s19  ;;  %2561 = vrot.lane.b32.xlu0 %v7521_v28, %s5510_s19  ;;  %v2224_v12 = vadd.f32 %v2223_v59, %v7506_v10  ;;  %v7549_v46 = vmax.f32 %v2220_v0, 0.0 }
 0x350   : > { %v2225_v53 = vpop.f32.mrf.mxu0 }
 0x351   : > { %v7551_v7 = vmax.f32 %v2224_v12, 0.0  ;;  %v2226_v54 = vadd.f32 %v2225_v53, %v7506_v10 }
 0x353   : > { %2737 = vrot.lane.b32.xlu1 %v7534_v52, %s5509_s14  ;;  %2577 = vrot.lane.b32.xlu0 %v7534_v52, %s5510_s19  ;;  %v7562_v5 = vmax.f32 %v2226_v54, 0.0 }
 0x357   : > { %2591 = vrot.lane.b32.xlu1 %v7541_v47, %s5510_s19  ;;  %2751 = vrot.lane.b32.xlu0 %v7541_v47, %s5509_s14 }
 0x35b   : > { %2767 = vrot.lane.b32.xlu1 %v7551_v7, %s5509_s14  ;;  %2753 = vrot.lane.b32.xlu0 %v7549_v46, %s5509_s14 }
 0x35f   : > { %2607 = vrot.lane.b32.xlu1 %v7551_v7, %s5510_s19  ;;  %2593 = vrot.lane.b32.xlu0 %v7549_v46, %s5510_s19 }
 0x363   : > { %2769 = vrot.lane.b32.xlu1 %v7562_v5, %s5509_s14  ;;  %2609 = vrot.lane.b32.xlu0 %v7562_v5, %s5510_s19 }
 0x36a   : > { %v2294_v9 = vpop.f32.mrf.mxu1 }
 0x36b   : > { %v2295_v8 = vadd.f32 %v2294_v9, %v7508_v40 }
 0x36c   : > { %v2296_v45 = vpop.f32.mrf.mxu1 }
 0x36d   : > { %v7569_v60 = vmax.f32 %v2295_v8, 0.0  ;;  %v2297_v21 = vadd.f32 %v2296_v45, %v7508_v40 }
 0x36e   : > { %v2300_v20 = vpop.f32.mrf.mxu1 }
 0x36f   : > { %v2301_v29 = vadd.f32 %v2300_v20, %v7514_v58  ;;  %2723 = vrot.lane.b32.xlu1 %v7569_v60, %s5509_s14  ;;  %v7575_v18 = vmax.f32 %v2297_v21, 0.0 }
 0x370   : > { %v2302_v24 = vpop.f32.mrf.mxu1 }
 0x371   : > { %v7577_v38 = vmax.f32 %v2301_v29, 0.0  ;;  %v2303_v3 = vadd.f32 %v2302_v24, %v7514_v58 }
 0x373   : > { %v2306_v6 = vpop.f32.mrf.mxu1  ;;  %2725 = vrot.lane.b32.xlu1 %v7575_v18, %s5509_s14  ;;  %2739 = vrot.lane.b32.xlu0 %v7577_v38, %s5509_s14  ;;  %v7584_v22 = vmax.f32 %v2303_v3, 0.0 }
 0x374   : > { %v2307_v42 = vadd.f32 %v2306_v6, %v7504_v30 }
 0x375   : > { %v2308_v16 = vpop.f32.mrf.mxu1 }
 0x376   : > { %v2309_v25 = vadd.f32 %v2308_v16, %v7504_v30  ;;  %v7592_v34 = vmax.f32 %v2307_v42, 0.0 }
 0x377   : > { %2741 = vrot.lane.b32.xlu1 %v7584_v22, %s5509_s14 }
 0x378   : > { %v7590_v48 = vmax.f32 %v2309_v25, 0.0  ;;  %v2312_v17 = vpop.f32.mrf.mxu1 }
 0x379   : > { %v2313_v63 = vadd.f32 %v2312_v17, %v7506_v10 }
 0x37a   : > { %v2314_v26 = vpop.f32.mrf.mxu1  ;;  %2597 = vrot.lane.b32.xlu0 %v7590_v48, %s5510_s19 }
 0x37b   : > { %2755 = vrot.lane.b32.xlu1 %v7592_v34, %s5509_s14  ;;  %v7599_v31 = vmax.f32 %v2313_v63, 0.0  ;;  %v2315_v49 = vadd.f32 %v2314_v26, %v7506_v10 }
 0x37d   : > { %v7606_v13 = vmax.f32 %v2315_v49, 0.0 }
 0x37e   : > { %2771 = vrot.lane.b32.xlu0 %v7599_v31, %s5509_s14 }
 0x37f   : > { %2595 = vrot.lane.b32.xlu1 %v7592_v34, %s5510_s19 }
 0x382   : > { %2613 = vrot.lane.b32.xlu0 %v7606_v13, %s5510_s19 }
 0x383   : > { %2757 = vrot.lane.b32.xlu1 %v7590_v48, %s5509_s14 }
 0x387   : > { %2611 = vrot.lane.b32.xlu1 %v7599_v31, %s5510_s19 }
 0x38b   : > { %2773 = vrot.lane.b32.xlu1 %v7606_v13, %s5509_s14 }
 0x38f   : > { %2579 = vrot.lane.b32.xlu1 %v7577_v38, %s5510_s19 }
 0x394   : > { %v2383_v11 = vpop.f32.mrf.mxu0 }
 0x395   : > { %v2384_v44 = vadd.f32 %v2383_v11, %v7508_v40 }
 0x396   : > { %v2385_v43 = vpop.f32.mrf.mxu0 }
 0x397   : > { %v7619_v27 = vmax.f32 %v2384_v44, 0.0  ;;  %v2386_v29 = vadd.f32 %v2385_v43, %v7508_v40 }
 0x398   : > { %v2389_v57 = vpop.f32.mrf.mxu0 }
 0x399   : > { %v2390_v1 = vadd.f32 %v2389_v57, %v7514_v58  ;;  %2727 = vrot.lane.b32.xlu0 %v7619_v27, %s5509_s14  ;;  %v7661_v16 = vmax.f32 %v2386_v29, 0.0 }
 0x39a   : > { %v2391_v41 = vpop.f32.mrf.mxu0 }
 0x39b   : > { %v7624_v2 = vmax.f32 %v2390_v1, 0.0  ;;  %v2392_v8 = vadd.f32 %v2391_v41, %v7514_v58 }
 0x39c   : > { %v2395_v55 = vpop.f32.mrf.mxu0 }
 0x39d   : > { %v2396_v4 = vadd.f32 %v2395_v55, %v7504_v30  ;;  %2743 = vrot.lane.b32.xlu0 %v7624_v2, %s5509_s14  ;;  %v7654_v24 = vmax.f32 %v2392_v8, 0.0 }
 0x39e   : > { %v2397_v51 = vpop.f32.mrf.mxu0 }
 0x39f   : > { %v7629_v50 = vmax.f32 %v2396_v4, 0.0  ;;  %v2398_v33 = vadd.f32 %v2397_v51, %v7504_v30 }
 0x3a0   : > { %v2401_v37 = vpop.f32.mrf.mxu0 }
 0x3a1   : > { %v7632_v59 = vmax.f32 %v2398_v33, 0.0  ;;  %v2402_v0 = vadd.f32 %v2401_v37, %v7506_v10  ;;  %2759 = vrot.lane.b32.xlu0 %v7629_v50, %s5509_s14 }
 0x3a2   : > { %v2403_v12 = vpop.f32.mrf.mxu0 }
 0x3a3   : > { %v7637_v53 = vmax.f32 %v2402_v0, 0.0  ;;  %2761 = vrot.lane.b32.xlu1 %v7632_v59, %s5509_s14  ;;  %v2404_v54 = vadd.f32 %v2403_v12, %v7506_v10 }
 0x3a5   : > { %2775 = vrot.lane.b32.xlu0 %v7637_v53, %s5509_s14  ;;  %v7647_v45 = vmax.f32 %v2404_v54, 0.0 }
 0x3a7   : > { %2563 = vrot.lane.b32.xlu1 %v7569_v60, %s5510_s19  ;;  %v2472_v9 = vpop.f32.mrf.mxu1 }
 0x3a8   : > { %v2473_v44 = vadd.f32 %v2472_v9, %v7508_v40 }
 0x3a9   : > { %2581 = vrot.lane.b32.xlu0 %v7584_v22, %s5510_s19  ;;  %v2474_v21 = vpop.f32.mrf.mxu1 }
 0x3aa   : > { %v7686_v1 = vmax.f32 %v2473_v44, 0.0  ;;  %v2475_v29 = vadd.f32 %v2474_v21, %v7508_v40  ;;  %v2894_v21 = vld [vmem:[%s9542_s7 + $0x38] sm:$0xff] }
 0x3ab   : > { %2777 = vrot.lane.b32.xlu1 %v7647_v45, %s5509_s14  ;;  %v2478_v20 = vpop.f32.mrf.mxu1  ;;  %v2890_v44 = vld [vmem:[%s9542_s7 + $0x18] sm:$0xff] }
 0x3ac   : > { %v2479_v49 = vadd.f32 %v2478_v20, %v7514_v58  ;;  %10076 = vst [vmem:[#allocation48_spill] sm:$0xff] %v7686_v1 }
 0x3ad   : > { %2565 = vrot.lane.b32.xlu0 %v7575_v18, %s5510_s19  ;;  %v2480_v3 = vpop.f32.mrf.mxu1 }
 0x3ae   : > { %v7678_v43 = vmax.f32 %v2479_v49, 0.0  ;;  %v2481_v0 = vadd.f32 %v2480_v3, %v7514_v58 }
 0x3af   : > { %2745 = vrot.lane.b32.xlu1 %v7654_v24, %s5509_s14  ;;  %v2484_v6 = vpop.f32.mrf.mxu1 }
 0x3b0   : > { %v2485_v42 = vadd.f32 %v2484_v6, %v7504_v30  ;;  %10075 = vst [vmem:[#allocation50_spill] sm:$0xff] %v7678_v43  ;;  %v7736_v6 = vmax.f32 %v2475_v29, 0.0  ;;  %v2893_v29 = vld [vmem:[%s9542_s7 + $0x30] sm:$0xff] }
 0x3b1   : > { %v2486_v25 = vpop.f32.mrf.mxu1 }
 0x3b2   : > { %v7663_v17 = vmax.f32 %v2485_v42, 0.0  ;;  %v2487_v58 = vadd.f32 %v2486_v25, %v7504_v30  ;;  %10079 = vst [vmem:[#allocation41_spill] sm:$0xff] %v7736_v6 }
 0x3b3   : > { %2729 = vrot.lane.b32.xlu1 %v7661_v16, %s5509_s14  ;;  %v2490_v63 = vpop.f32.mrf.mxu1 }
 0x3b4   : > { %10074 = vst [vmem:[#allocation55_spill] sm:$0xff] %v7663_v17  ;;  %v2491_v26 = vadd.f32 %v2490_v63, %v7506_v10  ;;  %2763 = vrot.lane.b32.xlu0 %v7663_v17, %s5509_s14  ;;  %v7730_v3 = vmax.f32 %v2487_v58, 0.0  ;;  %v2892_v63 = vld [vmem:[%s9542_s7 + $0x28] sm:$0xff] }
 0x3b5   : > { %v2492_v41 = vpop.f32.mrf.mxu1 }
 0x3b6   : > { %v7671_v11 = vmax.f32 %v2491_v26, 0.0  ;;  %v2493_v51 = vadd.f32 %v2492_v41, %v7506_v10  ;;  %v7712_v10 = vmax.f32 %v2481_v0, 0.0  ;;  %10078 = vst [vmem:[#allocation44_spill] sm:$0xff] %v7730_v3  ;;  %v2888_v0 = vld [vmem:[%s9542_s7 + $0x8] sm:$0xff] }
 0x3b7   : > { %2615 = vrot.lane.b32.xlu1 %v7637_v53, %s5510_s19 }
 0x3b8   : > { %2779 = vrot.lane.b32.xlu0 %v7671_v11, %s5509_s14  ;;  %v7706_v12 = vmax.f32 %v2493_v51, 0.0  ;;  %10077 = vst [vmem:[#allocation46_spill] sm:$0xff] %v7712_v10 }
 0x3b9   : > { %v7682_v57 = vpop.permute.xlu1 %2559  ;;  %v7688_v55 = vpop.permute.xlu0 %2719 }
 0x3bb   : > { %2599 = vrot.lane.b32.xlu1 %v7629_v50, %s5510_s19 }
 0x3bc   : > { %2747 = vrot.lane.b32.xlu0 %v7678_v43, %s5509_s14 }
 0x3bd   : > { %v7692_v4 = vpop.permute.xlu1 %2735  ;;  %v7699_v33 = vpop.permute.xlu0 %2721 }
 0x3bf   : > { %2583 = vrot.lane.b32.xlu1 %v7624_v2, %s5510_s19 }
 0x3c0   : > { %2731 = vrot.lane.b32.xlu0 %v7686_v1, %s5509_s14 }
 0x3c1   : > { %v7701_v37 = vpop.permute.xlu1 %2575  ;;  %v7714_v9 = vpop.permute.xlu0 %2561 }
 0x3c3   : > { %2567 = vrot.lane.b32.xlu1 %v7619_v27, %s5510_s19 }
 0x3c4   : > { %2617 = vrot.lane.b32.xlu0 %v7647_v45, %s5510_s19 }
 0x3c5   : > { %v2738_v54 = vpop.permute.xlu1 %2737  ;;  %v7725_v20 = vpop.permute.xlu0 %2577 }
 0x3c7   : > { %2781 = vrot.lane.b32.xlu1 %v7706_v12, %s5509_s14 }
 0x3c8   : > { %2601 = vrot.lane.b32.xlu0 %v7632_v59, %s5510_s19 }
 0x3c9   : > { %v7721_v8 = vpop.permute.xlu1 %2591  ;;  %v2752_v42 = vpop.permute.xlu0 %2751 }
 0x3cb   : > { %2749 = vrot.lane.b32.xlu1 %v7712_v10, %s5509_s14 }
 0x3cc   : > { %2585 = vrot.lane.b32.xlu0 %v7654_v24, %s5510_s19 }
 0x3cd   : > { %v2768_v30 = vpop.permute.xlu1 %2767  ;;  %v2754_v40 = vpop.permute.xlu0 %2753 }
 0x3cf   : > { %2619 = vrot.lane.b32.xlu1 %v7671_v11, %s5510_s19 }
 0x3d0   : > { %2569 = vrot.lane.b32.xlu0 %v7661_v16, %s5510_s19 }
 0x3d1   : > { %v2608_v25 = vpop.permute.xlu1 %2607  ;;  %v7754_v49 = vpop.permute.xlu0 %2593 }
 0x3d3   : > { %2603 = vrot.lane.b32.xlu1 %v7663_v17, %s5510_s19  ;;  %v2797_v17 = vsel %vm10084_vm2, %v2752_v42, %v2754_v40 }
 0x3d4   : > { %2765 = vrot.lane.b32.xlu0 %v7730_v3, %s5509_s14 }
 0x3d5   : > { %v2770_v26 = vpop.permute.xlu1 %2769  ;;  %v7763_v51 = vpop.permute.xlu0 %2609 }
 0x3d7   : > { %2587 = vrot.lane.b32.xlu1 %v7678_v43, %s5510_s19 }
 0x3d8   : > { %2733 = vrot.lane.b32.xlu0 %v7736_v6, %s5509_s14 }
 0x3db   : > { %2571 = vrot.lane.b32.xlu1 %v7686_v1, %s5510_s19 }
 0x3dc   : > { %2605 = vrot.lane.b32.xlu0 %v7730_v3, %s5510_s19 }
 0x3df   : > { %2932 = vperm.xlu1 %5430, %v2894_v21  }
 0x3e0   : > { %2621 = vrot.lane.b32.xlu0 %v7706_v12, %s5510_s19 }
 0x3e1   : > { %v7761_v41 = vpop.permute.xlu1 %2723 }
 0x3e3   : > { %2922 = vperm.xlu1 %5430, %v2892_v63  }
 0x3e4   : > { %2589 = vrot.lane.b32.xlu0 %v7712_v10, %s5510_s19 }
 0x3e5   : > { %v7770_v58 = vpop.permute.xlu1 %2725  ;;  %v7775_v21 = vpop.permute.xlu0 %2739 }
 0x3e7   : > { %2912 = vperm.xlu1 %5430, %v2890_v44   ;;  %v2891_v44 = vld [vmem:[%s9542_s7 + $0x20] sm:$0xff] }
 0x3e8   : > { %2573 = vrot.lane.b32.xlu0 %v7736_v6, %s5510_s19  ;;  %v2887_v6 = vld [vmem:[%s9542_s7] sm:$0xff] }
 0x3e9   : > { %v7777_v63 = vpop.permute.xlu1 %2741 }
 0x3eb   : > { %2902 = vperm.xlu1 %5430, %v2888_v0  }
 0x3ec   : > { %2927 = vperm.xlu0 %5429, %v2893_v29   ;;  %v7782_v61 = vpop.permute.xlu0 %2597 }
 0x3ed   : > { %v7787_v1 = vpop.permute.xlu1 %2755 }
 0x3f0   : > { %2917 = vperm.xlu0 %5429, %v2891_v44   ;;  %v7789_v0 = vpop.permute.xlu0 %2771  ;;  %v2804_v44 = vsel %vm10070_vm5, %v2768_v30, %v2770_v26  ;;  %v2791_v30 = vsel %vm10085_vm4, %v2738_v54, %v7775_v21  ;;  %vm10087_vm5 = vmmov %vm10084_vm2 }
 0x3f1   : > { %v2805_v29 = vsel %vm10080_vm13, %v2770_v26, %v7789_v0  ;;  %v7806_v3 = vpop.permute.xlu1 %2595  ;;  %vm10086_vm13 = vmmov %vm10084_vm2 }
 0x3f2   : > { %4960 = vmatprep.subr.msk.mxu0 %vm6729_vm14, %v2805_v29  ;;  %v2790_v26 = vsel %vm10086_vm13, %v7692_v4, %v2738_v54  ;;  %v7889_v29 = vld [vmem:[%s9541_s6 + $0x8] sm:$0xff] }
 0x3f3   : > { %4962 = vmatpush1.msk.msra.mxu0 %vm6749_vm12, %v2804_v44 }
 0x3f4   : > { %2907 = vperm.xlu0 %5429, %v2889_v32   ;;  %v2798_v32 = vsel %vm10083_vm9, %v2754_v40, %v7787_v1  ;;  %vm10088_vm9 = vmmov %vm10084_vm2  ;;  %vm10089_vm2 = vcmask 7168  }
 0x3f5   : > { %4964 = vmatprep.subr.msk.mxu0 %vm6729_vm14, %v2798_v32  ;;  %v2758_v4 = vpop.permute.xlu1 %2757  ;;  %vm10090_vm4 = vmmov %vm10089_vm2  ;;  %v7901_v32 = vld [vmem:[%s9541_s6 + $0x10] sm:$0xff] }
 0x3f6   : > { %4966 = vmatpush1.msk.msra.mxu0 %vm6749_vm12, %v2797_v17  ;;  %v2783_v17 = vsel %vm10088_vm9, %v7688_v55, %v7699_v33  ;;  %vm10093_vm13 = vmmov %vm10089_vm2 }
 0x3f7   : > { %4968 = vmatprep.subr.msk.mxu0 %vm6729_vm14, %v2791_v30  ;;  %vm10095_vm9 = vmmov %vm10089_vm2 }
 0x3f8   : > { %2897 = vperm.xlu0 %5429, %v2887_v6   ;;  %4970 = vmatpush1.msk.msra.mxu0 %vm6749_vm12, %v2790_v26  ;;  %v2784_v6 = vsel %vm10087_vm5, %v7699_v33, %v7761_v41  ;;  %v2686_v33 = vsel %vm10090_vm4, 0.0, %v2608_v25  ;;  %vm10094_vm5 = vmmov %vm10089_vm2 }
 0x3f9   : > { %4972 = vmatprep.subr.msk.mxu0 %vm6729_vm14, %v2784_v6  ;;  %v7835_v55 = vpop.permute.xlu1 %2611  ;;  %vm10096_vm4 = vmmov %vm10089_vm2  ;;  %v7911_v6 = vld [vmem:[%s9541_s6 + $0x18] sm:$0xff] }
 0x3fa   : > { %4974 = vmatpush1.msk.msra.mxu0 %vm6749_vm12, %v2783_v17 }
 0x3fb   : > { %2976 = vmatprep.subr.mxu0 %v7562_v5  ;;  %v2644_v5 = vsel %vm10089_vm2, %v2608_v25, %v7763_v51  ;;  %v7873_v25 = vld [vmem:[%s9541_s6] sm:$0xff] }
 0x3fc   : > { %2977 = vmatpush1.msra.mxu0 %v7551_v7 }
 0x3fd   : > { %2978 = vmatprep.subr.mxu0 %v7549_v46  ;;  %v7843_v46 = vpop.permute.xlu0 %2613  ;;  %v2774_v54 = vpop.permute.xlu1 %2773 }
 0x3fe   : > { %2979 = vmatpush1.msra.mxu0 %v7541_v47 }
 0x3ff   : > { %2980 = vmatprep.subr.mxu0 %v7534_v52  ;;  %v2684_v52 = vsel %vm10089_vm2, 0.0, %v7701_v37 }
 0x400   : > { %2981 = vmatpush1.msra.mxu0 %v7523_v56  ;;  %v2630_v56 = vsel %vm10095_vm9, %v7701_v37, %v7725_v20  ;;  %vm10098_vm9 = vcmask 1039360  }
 0x401   : > { %2982 = vmatprep.subr.mxu0 %v7521_v28  ;;  %v2637_v28 = vsel %vm10093_vm13, %v7721_v8, %v7754_v49  ;;  %vm9663_vm13 = vcmask 785408   ;;  %v7891_v44 = vpop.permute.xlu1 %2579 }
 0x402   : > { %2983 = vmatpush1.msra.mxu0 %v7511_v15  ;;  %v2685_v15 = vsel %vm10094_vm5, 0.0, %v7721_v8  ;;  %v2623_v8 = vsel %vm10096_vm4, %v7682_v57, %v7714_v9  ;;  %vm10097_vm5 = vmmov %vm10089_vm2 }
 0x403   : > { %4976 = vmatprep.subr.msk.mxu0 %vm6603_vm0, %v2644_v5  ;;  %v2683_v37 = vsel %vm10097_vm5, 0.0, %v7682_v57  ;;  %vm10099_vm2 = vmmov %vm10098_vm9 }
 0x404   : > { %4978 = vmatpush1.msk.msra.mxu0 %vm6611_vm8, %v2686_v33  ;;  %v2806_v5 = vsel %vm10099_vm2, %v7789_v0, %v2774_v54  ;;  %vm10102_vm4 = vmmov %vm10099_vm2  ;;  %v7934_v0 = vld [vmem:[%s9541_s6 + $0x20] sm:$0xff] }
 0x405   : > { %4980 = vmatprep.subr.msk.mxu0 %vm6603_vm0, %v2637_v28  ;;  %vm10103_vm5 = vmmov %vm10099_vm2 }
 0x406   : > { %4982 = vmatpush1.msk.msra.mxu0 %vm6611_vm8, %v2685_v15 }
 0x407   : > { %4984 = vmatprep.subr.msk.mxu0 %vm6603_vm0, %v2630_v56 }
 0x408   : > { %4986 = vmatpush1.msk.msra.mxu0 %vm6611_vm8, %v2684_v52  ;;  %v2799_v52 = vsel %vm10103_vm5, %v7787_v1, %v2758_v4  ;;  %v2792_v1 = vsel %vm10099_vm2, %v7775_v21, %v7777_v63  ;;  %vm10106_vm5 = vmmov %vm10099_vm2  ;;  %v7964_v21 = vld [vmem:[%s9541_s6 + $0x28] sm:$0xff] }
 0x409   : > { %4988 = vmatprep.subr.msk.mxu0 %vm6603_vm0, %v2623_v8 }
 0x40a   : > { %4990 = vmatpush1.msk.msra.mxu0 %vm6611_vm8, %v2683_v37 }
 0x40b   : > { %v7863_v42 = vpop.permute.xlu0 %2727  ;;  %4991 = vmatmul.mubr.msk.f32.vlgmr.msra.gmra.mxu0 %vm9663_vm13, %v7873_v25 }
 0x40c   : > { %3030 = vmatprep.mubr.f32.mxu0 %v10066_v35 }
 0x40f   : > { %v7883_v40 = vpop.permute.xlu0 %2743  ;;  %4992 = vmatmul.mubr.msk.f32.gmra.mxu0 %vm9663_vm13, %v7889_v29 }
 0x410   : > { %3036 = vmatprep.mubr.f32.mxu0 %v10066_v35 }
 0x413   : > { %v7895_v57 = vpop.permute.xlu0 %2759  ;;  %4993 = vmatmul.mubr.msk.f32.gmra.mxu0 %vm9663_vm13, %v7901_v32 }
 0x414   : > { %3042 = vmatprep.mubr.f32.mxu0 %v10066_v35  ;;  %v2800_v56 = vsel %vm10102_vm4, %v2758_v4, %v7895_v57  ;;  %vm10105_vm4 = vmmov %vm10099_vm2 }
 0x415   : > { %v7903_v30 = vpop.permute.xlu1 %2761  ;;  %v2786_v37 = vsel %vm10105_vm4, %v7770_v58, %v7863_v42 }
 0x417   : > { %v2776_v26 = vpop.permute.xlu0 %2775  ;;  %4994 = vmatmul.mubr.msk.f32.gmra.mxu0 %vm9663_vm13, %v7911_v6 }
 0x418   : > { %v2807_v17 = vsel %vm10098_vm9, %v2774_v54, %v2776_v26  ;;  %3048 = vmatprep.mubr.f32.mxu0 %v10066_v35  ;;  %vm10104_vm9 = vmmov %vm10099_vm2 }
 0x419   : > { %v7916_v33 = vpop.permute.xlu1 %2563  ;;  %5000 = vmatprep.subr.msk.mxu1 %vm7007_vm15, %v2807_v17  ;;  %v2793_v8 = vsel %vm10104_vm9, %v7777_v63, %v7883_v40  ;;  %v2785_v17 = vsel %vm10106_vm5, %v7761_v41, %v7770_v58  ;;  %v7979_v41 = vld [vmem:[%s9541_s6 + $0x30] sm:$0xff]  ;;  %vm10107_vm9 = vcmask 7168  }
 0x41a   : > { %5002 = vmatpush1.msk.msra.mxu1 %vm7013_vm7, %v2806_v5  ;;  %vm10108_vm2 = vmmov %vm10107_vm9 }
 0x41b   : > { %5004 = vmatprep.subr.msk.mxu1 %vm7007_vm15, %v2800_v56  ;;  %v7936_v54 = vpop.permute.xlu0 %2581  ;;  %4995 = vmatmul.mubr.msk.f32.gmra.mxu0 %vm9663_vm13, %v7934_v0 }
 0x41c   : > { %5006 = vmatpush1.msk.msra.mxu1 %vm7013_vm7, %v2799_v52  ;;  %3054 = vmatprep.mubr.f32.mxu0 %v10066_v35 }
 0x41d   : > { %v2778_v4 = vpop.permute.xlu1 %2777  ;;  %5008 = vmatprep.subr.msk.mxu1 %vm7007_vm15, %v2793_v8 }
 0x41e   : > { %5010 = vmatpush1.msk.msra.mxu1 %vm7013_vm7, %v2792_v1 }
 0x41f   : > { %5012 = vmatprep.subr.msk.mxu1 %vm7007_vm15, %v2786_v37  ;;  %v7969_v5 = vpop.permute.xlu0 %2565  ;;  %4996 = vmatmul.mubr.msk.f32.gmra.mxu0 %vm9663_vm13, %v7964_v21 }
 0x420   : > { %5014 = vmatpush1.msk.msra.mxu1 %vm7013_vm7, %v2785_v17  ;;  %3060 = vmatprep.mubr.f32.mxu0 %v10066_v35  ;;  %vm10113_vm7 = vmmov %vm10108_vm2 }
 0x421   : > { %v2746_v63 = vpop.permute.xlu1 %2745  ;;  %3089 = vmatprep.subr.mxu1 %v7606_v13  ;;  %v10111_v13 = vld [vmem:[#allocation70_spill] sm:$0xff]  ;;  %v2632_v8 = vsel %vm10113_vm7, %v7891_v44, %v7936_v54 }
 0x422   : > { %3090 = vmatpush1.msra.mxu1 %v7599_v31  ;;  %vm10112_vm5 = vnez %v10111_v13 }
 0x423   : > { %3091 = vmatprep.subr.mxu1 %v7590_v48  ;;  %4997 = vmatmul.mubr.msk.f32.gmra.mxu0 %vm9663_vm13, %v7979_v41  ;;  %v7993_v48 = vld [vmem:[%s9541_s6 + $0x38] sm:$0xff] }
 0x424   : > { %3092 = vmatpush1.msra.mxu1 %v7592_v34  ;;  %3066 = vmatprep.mubr.f32.mxu0 %v10066_v35 }
 0x425   : > { %v2730_v58 = vpop.permute.xlu1 %2729  ;;  %3093 = vmatprep.subr.mxu1 %v7584_v22  ;;  %v2645_v22 = vsel %vm10108_vm2, %v7763_v51, %v7835_v55 }
 0x426   : > { %3094 = vmatpush1.msra.mxu1 %v7577_v38  ;;  %v7986_v31 = vpop.permute.xlu0 %2763  ;;  %v2646_v38 = vsel %vm10107_vm9, %v7835_v55, %v7843_v46  ;;  %vm10114_vm9 = vmmov %vm10108_vm2  ;;  %vm10115_vm2 = vcmask 1039360  }
 0x427   : > { %3095 = vmatprep.subr.mxu1 %v7575_v18  ;;  %v10109_v18 = vld [vmem:[#allocation69_spill] sm:$0xff]  ;;  %4998 = vmatmul.mubr.msk.f32.gmra.mxu0 %vm9663_vm13, %v7993_v48  ;;  %v2638_v51 = vsel %vm10114_vm9, %v7754_v49, %v7806_v3  ;;  %vm10116_vm15 = vmmov %vm10115_vm2  ;;  %v2801_v1 = vsel %vm10115_vm2, %v7895_v57, %v7903_v30 }
 0x428   : > { %3096 = vmatpush1.msra.mxu1 %v7569_v60  ;;  %vm10110_vm4 = vnez %v10109_v18  ;;  %v2639_v60 = vsel %vm10113_vm7, %v7806_v3, %v7782_v61  ;;  %3250 = vmatprep.mubr.f32.mxu0 %v10066_v35  ;;  %v2808_v52 = vsel %vm10116_vm15, %v2776_v26, %v2778_v4  ;;  %vm10117_vm9 = vmmov %vm10113_vm7 }
 0x429   : > { %v8002_v34 = vpop.permute.xlu1 %2615  ;;  %5016 = vmatprep.subr.msk.mxu1 %vm10110_vm4, %v2646_v38  ;;  %v2631_v3 = vsel %vm10117_vm9, %v7725_v20, %v7891_v44  ;;  %vm10118_vm15 = vmmov %vm10115_vm2  ;;  %v2625_v20 = vsel %vm10113_vm7, %v7916_v33, %v7969_v5 }
 0x42a   : > { %5018 = vmatpush1.msk.msra.mxu1 %vm10112_vm5, %v2645_v22  ;;  %v2780_v56 = vpop.permute.xlu0 %2779  ;;  %v2802_v26 = vsel %vm10118_vm15, %v7903_v30, %v7986_v31  ;;  %vm10119_vm9 = vmmov %vm10113_vm7  ;;  %v2794_v30 = vsel %vm10115_vm2, %v7883_v40, %v2746_v63 }
 0x42b   : > { %5020 = vmatprep.subr.msk.mxu1 %vm10110_vm4, %v2639_v60  ;;  %v2809_v55 = vsel %vm10115_vm2, %v2778_v4, %v2780_v56  ;;  %v2624_v4 = vsel %vm10119_vm9, %v7714_v9, %v7916_v33  ;;  %vm10120_vm15 = vmmov %vm10115_vm2 }
 0x42c   : > { %5022 = vmatpush1.msk.msra.mxu1 %vm10112_vm5, %v2638_v51  ;;  %5040 = vmatprep.subr.msk.mxu0 %vm7244_vm11, %v2809_v55  ;;  %vm10121_vm7 = vmmov %vm10115_vm2 }
 0x42d   : > { %v2600_v49 = vpop.permute.xlu1 %2599  ;;  %5024 = vmatprep.subr.msk.mxu1 %vm10110_vm4, %v2632_v8  ;;  %5042 = vmatpush1.msk.msra.mxu0 %vm7262_vm1, %v2808_v52  ;;  %vm10122_vm9 = vmmov %vm10115_vm2 }
 0x42e   : > { %5026 = vmatpush1.msk.msra.mxu1 %vm10112_vm5, %v2631_v3  ;;  %5044 = vmatprep.subr.msk.mxu0 %vm7244_vm11, %v2802_v26  ;;  %v8048_v44 = vpop.permute.xlu0 %2747  ;;  %v2787_v33 = vsel %vm10122_vm9, %v7863_v42, %v2730_v58  ;;  %v10144_v26 = vld [vmem:[#allocation44_spill] sm:$0xff] }
 0x42f   : > { %5028 = vmatprep.subr.msk.mxu1 %vm10110_vm4, %v2625_v20  ;;  %5046 = vmatpush1.msk.msra.mxu0 %vm7262_vm1, %v2801_v1  ;;  %v2795_v57 = vsel %vm10120_vm15, %v2746_v63, %v8048_v44  ;;  %vm10123_vm15 = vmmov %vm10115_vm2  ;;  %v10145_v1 = vld [vmem:[#allocation55_spill] sm:$0xff] }
 0x430   : > { %5030 = vmatpush1.msk.msra.mxu1 %vm10112_vm5, %v2624_v4  ;;  %5048 = vmatprep.subr.msk.mxu0 %vm7244_vm11, %v2795_v57  ;;  %v10149_v57 = vld [vmem:[#allocation41_spill] sm:$0xff] }
 0x431   : > { %v2584_v37 = vpop.permute.xlu1 %2583  ;;  %5031 = vmatmul.mubr.msk.f32.vlgmr.msra.gmra.mxu1 %vm9663_vm13, %v7873_v25  ;;  %5050 = vmatpush1.msk.msra.mxu0 %vm7262_vm1, %v2794_v30  ;;  %v10151_v30 = vld [vmem:[#allocation48_spill] sm:$0xff] }
 0x432   : > { %v8069_v9 = vpop.permute.xlu0 %2731  ;;  %3143 = vmatprep.mubr.f32.mxu1 %v10066_v35 }
 0x433   : > { %v2788_v40 = vsel %vm10121_vm7, %v2730_v58, %v8069_v9  ;;  %vm10124_vm7 = vcmask 7168  }
 0x434   : > { %5052 = vmatprep.subr.msk.mxu0 %vm7244_vm11, %v2788_v40  ;;  %vm10125_vm9 = vmmov %vm10124_vm7  ;;  %v10154_v40 = vld [vmem:[#allocation27_spill] sm:$0xff] }
 0x435   : > { %v2568_v17 = vpop.permute.xlu1 %2567  ;;  %5032 = vmatmul.mubr.msk.f32.gmra.mxu1 %vm9663_vm13, %v7889_v29  ;;  %5054 = vmatpush1.msk.msra.mxu0 %vm7262_vm1, %v2787_v33 }
 0x436   : > { %3202 = vmatprep.subr.mxu0 %v7647_v45  ;;  %v8083_v63 = vpop.permute.xlu0 %2617  ;;  %3149 = vmatprep.mubr.f32.mxu1 %v10066_v35 }
 0x437   : > { %3203 = vmatpush1.msra.mxu0 %v7637_v53 }
 0x438   : > { %3204 = vmatprep.subr.mxu0 %v7632_v59  ;;  %v2647_v59 = vsel %vm10125_vm9, %v7843_v46, %v8002_v34 }
 0x439   : > { %v2782_v42 = vpop.permute.xlu1 %2781  ;;  %5033 = vmatmul.mubr.msk.f32.gmra.mxu1 %vm9663_vm13, %v7901_v32  ;;  %3205 = vmatpush1.msra.mxu0 %v7629_v50  ;;  %v2648_v50 = vsel %vm10124_vm7, %v8002_v34, %v8083_v63 }
 0x43a   : > { %v2810_v58 = vsel %vm10123_vm15, %v2780_v56, %v2782_v42  ;;  %3206 = vmatprep.subr.mxu0 %v7654_v24  ;;  %v2846_v45 = vsel %vm10115_vm2, %v2782_v42, 0.0  ;;  %v8094_v38 = vpop.permute.xlu0 %2601  ;;  %3155 = vmatprep.mubr.f32.mxu1 %v10066_v35  ;;  %vm10126_vm15 = vnez %v9973_v23  ;;  %vm10127_vm2 = vmmov %vm10124_vm7  ;;  %vm10129_vm7 = vcmask 785408  }
 0x43b   : > { %5080 = vmatprep.subr.msk.mxu1 %vm7414_vm10, %v2846_v45  ;;  %3207 = vmatpush1.msra.mxu0 %v7624_v2  ;;  %vm10130_vm9 = vmmov %vm10127_vm2 }
 0x43c   : > { %5082 = vmatpush1.msk.msra.mxu1 %vm7423_vm6, %v2810_v58  ;;  %3208 = vmatprep.subr.mxu0 %v7661_v16  ;;  %vm10131_vm1 = vmmov %vm10127_vm2 }
 0x43d   : > { %5034 = vmatmul.mubr.msk.f32.gmra.mxu1 %vm9663_vm13, %v7911_v6  ;;  %3209 = vmatpush1.msra.mxu0 %v7619_v27  ;;  %v2641_v27 = vsel %vm10127_vm2, %v2600_v49, %v8094_v38  ;;  %vm10128_vm13 = vmmov %vm10127_vm2  ;;  %v2633_v16 = vsel %vm10131_vm1, %v7936_v54, %v2584_v37  ;;  %v2750_v46 = vpop.permute.xlu1 %2749 }
 0x43e   : > { %5056 = vmatprep.subr.msk.mxu0 %vm7122_vm3, %v2648_v50  ;;  %v8114_v2 = vpop.permute.xlu0 %2585  ;;  %3161 = vmatprep.mubr.f32.mxu1 %v10066_v35  ;;  %v2640_v53 = vsel %vm10128_vm13, %v7782_v61, %v2600_v49  ;;  %vm10132_vm13 = vmmov %vm10131_vm1 }
 0x43f   : > { %5058 = vmatpush1.msk.msra.mxu0 %vm10126_vm15, %v2647_v59  ;;  %v2634_v24 = vsel %vm10130_vm9, %v2584_v37, %v8114_v2  ;;  %vm10133_vm2 = vmmov %vm10131_vm1  ;;  %vm10136_vm9 = vcmask 1039360  }
 0x440   : > { %5060 = vmatprep.subr.msk.mxu0 %vm7122_vm3, %v2641_v27  ;;  %v2626_v34 = vsel %vm10133_vm2, %v7969_v5, %v2568_v17  ;;  %vm10134_vm1 = vmmov %vm10129_vm7 }
 0x441   : > { %5035 = vmatmul.mubr.msk.f32.gmra.mxu1 %vm10129_vm7, %v7934_v0  ;;  %5062 = vmatpush1.msk.msra.mxu0 %vm10126_vm15, %v2640_v53  ;;  %vm10135_vm7 = vmmov %vm10134_vm1  ;;  %v2620_v56 = vpop.permute.xlu1 %2619 }
 0x442   : > { %5064 = vmatprep.subr.msk.mxu0 %vm7122_vm3, %v2634_v24  ;;  %v8135_v61 = vpop.permute.xlu0 %2569  ;;  %3167 = vmatprep.mubr.f32.mxu1 %v10066_v35  ;;  %vm10138_vm2 = vmmov %vm10134_vm1 }
 0x443   : > { %5066 = vmatpush1.msk.msra.mxu0 %vm10126_vm15, %v2633_v16  ;;  %v2627_v22 = vsel %vm10132_vm13, %v2568_v17, %v8135_v61  ;;  %vm10137_vm13 = vmmov %vm10136_vm9  ;;  %v10157_v17 = vld [vmem:[#allocation34_spill] sm:$0xff] }
 0x444   : > { %5068 = vmatprep.subr.msk.mxu0 %vm7122_vm3, %v2627_v22 }
 0x445   : > { %5036 = vmatmul.mubr.msk.f32.gmra.mxu1 %vm10134_vm1, %v7964_v21  ;;  %5070 = vmatpush1.msk.msra.mxu0 %vm10126_vm15, %v2626_v34  ;;  %v2604_v3 = vpop.permute.xlu1 %2603 }
 0x446   : > { %5071 = vmatmul.mubr.msk.f32.vlgmr.msra.gmra.mxu0 %vm10135_vm7, %v7873_v25  ;;  %v2766_v54 = vpop.permute.xlu0 %2765  ;;  %3173 = vmatprep.mubr.f32.mxu1 %v10066_v35  ;;  %vm10139_vm7 = vmmov %vm10136_vm9 }
 0x447   : > { %v2803_v60 = vsel %vm10136_vm9, %v7986_v31, %v2766_v54  ;;  %v2845_v5 = vsel %vm10137_vm13, %v2766_v54, 0.0  ;;  %3256 = vmatprep.mubr.f32.mxu0 %v10066_v35  ;;  %v2844_v51 = vsel %vm10139_vm7, %v2750_v46, 0.0  ;;  %vm10140_vm9 = vmmov %vm10139_vm7 }
 0x448   : > { %5084 = vmatprep.subr.msk.mxu1 %vm7414_vm10, %v2845_v5  ;;  %v2796_v55 = vsel %vm10140_vm9, %v8048_v44, %v2750_v46  ;;  %vm10141_vm13 = vmmov %vm10139_vm7  ;;  %v10147_v44 = vld [vmem:[#allocation46_spill] sm:$0xff] }
 0x449   : > { %5037 = vmatmul.mubr.msk.f32.gmra.mxu1 %vm10138_vm2, %v7979_v41  ;;  %vm10142_vm2 = vmmov %vm10139_vm7  ;;  %v2588_v4 = vpop.permute.xlu1 %2587 }
 0x44a   : > { %5086 = vmatpush1.msk.msra.mxu1 %vm7423_vm6, %v2803_v60  ;;  %5072 = vmatmul.mubr.msk.f32.gmra.mxu0 %vm10134_vm1, %v7889_v29  ;;  %v2734_v31 = vpop.permute.xlu0 %2733  ;;  %vm10143_vm7 = vmmov %vm10134_vm1 }
 0x44b   : > { %5088 = vmatprep.subr.msk.mxu1 %vm7414_vm10, %v2844_v51  ;;  %v2789_v52 = vsel %vm10141_vm13, %v8069_v9, %v2734_v31  ;;  %3179 = vmatprep.mubr.f32.mxu1 %v10066_v35  ;;  %v2843_v8 = vsel %vm10142_vm2, %v2734_v31, 0.0  ;;  %vm10146_vm9 = vmmov %vm10134_vm1  ;;  %vm10150_vm13 = vcmask 7168  }
 0x44c   : > { %5090 = vmatpush1.msk.msra.mxu1 %vm7423_vm6, %v2796_v55  ;;  %3262 = vmatprep.mubr.f32.mxu0 %v10066_v35  ;;  %vm10152_vm2 = vmmov %vm10134_vm1 }
 0x44d   : > { %5038 = vmatmul.mubr.msk.f32.gmra.mxu1 %vm10134_vm1, %v7993_v48  ;;  %5092 = vmatprep.subr.msk.mxu1 %vm7414_vm10, %v2843_v8  ;;  %vm10153_vm1 = vmmov %vm10150_vm13  ;;  %v2572_v58 = vpop.permute.xlu1 %2571 }
 0x44e   : > { %5094 = vmatpush1.msk.msra.mxu1 %vm7423_vm6, %v2789_v52  ;;  %5073 = vmatmul.mubr.msk.f32.gmra.mxu0 %vm10143_vm7, %v7901_v32  ;;  %v2606_v49 = vpop.permute.xlu0 %2605  ;;  %v2649_v9 = vsel %vm10153_vm1, %v8083_v63, %v2620_v56  ;;  %vm10155_vm7 = vnez %v10154_v40  ;;  %vm10158_vm6 = vnez %v10157_v17 }
 0x44f   : > { %3315 = vmatprep.subr.mxu1 %v7706_v12  ;;  %3268 = vmatprep.mubr.f32.mxu0 %v10066_v35  ;;  %v10148_v12 = vld [vmem:[#allocation50_spill] sm:$0xff] }
 0x450   : > { %3316 = vmatpush1.msra.mxu1 %v7671_v11  ;;  %3363 = vmatprep.mubr.f32.mxu1 %v10066_v35 }
 0x451   : > { %3317 = vmatprep.subr.mxu1 %v10144_v26 }
 0x452   : > { %3318 = vmatpush1.msra.mxu1 %v10145_v1  ;;  %5074 = vmatmul.mubr.msk.f32.gmra.mxu0 %vm10146_vm9, %v7911_v6  ;;  %v2622_v20 = vpop.permute.xlu0 %2621  ;;  %vm10156_vm9 = vmmov %vm10153_vm1 }
 0x453   : > { %3319 = vmatprep.subr.mxu1 %v10147_v44  ;;  %3274 = vmatprep.mubr.f32.mxu0 %v10066_v35  ;;  %v2650_v11 = vsel %vm10150_vm13, %v2620_v56, %v2622_v20  ;;  %v2643_v33 = vsel %vm10156_vm9, %v2604_v3, %v2606_v49  ;;  %vm10159_vm13 = vmmov %vm10153_vm1 }
 0x454   : > { %3320 = vmatpush1.msra.mxu1 %v10148_v12  ;;  %v2642_v42 = vsel %vm10159_vm13, %v8094_v38, %v2604_v3 }
 0x455   : > { %3321 = vmatprep.subr.mxu1 %v10149_v57 }
 0x456   : > { %3322 = vmatpush1.msra.mxu1 %v10151_v30  ;;  %5075 = vmatmul.mubr.msk.f32.gmra.mxu0 %vm10152_vm2, %v7934_v0  ;;  %v2590_v37 = vpop.permute.xlu0 %2589  ;;  %vm10160_vm2 = vmmov %vm10153_vm1  ;;  %vm10161_vm1 = vcmask 785408  }
 0x457   : > { %5096 = vmatprep.subr.msk.mxu1 %vm10155_vm7, %v2650_v11  ;;  %3280 = vmatprep.mubr.f32.mxu0 %v10066_v35  ;;  %v2636_v45 = vsel %vm10160_vm2, %v2588_v4, %v2590_v37  ;;  %vm10162_vm9 = vmmov %vm10160_vm2  ;;  %v2628_v59 = vsel %vm10160_vm2, %v8135_v61, %v2572_v58 }
 0x458   : > { %5098 = vmatpush1.msk.msra.mxu1 %vm10158_vm6, %v2649_v9  ;;  %v2635_v50 = vsel %vm10162_vm9, %v8114_v2, %v2588_v4  ;;  %vm10163_vm13 = vmmov %vm10160_vm2 }
 0x459   : > { %5100 = vmatprep.subr.msk.mxu1 %vm10155_vm7, %v2643_v33  ;;  %vm10164_vm9 = vmmov %vm10161_vm1 }
 0x45a   : > { %5102 = vmatpush1.msk.msra.mxu1 %vm10158_vm6, %v2642_v42  ;;  %5076 = vmatmul.mubr.msk.f32.gmra.mxu0 %vm10161_vm1, %v7964_v21  ;;  %v2574_v63 = vpop.permute.xlu0 %2573  ;;  %vm10166_vm2 = vmmov %vm10161_vm1 }
 0x45b   : > { %5104 = vmatprep.subr.msk.mxu1 %vm10155_vm7, %v2636_v45  ;;  %v2629_v38 = vsel %vm10163_vm13, %v2572_v58, %v2574_v63  ;;  %3286 = vmatprep.mubr.f32.mxu0 %v10066_v35  ;;  %vm10165_vm13 = vmmov %vm10161_vm1 }
 0x45c   : > { %5106 = vmatpush1.msk.msra.mxu1 %vm10158_vm6, %v2635_v50  ;;  %vm10167_vm10 = vmmov %vm10161_vm1 }
 0x45d   : > { %5108 = vmatprep.subr.msk.mxu1 %vm10155_vm7, %v2629_v38 }
 0x45e   : > { %5110 = vmatpush1.msk.msra.mxu1 %vm10158_vm6, %v2628_v59  ;;  %5077 = vmatmul.mubr.msk.f32.gmra.mxu0 %vm10161_vm1, %v7979_v41 }
 0x45f   : > { %5111 = vmatmul.mubr.msk.f32.vlgmr.msra.gmra.mxu1 %vm10164_vm9, %v7873_v25  ;;  %3292 = vmatprep.mubr.f32.mxu0 %v10066_v35  ;;  %vm10168_vm9 = vmmov %vm10161_vm1 }
 0x460   : > { %3369 = vmatprep.mubr.f32.mxu1 %v10066_v35 }
 0x462   : > { %5078 = vmatmul.mubr.msk.f32.gmra.mxu0 %vm10165_vm13, %v7993_v48  ;;  %vm10169_vm13 = vmmov %vm10161_vm1 }
 0x463   : > { %5112 = vmatmul.mubr.msk.f32.gmra.mxu1 %vm10166_vm2, %v7889_v29  ;;  %vm10170_vm2 = vmmov %vm10161_vm1  ;;  %v8262_v29 = vpop.permute.xlu1 %2932 }
 0x464   : > { %3375 = vmatprep.mubr.f32.mxu1 %v10066_v35 }
 0x467   : > { %5113 = vmatmul.mubr.msk.f32.gmra.mxu1 %vm10167_vm10, %v7901_v32  ;;  %vm10171_vm10 = vmmov %vm10161_vm1  ;;  %v8260_v25 = vpop.permute.xlu0 %2927 }
 0x468   : > { %3381 = vmatprep.mubr.f32.mxu1 %v10066_v35 }
 0x46b   : > { %5114 = vmatmul.mubr.msk.f32.gmra.mxu1 %vm10161_vm1, %v7911_v6  ;;  %v8264_v32 = vpop.permute.xlu0 %2917  ;;  %v8266_v6 = vpop.permute.xlu1 %2922  ;;  %vm10184_vm1 = vcmask 523264  }
 0x46c   : > { %3387 = vmatprep.mubr.f32.mxu1 %v10066_v35 }
 0x46f   : > { %5115 = vmatmul.mubr.msk.f32.gmra.mxu1 %vm10168_vm9, %v7934_v0  ;;  %v8268_v0 = vpop.permute.xlu0 %2907  ;;  %vm10185_vm9 = vmmov %vm10184_vm1 }
 0x470   : > { %3393 = vmatprep.mubr.f32.mxu1 %v10066_v35 }
 0x473   : > { %5116 = vmatmul.mubr.msk.f32.gmra.mxu1 %vm10169_vm13, %v7964_v21  ;;  %v8270_v21 = vpop.permute.xlu1 %2912  ;;  %v8272_v2 = vpop.permute.xlu0 %2897  ;;  %vm10195_vm13 = vcmask 7168  }
 0x474   : > { %3399 = vmatprep.mubr.f32.mxu1 %v10066_v35 }
 0x477   : > { %5117 = vmatmul.mubr.msk.f32.gmra.mxu1 %vm10170_vm2, %v7979_v41  ;;  %v8278_v24 = vpop.permute.xlu1 %2902  ;;  %vm10196_vm2 = vmmov %vm10195_vm13 }
 0x478   : > { %3405 = vmatprep.mubr.f32.mxu1 %v10066_v35 }
 0x47b   : > { %5118 = vmatmul.mubr.msk.f32.gmra.mxu1 %vm10171_vm10, %v7993_v48  ;;  %vm10197_vm10 = vmmov %vm10196_vm2 }
 0x4cb   : > { %v3026_v41 = vpop.f32.mrf.mxu0 }
 0x4cc   : > { %v3027_v35 = vadd.f32 %v3026_v41, %v8272_v2 }
 0x4cd   : > { %v3028_v27 = vpop.f32.mrf.mxu0 }
 0x4ce   : > { %v8275_v53 = vmax.f32 %v3027_v35, 0.0  ;;  %v3029_v48 = vadd.f32 %v3028_v27, %v8272_v2 }
 0x4cf   : > { %v3032_v16 = vpop.f32.mrf.mxu0 }
 0x4d0   : > { %v3033_v46 = vadd.f32 %v3032_v16, %v8278_v24  ;;  %3860 = vrot.lane.b32.xlu0 %v8275_v53, %s5509_s14  ;;  %3540 = vrot.lane.b32.xlu1 %v8275_v53, %s5510_s19  ;;  %v8285_v22 = vmax.f32 %v3029_v48, 0.0 }
 0x4d1   : > { %v3034_v61 = vpop.f32.mrf.mxu0 }
 0x4d2   : > { %v8287_v34 = vmax.f32 %v3033_v46, 0.0  ;;  %v3035_v5 = vadd.f32 %v3034_v61, %v8278_v24 }
 0x4d3   : > { %v3038_v54 = vpop.f32.mrf.mxu0 }
 0x4d4   : > { %3542 = vrot.lane.b32.xlu0 %v8285_v22, %s5510_s19  ;;  %3556 = vrot.lane.b32.xlu1 %v8287_v34, %s5510_s19  ;;  %v8298_v31 = vmax.f32 %v3035_v5, 0.0  ;;  %v3039_v55 = vadd.f32 %v3038_v54, %v8268_v0 }
 0x4d5   : > { %v3040_v60 = vpop.f32.mrf.mxu0 }
 0x4d6   : > { %v3428_v3 = vmax.f32 %v3039_v55, 0.0  ;;  %v3041_v49 = vadd.f32 %v3040_v60, %v8268_v0 }
 0x4d7   : > { %v3044_v56 = vpop.f32.mrf.mxu0 }
 0x4d8   : > { %3862 = vrot.lane.b32.xlu0 %v8285_v22, %s5509_s14  ;;  %3876 = vrot.lane.b32.xlu1 %v8287_v34, %s5509_s14  ;;  %v3045_v26 = vadd.f32 %v3044_v56, %v8270_v21  ;;  %v3429_v44 = vmax.f32 %v3041_v49, 0.0 }
 0x4d9   : > { %v3046_v51 = vpop.f32.mrf.mxu0 }
 0x4da   : > { %v3436_v4 = vmax.f32 %v3045_v26, 0.0  ;;  %v3047_v11 = vadd.f32 %v3046_v51, %v8270_v21 }
 0x4db   : > { %v3050_v52 = vpop.f32.mrf.mxu0 }
 0x4dc   : > { %3558 = vrot.lane.b32.xlu0 %v8298_v31, %s5510_s19  ;;  %3878 = vrot.lane.b32.xlu1 %v8298_v31, %s5509_s14  ;;  %v3437_v33 = vmax.f32 %v3047_v11, 0.0  ;;  %v3051_v42 = vadd.f32 %v3050_v52, %v8264_v32 }
 0x4dd   : > { %v3052_v8 = vpop.f32.mrf.mxu0 }
 0x4de   : > { %v3444_v35 = vmax.f32 %v3051_v42, 0.0  ;;  %v3053_v27 = vadd.f32 %v3052_v8, %v8264_v32 }
 0x4df   : > { %v3056_v1 = vpop.f32.mrf.mxu0 }
 0x4e0   : > { %3892 = vrot.lane.b32.xlu0 %v3428_v3, %s5509_s14  ;;  %3572 = vrot.lane.b32.xlu1 %v3428_v3, %s5510_s19  ;;  %v3057_v59 = vadd.f32 %v3056_v1, %v8266_v6  ;;  %v3445_v5 = vmax.f32 %v3053_v27, 0.0 }
 0x4e1   : > { %v3058_v20 = vpop.f32.mrf.mxu0 }
 0x4e2   : > { %v3059_v50 = vadd.f32 %v3058_v20, %v8266_v6  ;;  %v3452_v60 = vmax.f32 %v3057_v59, 0.0 }
 0x4e3   : > { %v3062_v12 = vpop.f32.mrf.mxu0 }
 0x4e4   : > { %3574 = vrot.lane.b32.xlu0 %v3429_v44, %s5510_s19  ;;  %3588 = vrot.lane.b32.xlu1 %v3436_v4, %s5510_s19  ;;  %v3063_v63 = vadd.f32 %v3062_v12, %v8260_v25  ;;  %v3453_v61 = vmax.f32 %v3059_v50, 0.0 }
 0x4e5   : > { %v3064_v57 = vpop.f32.mrf.mxu0 }
 0x4e6   : > { %v3065_v58 = vadd.f32 %v3064_v57, %v8260_v25  ;;  %v3460_v46 = vmax.f32 %v3063_v63, 0.0 }
 0x4e7   : > { %v3068_v30 = vpop.f32.mrf.mxu0 }
 0x4e8   : > { %3894 = vrot.lane.b32.xlu0 %v3429_v44, %s5509_s14  ;;  %3908 = vrot.lane.b32.xlu1 %v3436_v4, %s5509_s14  ;;  %v3069_v37 = vadd.f32 %v3068_v30, %v8262_v29  ;;  %v3461_v48 = vmax.f32 %v3065_v58, 0.0 }
 0x4e9   : > { %v3070_v9 = vpop.f32.mrf.mxu0 }
 0x4ea   : > { %v3071_v45 = vadd.f32 %v3070_v9, %v8262_v29  ;;  %v3468_v41 = vmax.f32 %v3069_v37, 0.0 }
 0x4ec   : > { %v8320_v38 = vmax.f32 %v3071_v45, 0.0  ;;  %3590 = vrot.lane.b32.xlu0 %v3437_v33, %s5510_s19  ;;  %3910 = vrot.lane.b32.xlu1 %v3437_v33, %s5509_s14 }
 0x4ee   : > { %4203 = vmatprep.subr.mxu0 %v8320_v38 }
 0x4ef   : > { %4204 = vmatpush1.msra.mxu0 %v3468_v41 }
 0x4f0   : > { %4205 = vmatprep.subr.mxu0 %v3461_v48  ;;  %3924 = vrot.lane.b32.xlu0 %v3444_v35, %s5509_s14 }
 0x4f1   : > { %v3139_v16 = vpop.f32.mrf.mxu1  ;;  %3604 = vrot.lane.b32.xlu1 %v3444_v35, %s5510_s19  ;;  %4206 = vmatpush1.msra.mxu0 %v3460_v46 }
 0x4f2   : > { %4207 = vmatprep.subr.mxu0 %v3453_v61 }
 0x4f3   : > { %v3141_v54 = vpop.f32.mrf.mxu1  ;;  %4208 = vmatpush1.msra.mxu0 %v3452_v60 }
 0x4f4   : > { %4209 = vmatprep.subr.mxu0 %v3445_v5  ;;  %3606 = vrot.lane.b32.xlu0 %v3445_v5, %s5510_s19 }
 0x4f5   : > { %v3145_v56 = vpop.f32.mrf.mxu1  ;;  %3620 = vrot.lane.b32.xlu1 %v3452_v60, %s5510_s19  ;;  %4210 = vmatpush1.msra.mxu0 %v3444_v35 }
 0x4f6   : > { %4211 = vmatprep.subr.mxu0 %v3437_v33 }
 0x4f7   : > { %v8329_v51 = vpop.f32.mrf.mxu1  ;;  %4212 = vmatpush1.msra.mxu0 %v3436_v4 }
 0x4f8   : > { %4213 = vmatprep.subr.mxu0 %v3429_v44  ;;  %3926 = vrot.lane.b32.xlu0 %v3445_v5, %s5509_s14  ;;  %v3140_v44 = vadd.f32 %v3139_v16, %v8272_v2 }
 0x4f9   : > { %v8333_v55 = vpop.f32.mrf.mxu1  ;;  %3940 = vrot.lane.b32.xlu1 %v3452_v60, %s5509_s14  ;;  %4214 = vmatpush1.msra.mxu0 %v3428_v3  ;;  %v3148_v60 = vadd.f32 %v8329_v51, %v8278_v24 }
 0x4fa   : > { %4215 = vmatprep.subr.mxu0 %v8298_v31  ;;  %v3414_v9 = vmax.f32 %v3140_v44, 0.0  ;;  %v3152_v5 = vadd.f32 %v8333_v55, %v8268_v0 }
 0x4fb   : > { %v3153_v52 = vpop.f32.mrf.mxu1  ;;  %4216 = vmatpush1.msra.mxu0 %v8287_v34 }
 0x4fc   : > { %4217 = vmatprep.subr.mxu0 %v8285_v22  ;;  %3622 = vrot.lane.b32.xlu0 %v3453_v61, %s5510_s19 }
 0x4fd   : > { %v3157_v8 = vpop.f32.mrf.mxu1  ;;  %3942 = vrot.lane.b32.xlu1 %v3453_v61, %s5509_s14  ;;  %4218 = vmatpush1.msra.mxu0 %v8275_v53  ;;  %v3142_v53 = vadd.f32 %v3141_v54, %v8272_v2 }
 0x4ff   : > { %v3159_v49 = vpop.f32.mrf.mxu1  ;;  %v3415_v30 = vmax.f32 %v3142_v53, 0.0 }
 0x500   : > { %3956 = vrot.lane.b32.xlu0 %v3460_v46, %s5509_s14  ;;  %v3160_v35 = vadd.f32 %v3159_v49, %v8270_v21 }
 0x501   : > { %v3163_v26 = vpop.f32.mrf.mxu1  ;;  %3636 = vrot.lane.b32.xlu1 %v3460_v46, %s5510_s19  ;;  %v3154_v46 = vadd.f32 %v3153_v52, %v8268_v0 }
 0x502   : > { %v3164_v59 = vadd.f32 %v3163_v26, %v8264_v32  ;;  %v3423_v26 = vmax.f32 %v3148_v60, 0.0 }
 0x503   : > { %v3165_v1 = vpop.f32.mrf.mxu1  ;;  %v3431_v52 = vmax.f32 %v3154_v46, 0.0 }
 0x504   : > { %3638 = vrot.lane.b32.xlu0 %v3461_v48, %s5510_s19  ;;  %v3166_v63 = vadd.f32 %v3165_v1, %v8264_v32  ;;  %v3430_v1 = vmax.f32 %v3152_v5, 0.0 }
 0x505   : > { %v3169_v3 = vpop.f32.mrf.mxu1  ;;  %3652 = vrot.lane.b32.xlu1 %v3468_v41, %s5510_s19 }
 0x506   : > { %v3170_v58 = vadd.f32 %v3169_v3, %v8266_v6  ;;  %v3447_v61 = vmax.f32 %v3166_v63, 0.0  ;;  %v3252_v51 = vpop.f32.mrf.mxu0 }
 0x507   : > { %v3171_v20 = vpop.f32.mrf.mxu1 }
 0x508   : > { %3958 = vrot.lane.b32.xlu0 %v3461_v48, %s5509_s14  ;;  %v3172_v33 = vadd.f32 %v3171_v20, %v8266_v6  ;;  %v3158_v48 = vadd.f32 %v3157_v8, %v8270_v21  ;;  %v8381_v16 = vmax.f32 %v3170_v58, 0.0  ;;  %v3439_v8 = vmax.f32 %v3160_v35, 0.0  ;;  %v3254_v55 = vpop.f32.mrf.mxu0 }
 0x509   : > { %v3175_v34 = vpop.f32.mrf.mxu1  ;;  %3972 = vrot.lane.b32.xlu1 %v3468_v41, %s5509_s14  ;;  %v3255_v3 = vadd.f32 %v3254_v55, %v8272_v2  ;;  %v3253_v20 = vadd.f32 %v3252_v51, %v8272_v2 }
 0x50a   : > { %v3176_v37 = vadd.f32 %v3175_v34, %v8260_v25  ;;  %v8377_v27 = vmax.f32 %v3172_v33, 0.0  ;;  %v3438_v49 = vmax.f32 %v3158_v48, 0.0  ;;  %v3258_v53 = vpop.f32.mrf.mxu0 }
 0x50b   : > { %v3177_v22 = vpop.f32.mrf.mxu1  ;;  %v8407_v34 = vmax.f32 %v3255_v3, 0.0 }
 0x50c   : > { %3654 = vrot.lane.b32.xlu0 %v8320_v38, %s5510_s19  ;;  %v3178_v57 = vadd.f32 %v3177_v22, %v8260_v25  ;;  %v8373_v41 = vmax.f32 %v3176_v37, 0.0  ;;  %v8409_v22 = vmax.f32 %v3253_v20, 0.0 }
 0x50d   : > { %v3181_v31 = vpop.f32.mrf.mxu1  ;;  %3974 = vrot.lane.b32.xlu1 %v8320_v38, %s5509_s14  ;;  %v3146_v38 = vadd.f32 %v3145_v56, %v8278_v24  ;;  %v3446_v56 = vmax.f32 %v3164_v59, 0.0 }
 0x50e   : > { %v3182_v4 = vadd.f32 %v3181_v31, %v8262_v29  ;;  %v8367_v50 = vmax.f32 %v3178_v57, 0.0  ;;  %10172 = vst [vmem:[#allocation40_spill] sm:$0xff] %v8409_v22  ;;  %v3259_v31 = vadd.f32 %v3258_v53, %v8278_v24 }
 0x50f   : > { %v3183_v12 = vpop.f32.mrf.mxu1  ;;  %v3422_v54 = vmax.f32 %v3146_v38, 0.0 }
 0x510   : > { %v3184_v11 = vadd.f32 %v3183_v12, %v8262_v29  ;;  %v8363_v45 = vmax.f32 %v3182_v4, 0.0  ;;  %3546 = vrot.lane.b32.xlu0 %v3415_v30, %s5510_s19  ;;  %v8421_v44 = vmax.f32 %v3259_v31, 0.0  ;;  %v3260_v4 = vpop.f32.mrf.mxu0  ;;  %v10182_v31 = vld [vmem:[#allocation7_spill] sm:$0xff] }
 0x511   : > { %3544 = vrot.lane.b32.xlu1 %v3414_v9, %s5510_s19  ;;  %v3261_v12 = vadd.f32 %v3260_v4, %v8278_v24 }
 0x512   : > { %v8360_v42 = vmax.f32 %v3184_v11, 0.0  ;;  %10173 = vst [vmem:[#allocation35_spill] sm:$0xff] %v8421_v44  ;;  %v3264_v57 = vpop.f32.mrf.mxu0 }
 0x513   : > { %v8431_v11 = vmax.f32 %v3261_v12, 0.0  ;;  %v3265_v38 = vadd.f32 %v3264_v57, %v8268_v0 }
 0x514   : > { %4274 = vmatprep.subr.mxu1 %v8360_v42  ;;  %3866 = vrot.lane.b32.xlu0 %v3415_v30, %s5509_s14 }
 0x515   : > { %4275 = vmatpush1.msra.mxu1 %v8363_v45  ;;  %3864 = vrot.lane.b32.xlu1 %v3414_v9, %s5509_s14 }
 0x516   : > { %4276 = vmatprep.subr.mxu1 %v8367_v50 }
 0x517   : > { %4277 = vmatpush1.msra.mxu1 %v8373_v41 }
 0x518   : > { %4278 = vmatprep.subr.mxu1 %v8377_v27  ;;  %3880 = vrot.lane.b32.xlu0 %v3422_v54, %s5509_s14 }
 0x519   : > { %4279 = vmatpush1.msra.mxu1 %v8381_v16  ;;  %3560 = vrot.lane.b32.xlu1 %v3422_v54, %s5510_s19 }
 0x51a   : > { %4280 = vmatprep.subr.mxu1 %v3447_v61 }
 0x51b   : > { %4281 = vmatpush1.msra.mxu1 %v3446_v56 }
 0x51c   : > { %4282 = vmatprep.subr.mxu1 %v3439_v8  ;;  %3562 = vrot.lane.b32.xlu0 %v3423_v26, %s5510_s19 }
 0x51d   : > { %4283 = vmatpush1.msra.mxu1 %v3438_v49  ;;  %3882 = vrot.lane.b32.xlu1 %v3423_v26, %s5509_s14 }
 0x51e   : > { %4284 = vmatprep.subr.mxu1 %v3431_v52 }
 0x51f   : > { %4285 = vmatpush1.msra.mxu1 %v3430_v1 }
 0x520   : > { %4286 = vmatprep.subr.mxu1 %v3423_v26  ;;  %3578 = vrot.lane.b32.xlu0 %v3431_v52, %s5510_s19 }
 0x521   : > { %4287 = vmatpush1.msra.mxu1 %v3422_v54  ;;  %3576 = vrot.lane.b32.xlu1 %v3430_v1, %s5510_s19 }
 0x522   : > { %4288 = vmatprep.subr.mxu1 %v3415_v30 }
 0x523   : > { %4289 = vmatpush1.msra.mxu1 %v3414_v9  ;;  %v3266_v9 = vpop.f32.mrf.mxu0 }
 0x524   : > { %3898 = vrot.lane.b32.xlu0 %v3431_v52, %s5509_s14  ;;  %v3267_v33 = vadd.f32 %v3266_v9, %v8268_v0 }
 0x525   : > { %3896 = vrot.lane.b32.xlu1 %v3430_v1, %s5509_s14  ;;  %v3270_v54 = vpop.f32.mrf.mxu0 }
 0x526   : > { %v8451_v59 = vmax.f32 %v3267_v33, 0.0 }
 0x528   : > { %3912 = vrot.lane.b32.xlu0 %v3438_v49, %s5509_s14 }
 0x529   : > { %3592 = vrot.lane.b32.xlu1 %v3438_v49, %s5510_s19 }
 0x52c   : > { %3594 = vrot.lane.b32.xlu0 %v3439_v8, %s5510_s19 }
 0x52d   : > { %3914 = vrot.lane.b32.xlu1 %v3439_v8, %s5509_s14 }
 0x530   : > { %3550 = vrot.lane.b32.xlu0 %v8407_v34, %s5510_s19 }
 0x531   : > { %3868 = vrot.lane.b32.xlu1 %v8409_v22, %s5509_s14 }
 0x534   : > { %3610 = vrot.lane.b32.xlu0 %v3447_v61, %s5510_s19 }
 0x535   : > { %3548 = vrot.lane.b32.xlu1 %v8409_v22, %s5510_s19 }
 0x538   : > { %3930 = vrot.lane.b32.xlu0 %v3447_v61, %s5509_s14 }
 0x539   : > { %3608 = vrot.lane.b32.xlu1 %v3446_v56, %s5510_s19 }
 0x53c   : > { %3884 = vrot.lane.b32.xlu0 %v8421_v44, %s5509_s14 }
 0x53d   : > { %3928 = vrot.lane.b32.xlu1 %v3446_v56, %s5509_s14  ;;  %v3272_v56 = vpop.f32.mrf.mxu0 }
 0x53e   : > { %v3273_v1 = vadd.f32 %v3272_v56, %v8270_v21 }
 0x53f   : > { %v3276_v26 = vpop.f32.mrf.mxu0 }
 0x540   : > { %3944 = vrot.lane.b32.xlu0 %v8381_v16, %s5509_s14  ;;  %v8499_v3 = vmax.f32 %v3273_v1, 0.0  ;;  %v3277_v33 = vadd.f32 %v3276_v26, %v8264_v32 }
 0x541   : > { %3564 = vrot.lane.b32.xlu1 %v8421_v44, %s5510_s19  ;;  %v3278_v55 = vpop.f32.mrf.mxu0 }
 0x542   : > { %v8433_v30 = vpop.permute.xlu0 %3860  ;;  %v8435_v37 = vpop.permute.xlu1 %3540  ;;  %v3279_v12 = vadd.f32 %v3278_v55, %v8264_v32  ;;  %v8537_v1 = vmax.f32 %v3277_v33, 0.0 }
 0x543   : > { %10174 = vst [vmem:[#allocation32_spill] sm:$0xff] %v8433_v30  ;;  %v3282_v57 = vpop.f32.mrf.mxu0 }
 0x544   : > { %3566 = vrot.lane.b32.xlu0 %v8431_v11, %s5510_s19  ;;  %10186 = vst [vmem:[#allocation56_spill] sm:$0xff] %v8537_v1 }
 0x545   : > { %3624 = vrot.lane.b32.xlu1 %v8381_v16, %s5510_s19  ;;  %v8457_v16 = vmax.f32 %v3265_v38, 0.0  ;;  %v3365_v38 = vpop.f32.mrf.mxu1 }
 0x546   : > { %v8442_v58 = vpop.permute.xlu0 %3542  ;;  %v8444_v63 = vpop.permute.xlu1 %3556 }
 0x547   : > { %10175 = vst [vmem:[#allocation30_spill] sm:$0xff] %v8442_v58  ;;  %10178 = vst [vmem:[#allocation21_spill] sm:$0xff] %v8457_v16  ;;  %v3367_v55 = vpop.f32.mrf.mxu1 }
 0x548   : > { %3626 = vrot.lane.b32.xlu0 %v8377_v27, %s5510_s19 }
 0x549   : > { %3946 = vrot.lane.b32.xlu1 %v8377_v27, %s5509_s14  ;;  %v3271_v27 = vadd.f32 %v3270_v54, %v8270_v21  ;;  %v3371_v33 = vpop.f32.mrf.mxu1 }
 0x54a   : > { %v8453_v35 = vpop.permute.xlu0 %3862  ;;  %v8455_v48 = vpop.permute.xlu1 %3876  ;;  %v3372_v36 = vadd.f32 %v3371_v33, %v8278_v24 }
 0x54b   : > { %10176 = vst [vmem:[#allocation29_spill] sm:$0xff] %v8453_v35  ;;  %10177 = vst [vmem:[#allocation26_spill] sm:$0xff] %v8455_v48  ;;  %v8480_v8 = vmax.f32 %v3271_v27, 0.0  ;;  %v3283_v27 = vadd.f32 %v3282_v57, %v8266_v6  ;;  %v3366_v57 = vadd.f32 %v3365_v38, %v8272_v2  ;;  %v3373_v39 = vpop.f32.mrf.mxu1 }
 0x54c   : > { %3582 = vrot.lane.b32.xlu0 %v8451_v59, %s5510_s19  ;;  %v8585_v44 = vmax.f32 %v3372_v36, 0.0 }
 0x54d   : > { %3900 = vrot.lane.b32.xlu1 %v8457_v16, %s5509_s14  ;;  %10180 = vst [vmem:[#allocation10_spill] sm:$0xff] %v8480_v8  ;;  %v8545_v26 = vmax.f32 %v3283_v27, 0.0 }
 0x54e   : > { %v8463_v46 = vpop.permute.xlu0 %3558  ;;  %v8465_v61 = vpop.permute.xlu1 %3878  ;;  %10192 = vst [vmem:[#allocation28_spill] sm:$0xff] %v8585_v44 }
 0x54f   : > { %10179 = vst [vmem:[#allocation19_spill] sm:$0xff] %v8465_v61  ;;  %10187 = vst [vmem:[#allocation51_spill] sm:$0xff] %v8545_v26 }
 0x550   : > { %3642 = vrot.lane.b32.xlu0 %v8367_v50, %s5510_s19 }
 0x551   : > { %3580 = vrot.lane.b32.xlu1 %v8457_v16, %s5510_s19 }
 0x552   : > { %v8472_v60 = vpop.permute.xlu0 %3892  ;;  %v8474_v5 = vpop.permute.xlu1 %3572 }
 0x554   : > { %3962 = vrot.lane.b32.xlu0 %v8367_v50, %s5509_s14 }
 0x555   : > { %3640 = vrot.lane.b32.xlu1 %v8373_v41, %s5510_s19 }
 0x556   : > { %v8482_v49 = vpop.permute.xlu0 %3574  ;;  %v8484_v52 = vpop.permute.xlu1 %3588 }
 0x558   : > { %3916 = vrot.lane.b32.xlu0 %v8480_v8, %s5509_s14 }
 0x559   : > { %3960 = vrot.lane.b32.xlu1 %v8373_v41, %s5509_s14  ;;  %v8508_v41 = vld [vmem:[%s9543_s8] sm:$0x3] }
 0x55a   : > { %v8491_v50 = vpop.permute.xlu0 %3894  ;;  %v8493_v51 = vpop.permute.xlu1 %3908  ;;  %10181 = vst [vmem:[#allocation9_spill] sm:$0xff] %v8508_v41  ;;  %v8512_v4 = vrot.slane %v8508_v41, %v10182_v31 }
 0x55c   : > { %3976 = vrot.lane.b32.xlu0 %v8363_v45, %s5509_s14  ;;  %10183 = vst [vmem:[#allocation59_spill] sm:$0xff] %v8512_v4  ;;  %5183 = vmatprep.mubr.msk.f32.mxu0 %vm10184_vm1, %v8512_v4  ;;  %vm10198_vm1 = vmmov %vm10196_vm2 }
 0x55d   : > { %3596 = vrot.lane.b32.xlu1 %v8480_v8, %s5510_s19  ;;  %5248 = vmatprep.mubr.msk.f32.mxu1 %vm10185_vm9, %v8512_v4  ;;  %vm10200_vm9 = vmmov %vm10198_vm1 }
 0x55e   : > { %v8501_v20 = vpop.permute.xlu0 %3590  ;;  %v8503_v53 = vpop.permute.xlu1 %3910 }
 0x560   : > { %3598 = vrot.lane.b32.xlu0 %v8499_v3, %s5510_s19 }
 0x561   : > { %3656 = vrot.lane.b32.xlu1 %v8363_v45, %s5510_s19  ;;  %v8532_v45 = vmax.f32 %v3279_v12, 0.0  ;;  %v3368_v12 = vadd.f32 %v3367_v55, %v8272_v2  ;;  %v8562_v55 = vmax.f32 %v3366_v57, 0.0  ;;  %v3377_v57 = vpop.f32.mrf.mxu1 }
 0x562   : > { %v8521_v9 = vpop.permute.xlu0 %3924 }
 0x563   : > { %v8526_v54 = vpop.permute.xlu1 %3604  ;;  %v8558_v40 = vmax.f32 %v3368_v12, 0.0  ;;  %10189 = vst [vmem:[#allocation63_spill] sm:$0xff] %v8562_v55 }
 0x564   : > { %3658 = vrot.lane.b32.xlu0 %v8360_v42, %s5510_s19 }
 0x565   : > { %3978 = vrot.lane.b32.xlu1 %v8360_v42, %s5509_s14  ;;  %v3284_v42 = vpop.f32.mrf.mxu0  ;;  %10188 = vst [vmem:[#allocation45_spill] sm:$0xff] %v8558_v40 }
 0x566   : > { %v8535_v56 = vpop.permute.xlu0 %3606  ;;  %v3285_v17 = vadd.f32 %v3284_v42, %v8266_v6  ;;  %v3374_v42 = vadd.f32 %v3373_v39, %v8278_v24  ;;  %v3379_v39 = vpop.f32.mrf.mxu1 }
 0x567   : > { %v8539_v31 = vpop.permute.xlu1 %3620  ;;  %v3288_v27 = vpop.f32.mrf.mxu0 }
 0x568   : > { %3614 = vrot.lane.b32.xlu0 %v8532_v45, %s5510_s19  ;;  %v8570_v38 = vmax.f32 %v3285_v17, 0.0  ;;  %v8581_v22 = vmax.f32 %v3374_v42, 0.0  ;;  %v3383_v42 = vpop.f32.mrf.mxu1 }
 0x569   : > { %3932 = vrot.lane.b32.xlu1 %v8537_v1, %s5509_s14  ;;  %v3290_v23 = vpop.f32.mrf.mxu0 }
 0x56a   : > { %v8548_v14 = vpop.permute.xlu0 %3926  ;;  %10190 = vst [vmem:[#allocation38_spill] sm:$0xff] %v8570_v38  ;;  %v3291_v28 = vadd.f32 %v3290_v23, %v8260_v25  ;;  %10191 = vst [vmem:[#allocation60_spill] sm:$0xff] %v8581_v22  ;;  %v3289_v23 = vadd.f32 %v3288_v27, %v8260_v25 }
 0x56b   : > { %v8551_v19 = vpop.permute.xlu1 %3940  ;;  %v3294_v33 = vpop.f32.mrf.mxu0 }
 0x56c   : > { %3948 = vrot.lane.b32.xlu0 %v8545_v26, %s5509_s14  ;;  %v8591_v24 = vmax.f32 %v3291_v28, 0.0  ;;  %v3295_v36 = vadd.f32 %v3294_v33, %v8262_v29  ;;  %v8605_v28 = vmax.f32 %v3289_v23, 0.0 }
 0x56d   : > { %3612 = vrot.lane.b32.xlu1 %v8537_v1, %s5510_s19 }
 0x56e   : > { %v8560_v62 = vpop.permute.xlu0 %3622  ;;  %10193 = vst [vmem:[#allocation54_spill] sm:$0xff] %v8591_v24  ;;  %10194 = vst [vmem:[#allocation14_spill] sm:$0xff] %v8605_v28  ;;  %v8622_v23 = vmax.f32 %v3295_v36, 0.0 }
 0x56f   : > { %v8564_v2 = vpop.permute.xlu1 %3942 }
 0x570   : > { %3554 = vrot.lane.b32.xlu0 %v8558_v40, %s5510_s19 }
 0x571   : > { %3552 = vrot.lane.b32.xlu1 %v8562_v55, %s5510_s19 }
 0x572   : > { %v8573_v12 = vpop.permute.xlu0 %3956 }
 0x573   : > { %v3637_v15 = vpop.permute.xlu1 %3636 }
 0x574   : > { %3630 = vrot.lane.b32.xlu0 %v8570_v38, %s5510_s19  ;;  %v3794_v41 = vsel %vm10198_vm1, 0.0, %v3637_v15 }
 0x575   : > { %3628 = vrot.lane.b32.xlu1 %v8545_v26, %s5510_s19  ;;  %v3385_v26 = vpop.f32.mrf.mxu1 }
 0x576   : > { %v8583_v17 = vpop.permute.xlu0 %3638 }
 0x577   : > { %v3653_v16 = vpop.permute.xlu1 %3652  ;;  %v3710_v33 = vsel %vm10197_vm10, %v3637_v15, %v8583_v17  ;;  %v3389_v48 = vpop.f32.mrf.mxu1  ;;  %vm10204_vm10 = vmmov %vm10198_vm1 }
 0x578   : > { %3570 = vrot.lane.b32.xlu0 %v8581_v22, %s5510_s19  ;;  %v3795_v35 = vsel %vm10196_vm2, 0.0, %v3653_v16  ;;  %vm10202_vm2 = vmmov %vm10198_vm1  ;;  %v3390_v47 = vadd.f32 %v3389_v48, %v8264_v32 }
 0x579   : > { %3568 = vrot.lane.b32.xlu1 %v8585_v44, %s5510_s19 }
 0x57a   : > { %v8593_v8 = vpop.permute.xlu0 %3958 }
 0x57b   : > { %v8596_v4 = vpop.permute.xlu1 %3972 }
 0x57c   : > { %3646 = vrot.lane.b32.xlu0 %v8591_v24, %s5510_s19 }
 0x57d   : > { %3950 = vrot.lane.b32.xlu1 %v8570_v38, %s5509_s14  ;;  %v3296_v38 = vpop.f32.mrf.mxu0 }
 0x57e   : > { %v8603_v1 = vpop.permute.xlu0 %3654 }
 0x57f   : > { %v3717_v30 = vsel %vm10195_vm13, %v3653_v16, %v8603_v1  ;;  %v8609_v27 = vpop.permute.xlu1 %3974  ;;  %v3380_v16 = vadd.f32 %v3379_v39, %v8268_v0  ;;  %vm10201_vm13 = vmmov %vm10198_vm1 }
 0x580   : > { %3966 = vrot.lane.b32.xlu0 %v8591_v24, %s5509_s14  ;;  %5120 = vmatprep.subr.msk.mxu0 %vm6603_vm0, %v3717_v30  ;;  %v3378_v30 = vadd.f32 %v3377_v57, %v8268_v0  ;;  %v3793_v15 = vsel %vm10201_vm13, 0.0, %v8539_v31  ;;  %v3696_v0 = vsel %vm10204_vm10, %v8526_v54, %v8535_v56  ;;  %v3792_v57 = vsel %vm10198_vm1, 0.0, %v8526_v54  ;;  %vm10209_vm13 = vmmov %vm10198_vm1 }
 0x581   : > { %3964 = vrot.lane.b32.xlu1 %v8605_v28, %s5509_s14  ;;  %5122 = vmatpush1.msk.msra.mxu0 %vm6611_vm8, %v3795_v35  ;;  %v3703_v35 = vsel %vm10200_vm9, %v8539_v31, %v8560_v62  ;;  %v8657_v31 = vmax.f32 %v3380_v16, 0.0  ;;  %vm10208_vm9 = vmmov %vm10198_vm1  ;;  %v3791_v54 = vsel %vm10209_vm13, 0.0, %v8484_v52 }
 0x582   : > { %v8626_v24 = vpop.permute.xlu0 %3546  ;;  %5124 = vmatprep.subr.msk.mxu0 %vm6603_vm0, %v3710_v33  ;;  %v8665_v33 = vmax.f32 %v3378_v30, 0.0  ;;  %vm10212_vm10 = vmmov %vm10198_vm1 }
 0x583   : > { %v8631_v61 = vpop.permute.xlu1 %3544  ;;  %5126 = vmatpush1.msk.msra.mxu0 %vm6611_vm8, %v3794_v41  ;;  %v3297_v41 = vadd.f32 %v3296_v38, %v8262_v29  ;;  %10205 = vst [vmem:[#allocation47_spill] sm:$0xff] %v8657_v31  ;;  %v3689_v38 = vsel %vm10208_vm9, %v8484_v52, %v8501_v20  ;;  %v3682_v52 = vsel %vm10212_vm10, %v8474_v5, %v8482_v49  ;;  %vm10213_vm9 = vmmov %vm10198_vm1 }
 0x584   : > { %10199 = vst [vmem:[#allocation49_spill] sm:$0xff] %v8631_v61  ;;  %v8643_v39 = vsel %vm10202_vm2, %v8631_v61, %v8626_v24  ;;  %3980 = vrot.lane.b32.xlu0 %v8622_v23, %s5509_s14  ;;  %5128 = vmatprep.subr.msk.mxu0 %vm6603_vm0, %v3703_v35  ;;  %10207 = vst [vmem:[#allocation52_spill] sm:$0xff] %v8665_v33  ;;  %v3391_v35 = vpop.f32.mrf.mxu1  ;;  %vm10210_vm2 = vcmask 1039360  }
 0x585   : > { %10203 = vst [vmem:[#allocation13_spill] sm:$0xff] %v8643_v39  ;;  %3644 = vrot.lane.b32.xlu1 %v8605_v28, %s5510_s19  ;;  %5130 = vmatpush1.msk.msra.mxu0 %vm6611_vm8, %v3793_v15  ;;  %v8692_v30 = vmax.f32 %v3297_v41, 0.0  ;;  %vm10214_vm13 = vmmov %vm10198_vm1 }
 0x586   : > { %v8661_v36 = vpop.permute.xlu0 %3866  ;;  %5132 = vmatprep.subr.msk.mxu0 %vm6603_vm0, %v3696_v0  ;;  %v3386_v0 = vadd.f32 %v3385_v26, %v8270_v21  ;;  %v3675_v26 = vsel %vm10213_vm9, %v8444_v63, %v8463_v46  ;;  %vm10217_vm10 = vmmov %vm10198_vm1  ;;  %vm10221_vm9 = vcmask 1039360  }
 0x587   : > { %10206 = vst [vmem:[#allocation42_spill] sm:$0xff] %v8661_v36  ;;  %v8667_v15 = vpop.permute.xlu1 %3864  ;;  %5134 = vmatpush1.msk.msra.mxu0 %vm6611_vm8, %v3792_v57  ;;  %v3790_v57 = vsel %vm10198_vm1, 0.0, %v8474_v5  ;;  %v3789_v5 = vsel %vm10214_vm13, 0.0, %v8444_v63  ;;  %v3392_v63 = vadd.f32 %v3391_v35, %v8264_v32  ;;  %v3788_v41 = vsel %vm10217_vm10, 0.0, %v8435_v37 }
 0x588   : > { %v8679_v16 = vsel %vm10210_vm2, %v8667_v15, %v8661_v36  ;;  %3586 = vrot.lane.b32.xlu0 %v8657_v31, %s5510_s19  ;;  %5136 = vmatprep.subr.msk.mxu0 %vm6603_vm0, %v3689_v38  ;;  %v3384_v38 = vadd.f32 %v3383_v42, %v8270_v21  ;;  %v3395_v36 = vpop.f32.mrf.mxu1  ;;  %vm10215_vm2 = vmmov %vm10198_vm1  ;;  %v8722_v42 = vmax.f32 %v3386_v0, 0.0  ;;  %v8773_v32 = vmax.f32 %v3390_v47, 0.0 }
 0x589   : > { %10211 = vst [vmem:[#allocation36_spill] sm:$0xff] %v8679_v16  ;;  %3584 = vrot.lane.b32.xlu1 %v8665_v33, %s5510_s19  ;;  %5138 = vmatpush1.msk.msra.mxu0 %vm6611_vm8, %v3791_v54  ;;  %v3668_v21 = vsel %vm10215_vm2, %v8435_v37, %v8442_v58  ;;  %v8751_v7 = vmax.f32 %v3392_v63, 0.0  ;;  %v3396_v35 = vadd.f32 %v3395_v36, %v8266_v6 }
 0x58a   : > { %v8697_v16 = vpop.permute.xlu0 %3880  ;;  %5140 = vmatprep.subr.msk.mxu0 %vm6603_vm0, %v3682_v52  ;;  %10216 = vst [vmem:[#allocation53_spill] sm:$0xff] %v8722_v42  ;;  %10227 = vst [vmem:[#allocation62_spill] sm:$0xff] %v8773_v32 }
 0x58b   : > { %v8702_v54 = vpop.permute.xlu1 %3560  ;;  %5142 = vmatpush1.msk.msra.mxu0 %vm6611_vm8, %v3790_v57  ;;  %v8731_v57 = vmax.f32 %v3384_v38, 0.0  ;;  %10223 = vst [vmem:[#allocation64_spill] sm:$0xff] %v8751_v7  ;;  %v8768_v63 = vmax.f32 %v3396_v35, 0.0 }
 0x58c   : > { %3662 = vrot.lane.b32.xlu0 %v8692_v30, %s5510_s19  ;;  %5144 = vmatprep.subr.msk.mxu0 %vm6603_vm0, %v3675_v26  ;;  %v3397_v26 = vpop.f32.mrf.mxu1 }
 0x58d   : > { %3660 = vrot.lane.b32.xlu1 %v8622_v23, %s5510_s19  ;;  %5146 = vmatpush1.msk.msra.mxu0 %vm6611_vm8, %v3789_v5  ;;  %10218 = vst [vmem:[#allocation57_spill] sm:$0xff] %v8731_v57  ;;  %10225 = vst [vmem:[#allocation61_spill] sm:$0xff] %v8768_v63  ;;  %v3398_v36 = vadd.f32 %v3397_v26, %v8266_v6 }
 0x58e   : > { %v8727_v52 = vpop.permute.xlu0 %3562  ;;  %5148 = vmatprep.subr.msk.mxu0 %vm6603_vm0, %v3668_v21  ;;  %v3401_v21 = vpop.f32.mrf.mxu1  ;;  %vm10224_vm0 = vmmov %vm10198_vm1 }
 0x58f   : > { %v8736_v5 = vsel %vm10198_vm1, %v8702_v54, %v8727_v52  ;;  %v8738_v0 = vpop.permute.xlu1 %3882  ;;  %5150 = vmatpush1.msk.msra.mxu0 %vm6611_vm8, %v3788_v41  ;;  %vm10228_vm8 = vmmov %vm10221_vm9  ;;  %v8786_v35 = vmax.f32 %v3398_v36, 0.0  ;;  %v3402_v61 = vadd.f32 %v3401_v21, %v8260_v25 }
 0x590   : > { %10219 = vst [vmem:[#allocation18_spill] sm:$0xff] %v8736_v5  ;;  %10220 = vst [vmem:[#allocation58_spill] sm:$0xff] %v8738_v0  ;;  %v8745_v37 = vsel %vm10221_vm9, %v8697_v16, %v8738_v0  ;;  %3602 = vrot.lane.b32.xlu0 %v8722_v42, %s5510_s19  ;;  %v3403_v48 = vpop.f32.mrf.mxu1 }
 0x591   : > { %10222 = vst [vmem:[#allocation17_spill] sm:$0xff] %v8745_v37  ;;  %3600 = vrot.lane.b32.xlu1 %v8731_v57, %s5510_s19  ;;  %10230 = vst [vmem:[#allocation24_spill] sm:$0xff] %v8786_v35  ;;  %v3404_v6 = vadd.f32 %v3403_v48, %v8260_v25 }
 0x592   : > { %v8754_v38 = vpop.permute.xlu0 %3578  ;;  %v3407_v36 = vpop.f32.mrf.mxu1  ;;  %vm10233_vm13 = vmmov %vm10224_vm0 }
 0x593   : > { %v8757_v41 = vpop.permute.xlu1 %3576  ;;  %vm10235_vm2 = vmmov %vm10228_vm8  ;;  %v3408_v25 = vadd.f32 %v3407_v36, %v8262_v29 }
 0x594   : > { %v8762_v37 = vsel %vm10224_vm0, %v8757_v41, %v8754_v38  ;;  %3618 = vrot.lane.b32.xlu0 %v8751_v7, %s5510_s19  ;;  %vm10240_vm10 = vmmov %vm10224_vm0 }
 0x595   : > { %3982 = vrot.lane.b32.xlu1 %v8692_v30, %s5509_s14  ;;  %vm10242_vm1 = vmmov %vm10224_vm0 }
 0x596   : > { %v8771_v0 = vpop.permute.xlu0 %3898  ;;  %vm10246_vm9 = vmmov %vm10235_vm2 }
 0x597   : > { %10226 = vst [vmem:[#allocation11_spill] sm:$0xff] %v8771_v0  ;;  %v8775_v39 = vpop.permute.xlu1 %3896 }
 0x598   : > { %v8780_v58 = vsel %vm10228_vm8, %v8775_v39, %v8771_v0  ;;  %3952 = vrot.lane.b32.xlu0 %v8768_v63, %s5509_s14  ;;  %vm10248_vm8 = vmmov %vm10224_vm0 }
 0x599   : > { %10229 = vst [vmem:[#allocation12_spill] sm:$0xff] %v8780_v58  ;;  %3616 = vrot.lane.b32.xlu1 %v8773_v32, %s5510_s19  ;;  %v8797_v58 = vmax.f32 %v3404_v6, 0.0  ;;  %v8821_v6 = vmax.f32 %v3402_v61, 0.0 }
 0x59a   : > { %v8789_v26 = vpop.permute.xlu0 %3912 }
 0x59b   : > { %v8791_v47 = vpop.permute.xlu1 %3592  ;;  %10231 = vst [vmem:[#allocation68_spill] sm:$0xff] %v8797_v58  ;;  %10237 = vst [vmem:[#allocation15_spill] sm:$0xff] %v8821_v6 }
 0x59c   : > { %3634 = vrot.lane.b32.xlu0 %v8786_v35, %s5510_s19 }
 0x59d   : > { %3632 = vrot.lane.b32.xlu1 %v8768_v63, %s5510_s19  ;;  %v3409_v63 = vpop.f32.mrf.mxu1 }
 0x59e   : > { %v8799_v0 = vpop.permute.xlu0 %3594 }
 0x59f   : > { %10232 = vst [vmem:[#allocation66_spill] sm:$0xff] %v8799_v0  ;;  %v8805_v48 = vsel %vm10233_vm13, %v8791_v47, %v8799_v0  ;;  %v8807_v5 = vpop.permute.xlu1 %3914  ;;  %vm10250_vm13 = vmmov %vm10235_vm2 }
 0x5a0   : > { %10234 = vst [vmem:[#allocation39_spill] sm:$0xff] %v8807_v5  ;;  %v8812_v28 = vsel %vm10235_vm2, %v8789_v26, %v8807_v5  ;;  %3650 = vrot.lane.b32.xlu0 %v8797_v58, %s5510_s19  ;;  %v3410_v5 = vadd.f32 %v3409_v63, %v8262_v29  ;;  %vm10252_vm2 = vmmov %vm10224_vm0 }
 0x5a1   : > { %10236 = vst [vmem:[#allocation16_spill] sm:$0xff] %v8812_v28  ;;  %3954 = vrot.lane.b32.xlu1 %v8786_v35, %s5509_s14  ;;  %v8829_v28 = vmax.f32 %v3408_v25, 0.0 }
 0x5a2   : > { %v8819_v21 = vpop.permute.xlu0 %3550  ;;  %v8846_v25 = vmax.f32 %v3410_v5, 0.0 }
 0x5a3   : > { %v8823_v0 = vpop.permute.xlu1 %3868  ;;  %10239 = vst [vmem:[#allocation72_spill] sm:$0xff] %v8829_v28 }
 0x5a4   : > { %10238 = vst [vmem:[#allocation71_spill] sm:$0xff] %v8823_v0  ;;  %3970 = vrot.lane.b32.xlu0 %v8797_v58, %s5509_s14  ;;  %10244 = vst [vmem:[#allocation69_spill] sm:$0xff] %v8846_v25 }
 0x5a5   : > { %3648 = vrot.lane.b32.xlu1 %v8821_v6, %s5510_s19 }
 0x5a6   : > { %v8832_v35 = vpop.permute.xlu0 %3610 }
 0x5a7   : > { %v3549_v36 = vpop.permute.xlu1 %3548 }
 0x5a8   : > { %v8836_v61 = vsel %vm10240_vm10, %v8626_v24, %v3549_v36  ;;  %v8840_v0 = vsel %vm10242_vm1, %v3549_v36, %v8819_v21  ;;  %3984 = vrot.lane.b32.xlu0 %v8829_v28, %s5509_s14  ;;  %vm10254_vm10 = vmmov %vm10224_vm0 }
 0x5a9   : > { %10241 = vst [vmem:[#allocation65_spill] sm:$0xff] %v8836_v61  ;;  %10243 = vst [vmem:[#allocation67_spill] sm:$0xff] %v8840_v0  ;;  %3968 = vrot.lane.b32.xlu1 %v8821_v6, %s5509_s14 }
 0x5aa   : > { %v8848_v29 = vpop.permute.xlu0 %3930  ;;  %vm10256_vm1 = vmmov %vm10246_vm9 }
 0x5ab   : > { %v8850_v63 = vpop.permute.xlu1 %3608 }
 0x5ac   : > { %3666 = vrot.lane.b32.xlu0 %v8846_v25, %s5510_s19 }
 0x5ad   : > { %3664 = vrot.lane.b32.xlu1 %v8829_v28, %s5510_s19 }
 0x5ae   : > { %v8856_v24 = vpop.permute.xlu0 %3884 }
 0x5af   : > { %10245 = vst [vmem:[#allocation70_spill] sm:$0xff] %v8856_v24  ;;  %v3929_v36 = vpop.permute.xlu1 %3928 }
 0x5b0   : > { %v8860_v61 = vsel %vm10246_vm9, %v3929_v36, %v8848_v29  ;;  %3934 = vrot.lane.b32.xlu0 %v8532_v45, %s5509_s14  ;;  %vm10258_vm9 = vmmov %vm10256_vm1 }
 0x5b1   : > { %3936 = vrot.lane.b32.xlu1 %v8773_v32, %s5509_s14 }
 0x5b2   : > { %v3945_v5 = vpop.permute.xlu0 %3944 }
 0x5b3   : > { %v3565_v0 = vpop.permute.xlu1 %3564 }
 0x5b4   : > { %v8868_v6 = vsel %vm10224_vm0, %v8727_v52, %v3565_v0  ;;  %3938 = vrot.lane.b32.xlu0 %v8751_v7, %s5509_s14  ;;  %vm10259_vm0 = vmmov %vm10256_vm1 }
 0x5b5   : > { %10247 = vst [vmem:[#allocation44_spill] sm:$0xff] %v8868_v6  ;;  %3918 = vrot.lane.b32.xlu1 %v8499_v3, %s5509_s14 }
 0x5b6   : > { %v8874_v58 = vpop.permute.xlu0 %3566 }
 0x5b7   : > { %v8878_v28 = vsel %vm10248_vm8, %v3565_v0, %v8874_v58  ;;  %v8880_v24 = vpop.permute.xlu1 %3624  ;;  %vm10260_vm8 = vmmov %vm10259_vm0 }
 0x5b8   : > { %10249 = vst [vmem:[#allocation55_spill] sm:$0xff] %v8878_v28  ;;  %3920 = vrot.lane.b32.xlu0 %v8731_v57, %s5509_s14 }
 0x5b9   : > { %3922 = vrot.lane.b32.xlu1 %v8722_v42, %s5509_s14 }
 0x5ba   : > { %v8886_v52 = vpop.permute.xlu0 %3626 }
 0x5bb   : > { %v8888_v32 = vpop.permute.xlu1 %3946 }
 0x5bc   : > { %v8892_v7 = vsel %vm10250_vm13, %v3945_v5, %v8888_v32  ;;  %3902 = vrot.lane.b32.xlu0 %v8451_v59, %s5509_s14  ;;  %vm10261_vm13 = vmmov %vm10259_vm0 }
 0x5bd   : > { %3986 = vrot.lane.b32.xlu1 %v8846_v25, %s5509_s14 }
 0x5be   : > { %v8898_v0 = vpop.permute.xlu0 %3582 }
 0x5bf   : > { %10251 = vst [vmem:[#allocation46_spill] sm:$0xff] %v8898_v0  ;;  %v8900_v57 = vpop.permute.xlu1 %3900 }
 0x5c0   : > { %3906 = vrot.lane.b32.xlu0 %v8657_v31, %s5509_s14 }
 0x5c1   : > { %3904 = vrot.lane.b32.xlu1 %v8665_v33, %s5509_s14 }
 0x5c2   : > { %v8906_v42 = vpop.permute.xlu0 %3642 }
 0x5c3   : > { %v3581_v6 = vpop.permute.xlu1 %3580 }
 0x5c4   : > { %v8910_v28 = vsel %vm10252_vm2, %v8754_v38, %v3581_v6  ;;  %v8914_v25 = vsel %vm10254_vm10, %v3581_v6, %v8898_v0  ;;  %3888 = vrot.lane.b32.xlu0 %v8585_v44, %s5509_s14  ;;  %v4181_v0 = vld [vmem:[#allocation2] sm:$0x1]  ;;  %vm10262_vm2 = vmmov %vm10259_vm0 }
 0x5c5   : > { %10253 = vst [vmem:[#allocation50_spill] sm:$0xff] %v8910_v28  ;;  %10255 = vst [vmem:[#allocation41_spill] sm:$0xff] %v8914_v25  ;;  %3886 = vrot.lane.b32.xlu1 %v8431_v11, %s5509_s14 }
 0x5c6   : > { %v8920_v31 = vpop.permute.xlu0 %3962  ;;  %vm10263_vm10 = vmmov %vm10259_vm0 }
 0x5c7   : > { %v3641_v33 = vpop.permute.xlu1 %3640 }
 0x5c8   : > { %3870 = vrot.lane.b32.xlu0 %v8407_v34, %s5509_s14 }
 0x5c9   : > { %3890 = vrot.lane.b32.xlu1 %v8581_v22, %s5509_s14  ;;  %v4037_v22 = vsel %vm10258_vm9, %v8596_v4, %v8609_v27  ;;  %vm10265_vm9 = vmmov %vm10259_vm0 }
 0x5ca   : > { %v8926_v38 = vpop.permute.xlu0 %3916 }
 0x5cb   : > { %v8928_v28 = vpop.permute.xlu1 %3960 }
 0x5cc   : > { %3874 = vrot.lane.b32.xlu0 %v8558_v40, %s5509_s14  ;;  %v4030_v40 = vsel %vm10260_vm8, %v8573_v12, %v8593_v8 }
 0x5cd   : > { %3872 = vrot.lane.b32.xlu1 %v8562_v55, %s5509_s14  ;;  %v4031_v55 = vsel %vm10259_vm0, %v8593_v8, %v8928_v28  ;;  %v4017_v8 = vsel %vm10263_vm10, %v8548_v14, %v3929_v36  ;;  %s363_s14 = sand.u32 1, %s5499_s16  }
 0x5ce   : > { %v8934_v6 = vpop.permute.xlu0 %3976  ;;  %s4644_s19 = sshll.u32 %s363_s14, 3  ;;  %s4555_s30 = scalar_lea.sflag [#allocation4], %s363_s14 }
 0x5cf   : > { %v4038_v44 = vsel %vm10256_vm1, %v8609_v27, %v8934_v6  ;;  %v8939_v25 = vpop.permute.xlu1 %3596  ;;  %vm10264_vm1 = vmmov %vm10259_vm0  ;;  %vm10266_vm0 = vcmask 7168   ;;  %s365_s22 = scalar_lea.vmem [#allocation3], %s4644_s19 }
 0x5d0   : > { %10257 = vst [vmem:[#allocation48_spill] sm:$0xff] %v8939_v25  ;;  %5152 = vmatprep.subr.msk.mxu0 %vm6729_vm14, %v4038_v44  ;;  %v4024_v44 = vsel %vm10261_vm13, %v8564_v2, %v3945_v5  ;;  %vm10267_vm8 = vmmov %vm10264_vm1  ;;  %s4569_s26 = sshll.u32 %s365_s22, 4  ;;  %s4570_s26 = int_to_ptr.vmem [resolvable:$true] %s4569_s26 }
 0x5d1   : > { %4184 = vperm.xlu1 %5430, %v4181_v0   ;;  %5154 = vmatpush2.msk.msra.mxu0 %vm6749_vm12, %v4037_v22  ;;  %v4023_v22 = vsel %vm10262_vm2, %v8551_v19, %v8564_v2  ;;  %v4010_v19 = vsel %vm10265_vm9, %v8503_v53, %v8789_v26  ;;  %vm10268_vm13 = vmmov %vm10266_vm0  ;;  %v10279_v0 = vld [vmem:[#allocation9_spill] sm:$0xff]  ;;  %s5447_s11 = scalar_lea.vmem %s4570_s26, 128  ;;  %p5454_p0 = scmp.lt.s32.totalorder %s4570_s26, %s5452_s13 }
 0x5d2   : > { %v8954_v25 = vpop.permute.xlu0 %3598  ;;  %5156 = vmatprep.subr.msk.mxu0 %vm6729_vm14, %v4031_v55  ;;  %v4016_v55 = vsel %vm10264_vm1, %v8521_v9, %v8548_v14  ;;  %v4009_v14 = vsel %vm10267_vm8, %v8493_v51, %v8503_v53  ;;  %vm10269_vm2 = vmmov %vm10264_vm1  ;;  %v4002_v51 = vsel %vm10264_vm1, %v8472_v60, %v8491_v50  ;;  %p5448_p11 = scmp.ne.s32.totalorder %s4570_s26, %s5447_s11  ;;  %p5455_p1 = scmp.lt.s32.totalorder %s5453_s9, %s5447_s11 }
 0x5d3   : > { %v3657_v4 = vpop.permute.xlu1 %3656  ;;  %5158 = vmatpush2.msk.msra.mxu0 %vm6749_vm12, %v4030_v40  ;;  %v4003_v27 = vsel %vm10269_vm2, %v8491_v50, %v8775_v39  ;;  %vm10270_vm10 = vmmov %vm10266_vm0  ;;  %v10272_v39 = vld [vmem:[#allocation19_spill] sm:$0xff]  ;;  %v10275_v50 = vld [vmem:[#allocation26_spill] sm:$0xff] }
 0x5d4   : > { %5160 = vmatprep.subr.msk.mxu0 %vm6729_vm14, %v4024_v44  ;;  %v3718_v9 = vsel %vm10268_vm13, %v8603_v1, %v3657_v4  ;;  %v3712_v26 = vsel %vm10270_vm10, %v3641_v33, %v8906_v42  ;;  %vm10271_vm9 = vmmov %vm10266_vm0  ;;  %p5449_p12 = pnand %p5448_p11, %p5611_p5  ;;  %p5456_p2 = por %p5455_p1, %p5454_p0 }
 0x5d5   : > { %5162 = vmatpush2.msk.msra.mxu0 %vm6749_vm12, %v4023_v22  ;;  %v3711_v53 = vsel %vm10271_vm9, %v8583_v17, %v3641_v33  ;;  %vm10274_vm8 = vmmov %vm10271_vm9 }
 0x5d6   : > { %v8974_v12 = vpop.permute.xlu0 %3658  ;;  %5164 = vmatprep.subr.msk.mxu0 %vm6729_vm14, %v4017_v8  ;;  %v3705_v5 = vsel %vm10274_vm8, %v8880_v24, %v8886_v52  ;;  %vm10277_vm2 = vmmov %vm10274_vm8  ;;  %p5450_p13 = pneg %p5449_p12 }
 0x5d7   : > { %v3719_v40 = vsel %vm10266_vm0, %v3657_v4, %v8974_v12  ;;  %v8983_v2 = vpop.permute.xlu1 %3978  ;;  %5166 = vmatpush2.msk.msra.mxu0 %vm6749_vm12, %v4016_v55  ;;  %vm10273_vm0 = vmmov %vm10264_vm1  ;;  %v3704_v33 = vsel %vm10277_vm2, %v8560_v62, %v8880_v24  ;;  %v10280_v4 = vld [vmem:[#allocation29_spill] sm:$0xff]  ;;  %v10283_v62 = vld [vmem:[#allocation32_spill] sm:$0xff] }
 0x5d8   : > { %5168 = vmatprep.subr.msk.mxu0 %vm6729_vm14, %v4010_v19  ;;  %5185 = vmatprep.subr.msk.mxu1 %vm10110_vm4, %v3719_v40  ;;  %v3996_v36 = vsel %vm10273_vm0, %v10272_v39, %v8697_v16  ;;  %vm10276_vm13 = vmmov %vm10273_vm0  ;;  %v10278_v16 = vld [vmem:[#allocation8_spill] sm:$0xff]  ;;  %p5457_p3 = pnand %p5456_p2, %p5450_p13 }
 0x5d9   : > { %5170 = vmatpush2.msk.msra.mxu0 %vm6749_vm12, %v4009_v14  ;;  %5187 = vmatpush1.msk.msra.mxu1 %vm10112_vm5, %v3718_v9  ;;  %v3995_v17 = vsel %vm10276_vm13, %v10275_v50, %v10272_v39  ;;  %v9040_v44 = vrot.slane %v10279_v0, %v10278_v16  ;;  %vm10281_vm10 = vmmov %vm10273_vm0  ;;  %v10299_v14 = vld [vmem:[#allocation13_spill] sm:$0xff] }
 0x5da   : > { %v9010_v1 = vpop.permute.xlu0 %3614  ;;  %5189 = vmatprep.subr.msk.mxu1 %vm10110_vm4, %v3712_v26  ;;  %5172 = vmatprep.subr.msk.mxu0 %vm6729_vm14, %v4003_v27  ;;  %v3989_v22 = vsel %vm10281_vm10, %v10280_v4, %v8667_v15  ;;  %vm10282_vm1 = vmmov %vm10277_vm2  ;;  %v10300_v27 = vld [vmem:[#allocation56_spill] sm:$0xff]  ;;  %v10301_v26 = vld [vmem:[#allocation59_spill] sm:$0xff] }
 0x5db   : > { %v9022_v60 = vpop.permute.xlu1 %3932  ;;  %5174 = vmatpush2.msk.msra.mxu0 %vm6749_vm12, %v4002_v51  ;;  %5191 = vmatpush1.msk.msra.mxu1 %vm10112_vm5, %v3711_v53  ;;  %v3698_v8 = vsel %vm10282_vm1, %v8850_v63, %v8832_v35  ;;  %vm10284_vm9 = vmmov %vm10273_vm0  ;;  %v10303_v51 = vld [vmem:[#allocation10_spill] sm:$0xff] }
 0x5dc   : > { %5176 = vmatprep.subr.msk.mxu0 %vm6729_vm14, %v3996_v36  ;;  %5193 = vmatprep.subr.msk.mxu1 %vm10110_vm4, %v3705_v5  ;;  %v3988_v24 = vsel %vm10284_vm9, %v10283_v62, %v10280_v4  ;;  %vm10285_vm0 = vmmov %vm10282_vm1  ;;  %vm10302_vm1 = vcmask 523264   ;;  %v10307_v36 = vld [vmem:[#allocation35_spill] sm:$0xff]  ;;  %v10311_v4 = vld [vmem:[#allocation25_spill] sm:$0xff] }
 0x5dd   : > { %5178 = vmatpush2.msk.msra.mxu0 %vm6749_vm12, %v3995_v17  ;;  %5195 = vmatpush1.msk.msra.mxu1 %vm10112_vm5, %v3704_v33  ;;  %v3697_v55 = vsel %vm10285_vm0, %v8535_v56, %v8850_v63  ;;  %vm10286_vm8 = vmmov %vm10285_vm0  ;;  %v10295_v63 = vld [vmem:[#allocation49_spill] sm:$0xff] }
 0x5de   : > { %v9058_v19 = vpop.permute.xlu0 %3948  ;;  %5197 = vmatprep.subr.msk.mxu1 %vm10110_vm4, %v3698_v8  ;;  %5180 = vmatprep.subr.msk.mxu0 %vm6729_vm14, %v3989_v22  ;;  %v3690_v56 = vsel %vm10286_vm8, %v8501_v20, %v8791_v47  ;;  %vm10287_vm14 = vmmov %vm10285_vm0  ;;  %v10288_v47 = vld [vmem:[#allocation54_spill] sm:$0xff]  ;;  %vm10312_vm8 = vnez %v10311_v4  ;;  %v10314_v22 = vld [vmem:[#allocation43_spill] sm:$0xff] }
 0x5df   : > { %v9064_v15 = vpop.permute.xlu1 %3612  ;;  %5182 = vmatpush2.msk.msra.mxu0 %vm6749_vm12, %v3988_v24  ;;  %5199 = vmatpush1.msk.msra.mxu1 %vm10112_vm5, %v3697_v55  ;;  %v3683_v43 = vsel %vm10287_vm14, %v8482_v49, %v8757_v41  ;;  %vm10289_vm12 = vmmov %vm10285_vm0  ;;  %v10292_v41 = vld [vmem:[#allocation14_spill] sm:$0xff]  ;;  %v10348_v4 = vld [vmem:[#allocation68_spill] sm:$0xff] }
 0x5e0   : > { %4268 = vmatmul.mubr.f32.vlgmr.msra.gmra.mxu0 %v9040_v44  ;;  %5201 = vmatprep.subr.msk.mxu1 %vm10110_vm4, %v8805_v48  ;;  %vm10290_vm13 = vmmov %vm10285_vm0  ;;  %v10294_v48 = vld [vmem:[#allocation38_spill] sm:$0xff] }
 0x5e1   : > { %4345 = vmatprep.subr.mxu0 %v8692_v30  ;;  %5203 = vmatpush1.msk.msra.mxu1 %vm10112_vm5, %v3690_v56  ;;  %v3676_v30 = vsel %vm10289_vm12, %v8463_v46, %v8702_v54  ;;  %vm10291_vm2 = vmmov %vm10285_vm0  ;;  %v10296_v46 = vld [vmem:[#allocation30_spill] sm:$0xff]  ;;  %vm10315_vm12 = vnez %v10314_v22  ;;  %v10322_v56 = vld [vmem:[#allocation11_spill] sm:$0xff] }
 0x5e2   : > { %4346 = vmatpush1.msra.mxu0 %v8622_v23  ;;  %v3555_v10 = vpop.permute.xlu0 %3554  ;;  %5205 = vmatprep.subr.msk.mxu1 %vm10110_vm4, %v8762_v37  ;;  %v10293_v37 = vld [vmem:[#allocation18_spill] sm:$0xff]  ;;  %vm10297_vm10 = vmmov %vm10285_vm0  ;;  %v10349_v22 = vld [vmem:[#allocation41_spill] sm:$0xff] }
 0x5e3   : > { %v3553_v20 = vpop.permute.xlu1 %3552  ;;  %4347 = vmatprep.subr.mxu0 %v10288_v47  ;;  %5207 = vmatpush1.msk.msra.mxu1 %vm10112_vm5, %v3683_v43  ;;  %v3669_v54 = vsel %vm10297_vm10, %v10296_v46, %v10295_v63  ;;  %vm10305_vm9 = vmmov %vm10285_vm0  ;;  %v10332_v46 = vld [vmem:[#allocation12_spill] sm:$0xff] }
 0x5e4   : > { %v9095_v49 = vsel %vm10290_vm13, %v8819_v21, %v3553_v20  ;;  %v9098_v23 = vsel %vm10291_vm2, %v3553_v20, %v3555_v10  ;;  %4348 = vmatpush1.msra.mxu0 %v10292_v41  ;;  %5209 = vmatprep.subr.msk.mxu1 %vm10110_vm4, %v10293_v37  ;;  %v10298_v21 = vld [vmem:[#allocation51_spill] sm:$0xff]  ;;  %v10325_v20 = vld [vmem:[#allocation16_spill] sm:$0xff]  ;;  %v10329_v41 = vld [vmem:[#allocation58_spill] sm:$0xff] }
 0x5e5   : > { %4349 = vmatprep.subr.mxu0 %v10294_v48  ;;  %5211 = vmatpush1.msk.msra.mxu1 %vm10112_vm5, %v3676_v30  ;;  %v10328_v30 = vld [vmem:[#allocation70_spill] sm:$0xff]  ;;  %v10364_v10 = vld [vmem:[#allocation52_spill] sm:$0xff] }
 0x5e6   : > { %4350 = vmatpush1.msra.mxu0 %v10298_v21  ;;  %v9111_v40 = vpop.permute.xlu0 %3630  ;;  %5213 = vmatprep.subr.msk.mxu1 %vm10110_vm4, %v10299_v14  ;;  %vm10304_vm4 = vmmov %vm10285_vm0  ;;  %v10334_v21 = vld [vmem:[#allocation71_spill] sm:$0xff] }
 0x5e7   : > { %v3629_v9 = vpop.permute.xlu1 %3628  ;;  %4351 = vmatprep.subr.mxu0 %v8532_v45  ;;  %5215 = vmatpush1.msk.msra.mxu1 %vm10112_vm5, %v3669_v54  ;;  %v10306_v45 = vld [vmem:[#allocation21_spill] sm:$0xff]  ;;  %vm10309_vm5 = vcmask 1039360  }
 0x5e8   : > { %4352 = vmatpush1.msra.mxu0 %v10300_v27  ;;  %5313 = vmatprep.mubr.msk.f32.mxu0 %vm10302_vm1, %v10301_v26  ;;  %vm10310_vm0 = vmmov %vm10309_vm5 }
 0x5e9   : > { %4353 = vmatprep.subr.mxu0 %v8499_v3  ;;  %v4039_v0 = vsel %vm10310_vm0, %v8934_v6, %v8983_v2  ;;  %vm10313_vm14 = vmmov %vm10310_vm0 }
 0x5ea   : > { %4354 = vmatpush1.msra.mxu0 %v10303_v51  ;;  %v3571_v53 = vpop.permute.xlu0 %3570  ;;  %vm10316_vm13 = vmmov %vm10310_vm0  ;;  %v10338_v51 = vld [vmem:[#allocation17_spill] sm:$0xff] }
 0x5eb   : > { %v3569_v39 = vpop.permute.xlu1 %3568  ;;  %4355 = vmatprep.subr.mxu0 %v8451_v59  ;;  %v10308_v59 = vld [vmem:[#allocation40_spill] sm:$0xff]  ;;  %v4032_v8 = vsel %vm10316_vm13, %v8928_v28, %v8920_v31  ;;  %vm10317_vm2 = vmmov %vm10310_vm0 }
 0x5ec   : > { %v9127_v18 = vsel %vm10304_vm4, %v8874_v58, %v3569_v39  ;;  %v9130_v13 = vsel %vm10305_vm9, %v3569_v39, %v3571_v53  ;;  %4356 = vmatpush1.msra.mxu0 %v10306_v45  ;;  %v4026_v6 = vsel %vm10317_vm2, %v8888_v32, %v9058_v19  ;;  %vm10318_vm10 = vmmov %vm10310_vm0  ;;  %v10319_v32 = vld [vmem:[#allocation39_spill] sm:$0xff]  ;;  %v10341_v45 = vld [vmem:[#allocation36_spill] sm:$0xff] }
 0x5ed   : > { %4357 = vmatprep.subr.mxu0 %v8431_v11  ;;  %v4019_v28 = vsel %vm10318_vm10, %v8848_v29, %v9022_v60  ;;  %vm10320_vm1 = vmmov %vm10310_vm0 }
 0x5ee   : > { %4358 = vmatpush1.msra.mxu0 %v10307_v36  ;;  %v9135_v3 = vpop.permute.xlu0 %3646  ;;  %v4012_v24 = vsel %vm10320_vm1, %v10319_v32, %v8926_v38  ;;  %vm10321_vm9 = vmmov %vm10304_vm4  ;;  %v10342_v36 = vld [vmem:[#allocation48_spill] sm:$0xff] }
 0x5ef   : > { %v9137_v5 = vpop.permute.xlu1 %3950  ;;  %4359 = vmatprep.subr.mxu0 %v8407_v34  ;;  %vm10336_vm10 = vmmov %vm10320_vm1  ;;  %v10353_v32 = vld [vmem:[#allocation24_spill] sm:$0xff] }
 0x5f0   : > { %4360 = vmatpush1.msra.mxu0 %v10308_v59 }
 0x5f2   : > { %v9141_v50 = vpop.permute.xlu0 %3966 }
 0x5f3   : > { %v9143_v58 = vpop.permute.xlu1 %3964 }
 0x5f4   : > { %v4033_v34 = vsel %vm10313_vm14, %v8920_v31, %v9143_v58  ;;  %vm10330_vm14 = vmmov %vm10320_vm1 }
 0x5f5   : > { %v3998_v37 = vsel %vm10330_vm14, %v10329_v41, %v10328_v30  ;;  %v10360_v41 = vld [vmem:[#allocation53_spill] sm:$0xff] }
 0x5f6   : > { %v9145_v17 = vpop.permute.xlu0 %3980 }
 0x5f7   : > { %v4040_v11 = vsel %vm10309_vm5, %v8983_v2, %v9145_v17  ;;  %v3645_v33 = vpop.permute.xlu1 %3644  ;;  %vm10323_vm5 = vmmov %vm10310_vm0 }
 0x5f8   : > { %5217 = vmatprep.subr.msk.mxu1 %vm10312_vm8, %v4040_v11  ;;  %v4005_v43 = vsel %vm10323_vm5, %v10322_v56, %v8900_v57  ;;  %vm10326_vm0 = vmmov %vm10304_vm4  ;;  %v10344_v11 = vld [vmem:[#allocation66_spill] sm:$0xff] }
 0x5f9   : > { %5219 = vmatpush2.msk.msra.mxu1 %vm10315_vm12, %v4039_v0  ;;  %vm10331_vm13 = vmmov %vm10326_vm0 }
 0x5fa   : > { %v9163_v62 = vpop.permute.xlu0 %3586  ;;  %5221 = vmatprep.subr.msk.mxu1 %vm10312_vm8, %v4033_v34  ;;  %v3713_v48 = vsel %vm10331_vm13, %v8906_v42, %v3645_v33  ;;  %vm10333_vm2 = vmmov %vm10326_vm0  ;;  %v10335_v42 = vld [vmem:[#allocation42_spill] sm:$0xff] }
 0x5fb   : > { %v9170_v2 = vpop.permute.xlu1 %3584  ;;  %5223 = vmatpush2.msk.msra.mxu1 %vm10315_vm12, %v4032_v8  ;;  %v3707_v54 = vsel %vm10333_vm2, %v3629_v9, %v9111_v40  ;;  %v3991_v14 = vsel %vm10336_vm10, %v10335_v42, %v10334_v21  ;;  %vm10337_vm1 = vmmov %vm10326_vm0  ;;  %v10350_v8 = vld [vmem:[#allocation50_spill] sm:$0xff]  ;;  %v10365_v42 = vld [vmem:[#allocation60_spill] sm:$0xff] }
 0x5fc   : > { %5225 = vmatprep.subr.msk.mxu1 %vm10312_vm8, %v4026_v6  ;;  %v3706_v27 = vsel %vm10337_vm1, %v8886_v52, %v3629_v9  ;;  %vm10343_vm5 = vmmov %vm10326_vm0  ;;  %v10351_v6 = vld [vmem:[#allocation15_spill] sm:$0xff] }
 0x5fd   : > { %5227 = vmatpush2.msk.msra.mxu1 %vm10315_vm12, %v8892_v7  ;;  %v3693_v59 = vsel %vm10343_vm5, %v10342_v36, %v8954_v25  ;;  %vm10382_vm5 = vmmov %vm10337_vm1 }
 0x5fe   : > { %v9182_v31 = vpop.permute.xlu0 %3662  ;;  %5229 = vmatprep.subr.msk.mxu1 %vm10312_vm8, %v4019_v28  ;;  %v10352_v28 = vld [vmem:[#allocation55_spill] sm:$0xff] }
 0x5ff   : > { %v3661_v55 = vpop.permute.xlu1 %3660  ;;  %5231 = vmatpush2.msk.msra.mxu1 %vm10315_vm12, %v8860_v61  ;;  %v3714_v61 = vsel %vm10326_vm0, %v3645_v33, %v9135_v3  ;;  %v10347_v33 = vld [vmem:[#allocation72_spill] sm:$0xff] }
 0x600   : > { %v3720_v29 = vsel %vm10304_vm4, %v8974_v12, %v3661_v55  ;;  %v3721_v7 = vsel %vm10321_vm9, %v3661_v55, %v9182_v31  ;;  %5233 = vmatprep.subr.msk.mxu1 %vm10312_vm8, %v4012_v24  ;;  %vm10339_vm4 = vmmov %vm10326_vm0  ;;  %v10354_v24 = vld [vmem:[#allocation44_spill] sm:$0xff]  ;;  %v10355_v55 = vld [vmem:[#allocation61_spill] sm:$0xff] }
 0x601   : > { %5250 = vmatprep.subr.msk.mxu0 %vm7122_vm3, %v3721_v7  ;;  %5235 = vmatpush2.msk.msra.mxu1 %vm10315_vm12, %v10325_v20  ;;  %v3700_v53 = vsel %vm10339_vm4, %v9064_v15, %v9010_v1  ;;  %vm10340_vm9 = vmmov %vm10326_vm0  ;;  %v10356_v7 = vld [vmem:[#allocation64_spill] sm:$0xff]  ;;  %v10358_v20 = vld [vmem:[#allocation65_spill] sm:$0xff] }
 0x602   : > { %5252 = vmatpush1.msk.msra.mxu0 %vm10126_vm15, %v3720_v29  ;;  %v9210_v47 = vpop.permute.xlu0 %3602  ;;  %5237 = vmatprep.subr.msk.mxu1 %vm10312_vm8, %v4005_v43  ;;  %v3699_v52 = vsel %vm10340_vm9, %v8832_v35, %v9064_v15  ;;  %v10346_v15 = vld [vmem:[#allocation69_spill] sm:$0xff]  ;;  %v10357_v43 = vld [vmem:[#allocation67_spill] sm:$0xff]  ;;  %v10366_v12 = vld [vmem:[#allocation28_spill] sm:$0xff] }
 0x603   : > { %v9219_v63 = vpop.permute.xlu1 %3600  ;;  %5254 = vmatprep.subr.msk.mxu0 %vm7122_vm3, %v3714_v61  ;;  %5239 = vmatpush2.msk.msra.mxu1 %vm10315_vm12, %v10332_v46  ;;  %v10359_v61 = vld [vmem:[#allocation62_spill] sm:$0xff]  ;;  %v10363_v46 = vld [vmem:[#allocation47_spill] sm:$0xff]  ;;  %vm10378_vm4 = vmmov %vm10337_vm1 }
 0x604   : > { %5256 = vmatpush1.msk.msra.mxu0 %vm10126_vm15, %v3713_v48  ;;  %5241 = vmatprep.subr.msk.mxu1 %vm10312_vm8, %v3998_v37  ;;  %v10362_v37 = vld [vmem:[#allocation57_spill] sm:$0xff]  ;;  %vm10380_vm9 = vmmov %vm10337_vm1 }
 0x605   : > { %5258 = vmatprep.subr.msk.mxu0 %vm7122_vm3, %v3707_v54  ;;  %5243 = vmatpush2.msk.msra.mxu1 %vm10315_vm12, %v10338_v51 }
 0x606   : > { %5260 = vmatpush1.msk.msra.mxu0 %vm10126_vm15, %v3706_v27  ;;  %v9247_v39 = vpop.permute.xlu0 %3618  ;;  %5245 = vmatprep.subr.msk.mxu1 %vm10312_vm8, %v3991_v14  ;;  %vm10345_vm8 = vmmov %vm10326_vm0  ;;  %v10367_v27 = vld [vmem:[#allocation45_spill] sm:$0xff] }
 0x607   : > { %v3983_v9 = vpop.permute.xlu1 %3982  ;;  %5262 = vmatprep.subr.msk.mxu0 %vm7122_vm3, %v3700_v53  ;;  %5247 = vmatpush2.msk.msra.mxu1 %vm10315_vm12, %v10341_v45  ;;  %v3692_v35 = vsel %vm10345_vm8, %v10344_v11, %v10342_v36  ;;  %vm10361_vm12 = vcmask 523264   ;;  %v10368_v53 = vld [vmem:[#allocation63_spill] sm:$0xff] }
 0x608   : > { %5264 = vmatpush1.msk.msra.mxu0 %vm10126_vm15, %v3699_v52  ;;  %4339 = vmatmul.mubr.f32.vlgmr.msra.gmra.mxu1 %v9040_v44 }
 0x609   : > { %5266 = vmatprep.subr.msk.mxu0 %vm7122_vm3, %v3693_v59  ;;  %4416 = vmatprep.subr.mxu1 %v10346_v15 }
 0x60a   : > { %5268 = vmatpush1.msk.msra.mxu0 %vm10126_vm15, %v3692_v35  ;;  %4417 = vmatpush1.msra.mxu1 %v10347_v33  ;;  %v9274_v0 = vpop.permute.xlu0 %3952  ;;  %v10373_v35 = vld [vmem:[#allocation23_spill] sm:$0xff] }
 0x60b   : > { %4418 = vmatprep.subr.mxu1 %v10348_v4  ;;  %v9277_v34 = vpop.permute.xlu1 %3616  ;;  %5270 = vmatprep.subr.msk.mxu0 %vm7122_vm3, %v10349_v22  ;;  %vm10374_vm14 = vnez %v10373_v35 }
 0x60c   : > { %5272 = vmatpush1.msk.msra.mxu0 %vm10126_vm15, %v10350_v8  ;;  %4419 = vmatpush1.msra.mxu1 %v10351_v6 }
 0x60d   : > { %5274 = vmatprep.subr.msk.mxu0 %vm7122_vm3, %v10352_v28  ;;  %4420 = vmatprep.subr.mxu1 %v10353_v32 }
 0x60e   : > { %5276 = vmatpush1.msk.msra.mxu0 %vm10126_vm15, %v10354_v24  ;;  %4421 = vmatpush1.msra.mxu1 %v10355_v55  ;;  %v3635_v29 = vpop.permute.xlu0 %3634 }
 0x60f   : > { %4422 = vmatprep.subr.mxu1 %v10356_v7  ;;  %v3633_v56 = vpop.permute.xlu1 %3632  ;;  %5278 = vmatprep.subr.msk.mxu0 %vm7122_vm3, %v10357_v43  ;;  %vm10369_vm3 = vmmov %vm10336_vm10 }
 0x610   : > { %5280 = vmatpush1.msk.msra.mxu0 %vm10126_vm15, %v10358_v20  ;;  %4423 = vmatpush1.msra.mxu1 %v10359_v61  ;;  %vm10370_vm15 = vmmov %vm10369_vm3  ;;  %v10401_v61 = vld [vmem:[#allocation20_spill] sm:$0xff] }
 0x611   : > { %4424 = vmatprep.subr.mxu1 %v10360_v41  ;;  %5378 = vmatprep.mubr.msk.f32.mxu1 %vm10361_vm12, %v10301_v26  ;;  %v4041_v36 = vsel %vm10370_vm15, %v9145_v17, %v3983_v9  ;;  %vm10372_vm0 = vmmov %vm10369_vm3 }
 0x612   : > { %4425 = vmatpush1.msra.mxu1 %v10362_v37  ;;  %v3651_v48 = vpop.permute.xlu0 %3650  ;;  %vm10375_vm13 = vmmov %vm10372_vm0 }
 0x613   : > { %4426 = vmatprep.subr.mxu1 %v10363_v46  ;;  %v9307_v54 = vpop.permute.xlu1 %3954  ;;  %v4034_v15 = vsel %vm10375_vm13, %v9143_v58, %v9141_v50  ;;  %vm10376_vm2 = vmmov %vm10372_vm0 }
 0x614   : > { %4427 = vmatpush1.msra.mxu1 %v10364_v10  ;;  %v4028_v17 = vsel %vm10376_vm2, %v9137_v5, %v9274_v0  ;;  %vm10377_vm10 = vmmov %vm10372_vm0 }
 0x615   : > { %4428 = vmatprep.subr.mxu1 %v10365_v42  ;;  %v4027_v4 = vsel %vm10377_vm10, %v9058_v19, %v9137_v5  ;;  %vm10383_vm8 = vmmov %vm10372_vm0 }
 0x616   : > { %4429 = vmatpush1.msra.mxu1 %v10366_v12  ;;  %v9312_v14 = vpop.permute.xlu0 %3970  ;;  %vm10384_vm12 = vmmov %vm10337_vm1 }
 0x617   : > { %4430 = vmatprep.subr.mxu1 %v10367_v27  ;;  %v3649_v51 = vpop.permute.xlu1 %3648  ;;  %v3709_v32 = vsel %vm10384_vm12, %v3633_v56, %v3635_v29  ;;  %vm10386_vm15 = vmmov %vm10337_vm1 }
 0x618   : > { %4431 = vmatpush1.msra.mxu1 %v10368_v53  ;;  %v3716_v8 = vsel %vm10380_vm9, %v3649_v51, %v3651_v48  ;;  %v3715_v5 = vsel %vm10382_vm5, %v9135_v3, %v3649_v51  ;;  %v3708_v55 = vsel %vm10386_vm15, %v9111_v40, %v3633_v56 }
 0x61a   : > { %v3985_v26 = vpop.permute.xlu0 %3984 }
 0x61b   : > { %v4042_v52 = vsel %vm10369_vm3, %v3983_v9, %v3985_v26  ;;  %v9317_v45 = vpop.permute.xlu1 %3968  ;;  %vm10385_vm3 = vmmov %vm10372_vm0 }
 0x61c   : > { %5282 = vmatprep.subr.msk.mxu0 %vm7244_vm11, %v4042_v52  ;;  %v4035_v11 = vsel %vm10372_vm0, %v9141_v50, %v9317_v45  ;;  %vm10387_vm0 = vmmov %vm10337_vm1 }
 0x61d   : > { %5284 = vmatpush2.msk.msra.mxu0 %vm10374_vm14, %v4041_v36  ;;  %vm10388_vm13 = vmmov %vm10387_vm0 }
 0x61e   : > { %v3667_v33 = vpop.permute.xlu0 %3666  ;;  %5286 = vmatprep.subr.msk.mxu0 %vm7244_vm11, %v4035_v11  ;;  %v3701_v40 = vsel %vm10388_vm13, %v9010_v1, %v9277_v34  ;;  %vm10389_vm2 = vmmov %vm10387_vm0 }
 0x61f   : > { %v3665_v9 = vpop.permute.xlu1 %3664  ;;  %5288 = vmatpush2.msk.msra.mxu0 %vm10374_vm14, %v4034_v15  ;;  %v3695_v7 = vsel %vm10389_vm2, %v9219_v63, %v9210_v47  ;;  %vm10390_vm10 = vmmov %vm10387_vm0  ;;  %v10392_v47 = vld [vmem:[#allocation46_spill] sm:$0xff] }
 0x620   : > { %v3722_v22 = vsel %vm10337_vm1, %v9182_v31, %v3665_v9  ;;  %v3723_v50 = vsel %vm10378_vm4, %v3665_v9, %v3667_v33  ;;  %5290 = vmatprep.subr.msk.mxu0 %vm7244_vm11, %v4028_v17  ;;  %vm10391_vm1 = vmmov %vm10387_vm0 }
 0x621   : > { %5315 = vmatprep.subr.msk.mxu1 %vm10155_vm7, %v3723_v50  ;;  %5292 = vmatpush2.msk.msra.mxu0 %vm10374_vm14, %v4027_v4  ;;  %v3688_v1 = vsel %vm10391_vm1, %v9170_v2, %v9163_v62  ;;  %vm10393_vm4 = vmmov %vm10387_vm0 }
 0x622   : > { %5317 = vmatpush1.msk.msra.mxu1 %vm10158_vm6, %v3722_v22  ;;  %v3935_v19 = vpop.permute.xlu0 %3934  ;;  %v3687_v56 = vsel %vm10393_vm4, %v10392_v47, %v9170_v2  ;;  %vm10394_vm9 = vmmov %vm10385_vm3 }
 0x623   : > { %v4020_v31 = vsel %vm10383_vm8, %v9022_v60, %v3935_v19  ;;  %5319 = vmatprep.subr.msk.mxu1 %vm10155_vm7, %v3716_v8  ;;  %v3937_v28 = vpop.permute.xlu1 %3936  ;;  %v3702_v60 = vsel %vm10387_vm0, %v9277_v34, %v9247_v39  ;;  %v3694_v39 = vsel %vm10390_vm10, %v8954_v25, %v9219_v63  ;;  %vm10395_vm5 = vmmov %vm10385_vm3  ;;  %vm10402_vm0 = vnez %v10401_v61 }
 0x624   : > { %v4021_v24 = vsel %vm10385_vm3, %v3935_v19, %v3937_v28  ;;  %5321 = vmatpush1.msk.msra.mxu1 %vm10158_vm6, %v3715_v5  ;;  %vm10396_vm8 = vmmov %vm10385_vm3 }
 0x625   : > { %5294 = vmatprep.subr.msk.mxu0 %vm7244_vm11, %v4021_v24  ;;  %5323 = vmatprep.subr.msk.mxu1 %vm10155_vm7, %v3709_v32  ;;  %vm10397_vm12 = vmmov %vm10385_vm3 }
 0x626   : > { %5296 = vmatpush2.msk.msra.mxu0 %vm10374_vm14, %v4020_v31  ;;  %5325 = vmatpush1.msk.msra.mxu1 %vm10158_vm6, %v3708_v55  ;;  %v3939_v3 = vpop.permute.xlu0 %3938  ;;  %vm10400_vm15 = vmmov %vm10395_vm5 }
 0x627   : > { %5327 = vmatprep.subr.msk.mxu1 %vm10155_vm7, %v3702_v60  ;;  %v3919_v29 = vpop.permute.xlu1 %3918  ;;  %vm10405_vm13 = vmmov %vm10395_vm5 }
 0x628   : > { %5329 = vmatpush1.msk.msra.mxu1 %vm10158_vm6, %v3701_v40  ;;  %v4013_v63 = vsel %vm10395_vm5, %v8926_v38, %v3919_v29  ;;  %vm10406_vm2 = vmmov %vm10395_vm5 }
 0x629   : > { %5331 = vmatprep.subr.msk.mxu1 %vm10155_vm7, %v3695_v7  ;;  %v4029_v46 = vsel %vm10406_vm2, %v9274_v0, %v9307_v54  ;;  %vm10407_vm10 = vmmov %vm10406_vm2 }
 0x62a   : > { %5333 = vmatpush1.msk.msra.mxu1 %vm10158_vm6, %v3694_v39  ;;  %v3921_v34 = vpop.permute.xlu0 %3920  ;;  %vm10408_vm1 = vmmov %vm10406_vm2 }
 0x62b   : > { %v4014_v43 = vsel %vm10394_vm9, %v3919_v29, %v3921_v34  ;;  %5335 = vmatprep.subr.msk.mxu1 %vm10155_vm7, %v3688_v1  ;;  %v3923_v25 = vpop.permute.xlu1 %3922  ;;  %v4112_v42 = vsel %vm10408_vm1, %v3939_v3, 0.0  ;;  %vm10409_vm4 = vmmov %vm10408_vm1 }
 0x62c   : > { %5337 = vmatpush1.msk.msra.mxu1 %vm10158_vm6, %v3687_v56  ;;  %5298 = vmatprep.subr.msk.mxu0 %vm7244_vm11, %v4014_v43  ;;  %v4022_v0 = vsel %vm10409_vm4, %v3937_v28, %v3939_v3  ;;  %vm10410_vm9 = vmmov %vm10408_vm1  ;;  %v5513_v3 = vmov 1966171168  }
 0x62d   : > { %5339 = vmatprep.subr.msk.mxu1 %vm10155_vm7, %v9130_v13  ;;  %5300 = vmatpush2.msk.msra.mxu0 %vm10374_vm14, %v4013_v63  ;;  %v10398_v13 = vld [vmem:[#allocation22_spill] sm:$0xff]  ;;  %vm10418_vm2 = vmmov %vm10408_vm1  ;;  %v4508_v40 = vunpack.c.l.s4 %v5513_v3 }
 0x62e   : > { %5341 = vmatpush1.msk.msra.mxu1 %vm10158_vm6, %v9127_v18  ;;  %v3903_v62 = vpop.permute.xlu0 %3902  ;;  %vm10399_vm3 = vnez %v10398_v13  ;;  %v4114_v18 = vsel %vm10400_vm15, %v9312_v14, 0.0  ;;  %vm10414_vm15 = vmmov %vm10408_vm1 }
 0x62f   : > { %5343 = vmatprep.subr.msk.mxu1 %vm10155_vm7, %v9098_v23  ;;  %v3987_v38 = vpop.permute.xlu1 %3986  ;;  %vm10403_vm7 = vmmov %vm10395_vm5  ;;  %v4006_v10 = vsel %vm10407_vm10, %v8900_v57, %v3903_v62  ;;  %v4509_v39 = vunpack.c.0.s8 %v4508_v40 }
 0x630   : > { %v4043_v2 = vsel %vm10396_vm8, %v3985_v26, %v3987_v38  ;;  %v4115_v20 = vsel %vm10397_vm12, %v3987_v38, 0.0  ;;  %5345 = vmatpush1.msk.msra.mxu1 %vm10158_vm6, %v9095_v49  ;;  %v4036_v23 = vsel %vm10403_vm7, %v9317_v45, %v9312_v14  ;;  %vm10404_vm6 = vmmov %vm10395_vm5 }
 0x631   : > { %5347 = vmatprep.subr.msk.mxu1 %vm10399_vm3, %v4115_v20  ;;  %v4113_v49 = vsel %vm10404_vm6, %v9307_v54, 0.0  ;;  %v4111_v54 = vsel %vm10410_vm9, %v3923_v25, 0.0  ;;  %vm10411_vm5 = vmmov %vm10408_vm1 }
 0x632   : > { %5349 = vmatpush2.msk.msra.mxu1 %vm10402_vm0, %v4043_v2  ;;  %v3907_v41 = vpop.permute.xlu0 %3906  ;;  %vm10412_vm8 = vmmov %vm10408_vm1 }
 0x633   : > { %5351 = vmatprep.subr.msk.mxu1 %vm10399_vm3, %v4114_v18  ;;  %v3905_v37 = vpop.permute.xlu1 %3904  ;;  %vm10413_vm12 = vmmov %vm10408_vm1  ;;  %v4110_v53 = vsel %vm10414_vm15, %v3907_v41, 0.0 }
 0x634   : > { %v4007_v48 = vsel %vm10405_vm13, %v3903_v62, %v3905_v37  ;;  %5353 = vmatpush2.msk.msra.mxu1 %vm10402_vm0, %v4036_v23  ;;  %v4015_v51 = vsel %vm10413_vm12, %v3921_v34, %v3923_v25  ;;  %vm10415_vm7 = vmmov %vm10408_vm1  ;;  %v10421_v25 = vld [vmem:[#allocation6_spill] sm:$0xff] }
 0x635   : > { %5302 = vmatprep.subr.msk.mxu0 %vm7244_vm11, %v4007_v48  ;;  %5355 = vmatprep.subr.msk.mxu1 %vm10399_vm3, %v4113_v49  ;;  %v4008_v26 = vsel %vm10415_vm7, %v3905_v37, %v3907_v41  ;;  %vm10416_vm6 = vmmov %vm10408_vm1  ;;  %v4512_v63 = vsub.s32 %v4509_v39, %v10421_v25 }
 0x636   : > { %5304 = vmatpush2.msk.msra.mxu0 %vm10374_vm14, %v4006_v10  ;;  %5357 = vmatpush2.msk.msra.mxu1 %vm10402_vm0, %v4029_v46  ;;  %v3889_v12 = vpop.permute.xlu0 %3888  ;;  %vm10417_vm13 = vmmov %vm10408_vm1 }
 0x637   : > { %5359 = vmatprep.subr.msk.mxu1 %vm10399_vm3, %v4112_v42  ;;  %v3887_v57 = vpop.permute.xlu1 %3886  ;;  %vm10419_vm10 = vmmov %vm10408_vm1 }
 0x638   : > { %v3999_v14 = vsel %vm10411_vm5, %v10328_v30, %v3887_v57  ;;  %v4000_v27 = vsel %vm10412_vm8, %v3887_v57, %v3889_v12  ;;  %5361 = vmatpush2.msk.msra.mxu1 %vm10402_vm0, %v4022_v0  ;;  %vm10420_vm4 = vmmov %vm10408_vm1 }
 0x639   : > { %5306 = vmatprep.subr.msk.mxu0 %vm7244_vm11, %v4000_v27  ;;  %5363 = vmatprep.subr.msk.mxu1 %vm10399_vm3, %v4111_v54 }
 0x63a   : > { %5308 = vmatpush2.msk.msra.mxu0 %vm10374_vm14, %v3999_v14  ;;  %5365 = vmatpush2.msk.msra.mxu1 %vm10402_vm0, %v4015_v51  ;;  %v3871_v30 = vpop.permute.xlu0 %3870 }
 0x63b   : > { %5367 = vmatprep.subr.msk.mxu1 %vm10399_vm3, %v4110_v53  ;;  %v3891_v52 = vpop.permute.xlu1 %3890  ;;  %v3992_v4 = vsel %vm10420_vm4, %v10334_v21, %v3871_v30 }
 0x63c   : > { %v4001_v45 = vsel %vm10416_vm6, %v3889_v12, %v3891_v52  ;;  %v4109_v36 = vsel %vm10417_vm13, %v3891_v52, 0.0  ;;  %5369 = vmatpush2.msk.msra.mxu1 %vm10402_vm0, %v4008_v26 }
 0x63d   : > { %5371 = vmatprep.subr.msk.mxu1 %vm10399_vm3, %v4109_v36 }
 0x63e   : > { %5373 = vmatpush2.msk.msra.mxu1 %vm10402_vm0, %v4001_v45  ;;  %v3875_v11 = vpop.permute.xlu0 %3874 }
 0x63f   : > { %v4108_v15 = vsel %vm10418_vm2, %v3875_v11, 0.0  ;;  %v3873_v33 = vpop.permute.xlu1 %3872 }
 0x640   : > { %v3993_v17 = vsel %vm10419_vm10, %v3871_v30, %v3873_v33  ;;  %v3994_v9 = vsel %vm10408_vm1, %v3873_v33, %v3875_v11  ;;  %5375 = vmatprep.subr.msk.mxu1 %vm10399_vm3, %v4108_v15 }
 0x641   : > { %5310 = vmatprep.subr.msk.mxu0 %vm7244_vm11, %v3993_v17  ;;  %5377 = vmatpush2.msk.msra.mxu1 %vm10402_vm0, %v3994_v9 }
 0x642   : > { %5312 = vmatpush2.msk.msra.mxu0 %vm10374_vm14, %v3992_v4  ;;  %4481 = vmatmul.mubr.f32.vlgmr.msra.gmra.mxu1 %v9040_v44 }
 0x643   : > { %4410 = vmatmul.mubr.f32.vlgmr.msra.gmra.mxu0 %v9040_v44 }
 0x64c   : > { %v4185_v58 = vpop.permute.xlu1 %4184 }
 0x64d   : > { %v4190_v6 = vrot.slane %v4185_v58, %v10278_v16 }
 0x6a0   : > { %v4269_v50 = vpop.f32.mrf.mxu0 }
 0x6a1   : > { %v4270_v31 = vadd.f32 %v4269_v50, %v4190_v6 }
 0x6a2   : > { %v4271_v21 = vpop.f32.mrf.mxu0 }
 0x6a3   : > { %v4272_v59 = vadd.f32 %v4271_v21, %v4190_v6 }
 0x6c8   : > { %v4340_v22 = vpop.f32.mrf.mxu1 }
 0x6c9   : > { %v4341_v5 = vadd.f32 %v4340_v22, %v4190_v6 }
 0x6ca   : > { %v4342_v8 = vpop.f32.mrf.mxu1 }
 0x6cb   : > { %v4343_v19 = vadd.f32 %v4342_v8, %v4190_v6 }
 0x6cd   : > { %5431 = vtanh.f32 %v4343_v19 }
 0x6ce   : > { %5433 = vtanh.f32 %v4272_v59 }
 0x6cf   : > { %5435 = vtanh.f32 %v4341_v5 }
 0x6d0   : > { %5437 = vtanh.f32 %v4270_v31 }
 0x6da   : > { %v5432_v29 = vpop.eup %5431 }
 0x6db   : > { %v5434_v7 = vpop.eup %5433 }
 0x6dc   : > { %v5436_v1 = vpop.eup %5435 }
 0x6dd   : > { %v4504_v34 = vcombine.low %v5436_v1, %v5432_v29  ;;  %v5438_v47 = vpop.eup %5437 }
 0x6de   : > { %v4503_v43 = vcombine.low %v5438_v47, %v5434_v7 }
 0x6df   : > { %v4520_v2 = vrot.slane %v4504_v34, %v4512_v63 }
 0x6e0   : > { %v4513_v61 = vrot.slane %v4503_v43, %v4512_v63 }
 0x6e2   : > { %v4535_v37 = vcombine.low %v4513_v61, %v4520_v2 }
 0x6e4   : > { %v4543_v48 = vrot.slane %v4535_v37, %v4512_v63 }
 0x702   : > { %v4482_v35 = vpop.f32.mrf.mxu1 }
 0x703   : > { %v4411_v28 = vpop.f32.mrf.mxu0  ;;  %v4483_v32 = vadd.f32 %v4482_v35, %v4190_v6 }
 0x704   : > { %v4412_v24 = vadd.f32 %v4411_v28, %v4190_v6  ;;  %v4484_v44 = vpop.f32.mrf.mxu1 }
 0x705   : > { %5439 = vtanh.f32 %v4483_v32  ;;  %v4413_v55 = vpop.f32.mrf.mxu0  ;;  %v4485_v60 = vadd.f32 %v4484_v44, %v4190_v6 }
 0x706   : > { %5441 = vtanh.f32 %v4412_v24  ;;  %v4414_v16 = vadd.f32 %v4413_v55, %v4190_v6 }
 0x707   : > { %5443 = vtanh.f32 %v4485_v60 }
 0x708   : > { %5445 = vtanh.f32 %v4414_v16 }
 0x712   : > { %v5440_v56 = vpop.eup %5439 }
 0x713   : > { %v5442_v62 = vpop.eup %5441 }
 0x714   : > { %v5444_v38 = vpop.eup %5443 }
 0x715   : > { %v5446_v20 = vpop.eup %5445  ;;  %v4506_v13 = vcombine.low %v5440_v56, %v5444_v38 }
 0x716   : > { %v4505_v18 = vcombine.low %v5442_v62, %v5446_v20 }
 0x717   : > { %v4534_v41 = vrot.slane %v4506_v13, %v4512_v63 }
 0x718   : > { %v4527_v23 = vrot.slane %v4505_v18, %v4512_v63 }
 0x71a   : > { %v4536_v49 = vcombine.low %v4527_v23, %v4534_v41 }
 0x71c   : > { %v4550_v46 = vrot.slane %v4536_v49, %v4512_v63 }
 0x71e   : > { %v4551_v10 = vcombine.low %v4543_v48, %v4550_v46 }
 0x720   : > { %4553 = vst [vmem:[%s365_s22] sm:$0xff] %v4551_v10 }
 0x721   : > { %5460 = shalt.err (!%p5457_p3)
}
 0x722   : > { %s5461_s19 = scalar_lea.hbm %s4567_s29, 128  ;;  %s5465_s22 = scalar_lea.hbm %s9545_s10, 256 }
 0x723   : > { %p5462_p4 = scmp.ne.s32.totalorder %s4567_s29, %s5461_s19  ;;  %p5466_p9 = scmp.lt.s32.totalorder %s4567_s29, %s9545_s10 }
 0x724   : > { %p5467_p10 = scmp.lt.s32.totalorder %s5465_s22, %s5461_s19 }
 0x725   : > { %p5463_p7 = pnand %p5462_p4, %p5611_p5 }
 0x726   : > { %p5468_p11 = por %p5467_p10, %p5466_p9 }
 0x727   : > { %p5464_p8 = pneg %p5463_p7 }
 0x729   : > { %p5469_p12 = pnand %p5468_p11, %p5464_p8 }
 0x72b   : > { %5472 = shalt.err (!%p5469_p12)
}
 0x72c   : > { %5385 = dma.vmem_to_hbm [thread:$0]  (%p5611_p5), %s4570_s26, 128, %s4567_s29, %s4555_s30  }
 0x72d PF: > { %p5391_p13 = scmp.ge.s32.totalorder %s5507_s18, 2  ;;  %s4581_s11 = sand.u32 1, %s5495_s15  }
 0x72e   : > { %s4582_s12 = scalar_lea.sflag [#allocation4], %s4581_s11 }
 0x72f   : > { %p5388_p0 = pnand %p5391_p13, %p5615_p6 }
 0x731   : > { %p5389_p1 = pneg %p5388_p0 }
 0x733   : > { %5490 = dma.done.wait (%p5389_p1), %s4582_s12, 128  }
 0x734   : > { %5492 = vsyncadd (%p5389_p1), %s4582_s12, 4294967168  ;;  %p22_p2 = scmp.ge.s32.totalorder %s5598_s20, 4   ;;  %s10422_s15 = smov %s5499_s16 }
 0x735   : > { %s10423_s16 = smov %s5503_s17  ;;  %s10424_s17 = smov %s5609_s23 }
 0x736   : > { %s10425_s18 = smov %s5598_s20  ;;  %24 = sbr.rel (!%p22_p2) target bundleno = 6 (0x6), region = 98 }
 0x73b   :  { %4587 = vsyncpa [#allocation4], 1 }
 0x73c   :  { %4589 = vsyncpa [#allocation4 + $0x1], 1 }

</bundles_post_ra>
